<compile_context>
chip_gen: v6e
topology: v6e:2x2x1
jax: 0.10.0
libtpu: 0.0.40
codegen_flags: <defaults>
</compile_context>

<pallas_src>
import jax
import jax.numpy as jnp
from jax import lax
from jax.experimental import pallas as pl
from jax.experimental.pallas import tpu as pltpu


# ----------------------------------------------------------------------------
# Kernel
# ----------------------------------------------------------------------------
def _lstm_regression_kernel(x_ref, wih1_ref, whh1_ref, b1_ref,
                            w2_ref, b2_ref, wr_ref, br_ref, out_ref):
    B, S, F = x_ref.shape
    Hp = whh1_ref.shape[0]          # lane-padded hidden size (multiple of 128)
    G = 4 * Hp

    def lstm_gates(g, c):
        # Gate column order after weight prep is (i, f, o, g): one contiguous
        # lane-aligned sigmoid slab + one tanh slab.
        ifo = jax.nn.sigmoid(g[:, 0:3 * Hp])
        i = ifo[:, 0 * Hp:1 * Hp]
        f = ifo[:, 1 * Hp:2 * Hp]
        o = ifo[:, 2 * Hp:3 * Hp]
        gg = jnp.tanh(g[:, 3 * Hp:4 * Hp])
        c_new = f * c + i * gg
        h_new = o * jnp.tanh(c_new)
        return h_new, c_new

    x = x_ref[...]                                             # (B, S, F) bf16

    # Layer-1 input projection for ALL timesteps in one MXU matmul (off the
    # serial critical path); combined bias folded in.
    xw1 = jnp.dot(x.reshape(B * S, F), wih1_ref[...],
                  preferred_element_type=jnp.float32) + b1_ref[...]
    xw1 = xw1.reshape(B, S, G)

    whh1 = whh1_ref[...]                                       # (Hp, 4Hp)  bf16
    w2 = w2_ref[...]                                           # (2Hp, 4Hp) bf16
    b2 = b2_ref[...]                                           # (1, 4Hp)   f32

    h1 = jnp.zeros((B, Hp), jnp.float32)
    c1 = jnp.zeros((B, Hp), jnp.float32)
    h2 = jnp.zeros((B, Hp), jnp.float32)
    c2 = jnp.zeros((B, Hp), jnp.float32)

    # S is static & tiny -> full unroll; layers interleaved so layer-2 step t
    # (independent of layer-1 step t+1) can overlap it in the schedule.
    for t in range(S):
        # ---- layer 1 ----
        g1 = xw1[:, t, :] + jnp.dot(h1.astype(jnp.bfloat16), whh1,
                                    preferred_element_type=jnp.float32)
        h1, c1 = lstm_gates(g1, c1)
        # ---- layer 2 (interleaved): one matmul covers h1_t @ Wih2 and
        #      h2_{t-1} @ Whh2 via the row-stacked combined weight. ----
        hh = jnp.concatenate([h1.astype(jnp.bfloat16),
                              h2.astype(jnp.bfloat16)], axis=-1)   # (B, 2Hp)
        g2 = jnp.dot(hh, w2, preferred_element_type=jnp.float32) + b2
        h2, c2 = lstm_gates(g2, c2)

    # ---- regressor on the final layer-2 hidden state ----
    out = jnp.dot(h2.astype(jnp.bfloat16), wr_ref[...],
                  preferred_element_type=jnp.float32) + br_ref[...]
    out_ref[...] = out.astype(out_ref.dtype)


# ----------------------------------------------------------------------------
# Wrapper (weight layout prep + pallas_call)
# ----------------------------------------------------------------------------
def _round_up(n, m):
    return ((n + m - 1) // m) * m


_GATE_ORDER = jnp.array([0, 1, 3, 2])   # PyTorch (i, f, g, o) -> (i, f, o, g)


def _pad_gates(w, H, Hp):
    """PyTorch (4H, In) -> (In, 4*Hp): gate reorder + zero-pad + transpose."""
    In = w.shape[1]
    w4 = w.reshape(4, H, In)[_GATE_ORDER]                      # (4, H, In)
    w4 = jnp.pad(w4, ((0, 0), (0, Hp - H), (0, 0)))            # (4, Hp, In)
    return jnp.transpose(w4, (2, 0, 1)).reshape(In, 4 * Hp)


def _pad_gate_bias(b, H, Hp):
    b4 = b.reshape(4, H)[_GATE_ORDER]
    return jnp.pad(b4, ((0, 0), (0, Hp - H))).reshape(1, 4 * Hp)


@jax.jit
def lstm_regression_forward(x, params):
    """x: (B, S, n_features) f32. Returns (B, S, n_features) like the module."""
    (wih1, whh1, bih1, bhh1, wih2, whh2, bih2, bhh2, wr, br) = params
    B, S, F = x.shape
    H = whh1.shape[1]
    Hp = max(128, _round_up(H, 128))   # lane-aligned hidden; zero-padding exact

    bf16 = jnp.bfloat16
    wih1_p = _pad_gates(wih1, H, Hp).astype(bf16)                                   # (F,  4Hp)
    whh1_p = jnp.pad(_pad_gates(whh1, H, Hp), ((0, Hp - H), (0, 0))).astype(bf16)   # (Hp, 4Hp)
    wih2_p = jnp.pad(_pad_gates(wih2, H, Hp), ((0, Hp - H), (0, 0))).astype(bf16)   # (Hp, 4Hp)
    whh2_p = jnp.pad(_pad_gates(whh2, H, Hp), ((0, Hp - H), (0, 0))).astype(bf16)   # (Hp, 4Hp)
    w2_p = jnp.concatenate([wih2_p, whh2_p], axis=0)                                # (2Hp, 4Hp)
    b1_p = _pad_gate_bias(bih1 + bhh1, H, Hp)                                       # (1, 4Hp) f32
    b2_p = _pad_gate_bias(bih2 + bhh2, H, Hp)                                       # (1, 4Hp) f32
    wr_p = jnp.pad(wr.T, ((0, Hp - H), (0, 0))).astype(bf16)                        # (Hp, F)
    br_p = br.reshape(1, F)                                                         # (1, F)  f32

    vmem = pltpu.MemorySpace.VMEM
    out = pl.pallas_call(
        _lstm_regression_kernel,
        out_shape=jax.ShapeDtypeStruct((B, F), jnp.float32),
        in_specs=[pl.BlockSpec(memory_space=vmem)] * 8,
        out_specs=pl.BlockSpec(memory_space=vmem),
    )(x.astype(bf16), wih1_p, whh1_p, b1_p, w2_p, b2_p, wr_p, br_p)

    # The torch module repeats the regression output across the sequence axis.
    return jnp.broadcast_to(out[:, None, :], (B, S, F))


# ----------------------------------------------------------------------------
# Pure-JAX f32 reference (matches nn.LSTM batch_first semantics + regressor)
# ----------------------------------------------------------------------------
def lstm_regression_reference(x, params):
    (wih1, whh1, bih1, bhh1, wih2, whh2, bih2, bhh2, wr, br) = params
    B, S, F = x.shape
    H = whh1.shape[1]
    b1 = bih1 + bhh1
    b2 = bih2 + bhh2

    def cell(x_t, h, c, wih, whh, b):
        g = x_t @ wih.T + h @ whh.T + b
        i, f, gg, o = jnp.split(g, 4, axis=-1)
        i, f, o = jax.nn.sigmoid(i), jax.nn.sigmoid(f), jax.nn.sigmoid(o)
        gg = jnp.tanh(gg)
        c = f * c + i * gg
        h = o * jnp.tanh(c)
        return h, c

    def step(carry, x_t):
        h1, c1, h2, c2 = carry
        h1, c1 = cell(x_t, h1, c1, wih1, whh1, b1)
        h2, c2 = cell(h1, h2, c2, wih2, whh2, b2)
        return (h1, c1, h2, c2), None

    init = tuple(jnp.zeros((B, H), jnp.float32) for _ in range(4))
    (h1, c1, h2, c2), _ = lax.scan(step, init, jnp.transpose(x, (1, 0, 2)))
    out = h2 @ wr.T + br
    return jnp.broadcast_to(out[:, None, :], (B, S, F))


# ----------------------------------------------------------------------------
# Param init (PyTorch-style layouts and U(-1/sqrt(H), 1/sqrt(H)) ranges)
# ----------------------------------------------------------------------------
def init_params(key, n_features, n_hidden):
    ks = jax.random.split(key, 10)
    s = 1.0 / (n_hidden ** 0.5)
    u = lambda k, shape: jax.random.uniform(k, shape, jnp.float32, -s, s)
    wih1 = u(ks[0], (4 * n_hidden, n_features))
    whh1 = u(ks[1], (4 * n_hidden, n_hidden))
    bih1 = u(ks[2], (4 * n_hidden,))
    bhh1 = u(ks[3], (4 * n_hidden,))
    wih2 = u(ks[4], (4 * n_hidden, n_hidden))
    whh2 = u(ks[5], (4 * n_hidden, n_hidden))
    bih2 = u(ks[6], (4 * n_hidden,))
    bhh2 = u(ks[7], (4 * n_hidden,))
    wr = u(ks[8], (n_features, n_hidden))
    br = u(ks[9], (n_features,))
    return (wih1, whh1, bih1, bhh1, wih2, whh2, bih2, bhh2, wr, br)


if __name__ == "__main__":
    key = jax.random.PRNGKey(0)
    kx, kp = jax.random.split(key)

    batch, seq_len, n_features, n_hidden = 2, 8, 4, 64
    x = jax.random.normal(kx, (batch, seq_len, n_features), jnp.float32)
    params = init_params(kp, n_features, n_hidden)

    out = jax.block_until_ready(lstm_regression_forward(x, params))
    ref = jax.block_until_ready(lstm_regression_reference(x, params))

    assert out.shape == (batch, seq_len, n_features)
    # bf16 MXU operands in the kernel vs. a pure-f32 reference -> relaxed tol.
    assert jnp.allclose(out, ref, atol=5e-2, rtol=5e-2), \
        f"max abs diff {float(jnp.max(jnp.abs(out - ref)))}"

    print("KERNEL_OK")
</pallas_src>

<mosaic_0001>
module attributes {stable_mosaic.version = 11 : i64} {
  func.func @_lstm_regression_kernel(%arg0: memref<2x8x4xbf16, #tpu.memory_space<vmem>>, %arg1: memref<4x512xbf16, #tpu.memory_space<vmem>>, %arg2: memref<128x512xbf16, #tpu.memory_space<vmem>>, %arg3: memref<1x512xf32, #tpu.memory_space<vmem>>, %arg4: memref<256x512xbf16, #tpu.memory_space<vmem>>, %arg5: memref<1x512xf32, #tpu.memory_space<vmem>>, %arg6: memref<128x4xbf16, #tpu.memory_space<vmem>>, %arg7: memref<1x4xf32, #tpu.memory_space<vmem>>, %arg8: memref<2x4xf32, #tpu.memory_space<vmem>>) attributes {dimension_semantics = [], scalar_prefetch = 0 : i64, scratch_operands = 0 : i64, tpu.core_type = #tpu.core_type<tc>} {
    %c0 = arith.constant 0 : index
    %c0_0 = arith.constant 0 : index
    %c0_1 = arith.constant 0 : index
    %0 = vector.load %arg0[%c0, %c0_0, %c0_1] : memref<2x8x4xbf16, #tpu.memory_space<vmem>>, vector<2x8x4xbf16>
    %1 = vector.shape_cast %0 : vector<2x8x4xbf16> to vector<16x4xbf16>
    %c0_2 = arith.constant 0 : index
    %c0_3 = arith.constant 0 : index
    %2 = vector.load %arg1[%c0_2, %c0_3] : memref<4x512xbf16, #tpu.memory_space<vmem>>, vector<4x512xbf16>
    %cst = arith.constant dense<0.000000e+00> : vector<16x512xf32>
    %3 = tpu.matmul %1, %2, %cst {dimension_numbers = #tpu.dot_dimension_numbers<[1], [0], [0], [1], [0, 0, 1, 1], [], []>} : vector<16x4xbf16>, vector<4x512xbf16>, vector<16x512xf32> -> vector<16x512xf32>
    %c0_4 = arith.constant 0 : index
    %c0_5 = arith.constant 0 : index
    %4 = vector.load %arg3[%c0_4, %c0_5] : memref<1x512xf32, #tpu.memory_space<vmem>>, vector<1x512xf32>
    %5 = vector.broadcast %4 : vector<1x512xf32> to vector<16x512xf32>
    %6 = arith.addf %3, %5 : vector<16x512xf32>
    %7 = vector.shape_cast %6 : vector<16x512xf32> to vector<2x8x512xf32>
    %c0_6 = arith.constant 0 : index
    %c0_7 = arith.constant 0 : index
    %8 = vector.load %arg2[%c0_6, %c0_7] : memref<128x512xbf16, #tpu.memory_space<vmem>>, vector<128x512xbf16>
    %c0_8 = arith.constant 0 : index
    %c0_9 = arith.constant 0 : index
    %9 = vector.load %arg4[%c0_8, %c0_9] : memref<256x512xbf16, #tpu.memory_space<vmem>>, vector<256x512xbf16>
    %c0_10 = arith.constant 0 : index
    %c0_11 = arith.constant 0 : index
    %10 = vector.load %arg5[%c0_10, %c0_11] : memref<1x512xf32, #tpu.memory_space<vmem>>, vector<1x512xf32>
    %cst_12 = arith.constant 0.000000e+00 : f32
    %11 = vector.broadcast %cst_12 : f32 to vector<2x128xf32>
    %cst_13 = arith.constant 0.000000e+00 : f32
    %12 = vector.broadcast %cst_13 : f32 to vector<2x128xf32>
    %cst_14 = arith.constant 0.000000e+00 : f32
    %13 = vector.broadcast %cst_14 : f32 to vector<2x128xf32>
    %cst_15 = arith.constant 0.000000e+00 : f32
    %14 = vector.broadcast %cst_15 : f32 to vector<2x128xf32>
    %15 = vector.extract_strided_slice %7 {offsets = [0, 0, 0], sizes = [2, 1, 512], strides = [1, 1, 1]} : vector<2x8x512xf32> to vector<2x1x512xf32>
    %16 = vector.shape_cast %15 : vector<2x1x512xf32> to vector<2x512xf32>
    %17 = arith.truncf %11 : vector<2x128xf32> to vector<2x128xbf16>
    %cst_16 = arith.constant dense<0.000000e+00> : vector<2x512xf32>
    %18 = tpu.matmul %17, %8, %cst_16 {dimension_numbers = #tpu.dot_dimension_numbers<[1], [0], [0], [1], [0, 0, 1, 1], [], []>} : vector<2x128xbf16>, vector<128x512xbf16>, vector<2x512xf32> -> vector<2x512xf32>
    %19 = arith.addf %16, %18 : vector<2x512xf32>
    %20 = vector.extract_strided_slice %19 {offsets = [0, 0], sizes = [2, 384], strides = [1, 1]} : vector<2x512xf32> to vector<2x384xf32>
    %21 = arith.negf %20 : vector<2x384xf32>
    %22 = math.exp %21 : vector<2x384xf32>
    %cst_17 = arith.constant 1.000000e+00 : f32
    %23 = vector.broadcast %cst_17 : f32 to vector<2x384xf32>
    %24 = arith.addf %23, %22 : vector<2x384xf32>
    %25 = arith.divf %23, %24 : vector<2x384xf32>
    %26 = vector.extract_strided_slice %25 {offsets = [0, 0], sizes = [2, 128], strides = [1, 1]} : vector<2x384xf32> to vector<2x128xf32>
    %27 = vector.extract_strided_slice %25 {offsets = [0, 128], sizes = [2, 128], strides = [1, 1]} : vector<2x384xf32> to vector<2x128xf32>
    %28 = vector.extract_strided_slice %25 {offsets = [0, 256], sizes = [2, 128], strides = [1, 1]} : vector<2x384xf32> to vector<2x128xf32>
    %29 = vector.extract_strided_slice %19 {offsets = [0, 384], sizes = [2, 128], strides = [1, 1]} : vector<2x512xf32> to vector<2x128xf32>
    %30 = math.tanh %29 : vector<2x128xf32>
    %31 = arith.mulf %27, %12 : vector<2x128xf32>
    %32 = arith.mulf %26, %30 : vector<2x128xf32>
    %33 = arith.addf %31, %32 : vector<2x128xf32>
    %34 = math.tanh %33 : vector<2x128xf32>
    %35 = arith.mulf %28, %34 : vector<2x128xf32>
    %36 = arith.truncf %35 : vector<2x128xf32> to vector<2x128xbf16>
    %37 = arith.truncf %13 : vector<2x128xf32> to vector<2x128xbf16>
    %38 = tpu.concatenate %36, %37 in 1 : vector<2x128xbf16>, vector<2x128xbf16> -> vector<2x256xbf16>
    %cst_18 = arith.constant dense<0.000000e+00> : vector<2x512xf32>
    %39 = tpu.matmul %38, %9, %cst_18 {dimension_numbers = #tpu.dot_dimension_numbers<[1], [0], [0], [1], [0, 0, 1, 1], [], []>} : vector<2x256xbf16>, vector<256x512xbf16>, vector<2x512xf32> -> vector<2x512xf32>
    %40 = vector.broadcast %10 : vector<1x512xf32> to vector<2x512xf32>
    %41 = arith.addf %39, %40 : vector<2x512xf32>
    %42 = vector.extract_strided_slice %41 {offsets = [0, 0], sizes = [2, 384], strides = [1, 1]} : vector<2x512xf32> to vector<2x384xf32>
    %43 = arith.negf %42 : vector<2x384xf32>
    %44 = math.exp %43 : vector<2x384xf32>
    %cst_19 = arith.constant 1.000000e+00 : f32
    %45 = vector.broadcast %cst_19 : f32 to vector<2x384xf32>
    %46 = arith.addf %45, %44 : vector<2x384xf32>
    %47 = arith.divf %45, %46 : vector<2x384xf32>
    %48 = vector.extract_strided_slice %47 {offsets = [0, 0], sizes = [2, 128], strides = [1, 1]} : vector<2x384xf32> to vector<2x128xf32>
    %49 = vector.extract_strided_slice %47 {offsets = [0, 128], sizes = [2, 128], strides = [1, 1]} : vector<2x384xf32> to vector<2x128xf32>
    %50 = vector.extract_strided_slice %47 {offsets = [0, 256], sizes = [2, 128], strides = [1, 1]} : vector<2x384xf32> to vector<2x128xf32>
    %51 = vector.extract_strided_slice %41 {offsets = [0, 384], sizes = [2, 128], strides = [1, 1]} : vector<2x512xf32> to vector<2x128xf32>
    %52 = math.tanh %51 : vector<2x128xf32>
    %53 = arith.mulf %49, %14 : vector<2x128xf32>
    %54 = arith.mulf %48, %52 : vector<2x128xf32>
    %55 = arith.addf %53, %54 : vector<2x128xf32>
    %56 = math.tanh %55 : vector<2x128xf32>
    %57 = arith.mulf %50, %56 : vector<2x128xf32>
    %58 = vector.extract_strided_slice %7 {offsets = [0, 1, 0], sizes = [2, 1, 512], strides = [1, 1, 1]} : vector<2x8x512xf32> to vector<2x1x512xf32>
    %59 = vector.shape_cast %58 : vector<2x1x512xf32> to vector<2x512xf32>
    %60 = arith.truncf %35 : vector<2x128xf32> to vector<2x128xbf16>
    %cst_20 = arith.constant dense<0.000000e+00> : vector<2x512xf32>
    %61 = tpu.matmul %60, %8, %cst_20 {dimension_numbers = #tpu.dot_dimension_numbers<[1], [0], [0], [1], [0, 0, 1, 1], [], []>} : vector<2x128xbf16>, vector<128x512xbf16>, vector<2x512xf32> -> vector<2x512xf32>
    %62 = arith.addf %59, %61 : vector<2x512xf32>
    %63 = vector.extract_strided_slice %62 {offsets = [0, 0], sizes = [2, 384], strides = [1, 1]} : vector<2x512xf32> to vector<2x384xf32>
    %64 = arith.negf %63 : vector<2x384xf32>
    %65 = math.exp %64 : vector<2x384xf32>
    %cst_21 = arith.constant 1.000000e+00 : f32
    %66 = vector.broadcast %cst_21 : f32 to vector<2x384xf32>
    %67 = arith.addf %66, %65 : vector<2x384xf32>
    %68 = arith.divf %66, %67 : vector<2x384xf32>
    %69 = vector.extract_strided_slice %68 {offsets = [0, 0], sizes = [2, 128], strides = [1, 1]} : vector<2x384xf32> to vector<2x128xf32>
    %70 = vector.extract_strided_slice %68 {offsets = [0, 128], sizes = [2, 128], strides = [1, 1]} : vector<2x384xf32> to vector<2x128xf32>
    %71 = vector.extract_strided_slice %68 {offsets = [0, 256], sizes = [2, 128], strides = [1, 1]} : vector<2x384xf32> to vector<2x128xf32>
    %72 = vector.extract_strided_slice %62 {offsets = [0, 384], sizes = [2, 128], strides = [1, 1]} : vector<2x512xf32> to vector<2x128xf32>
    %73 = math.tanh %72 : vector<2x128xf32>
    %74 = arith.mulf %70, %33 : vector<2x128xf32>
    %75 = arith.mulf %69, %73 : vector<2x128xf32>
    %76 = arith.addf %74, %75 : vector<2x128xf32>
    %77 = math.tanh %76 : vector<2x128xf32>
    %78 = arith.mulf %71, %77 : vector<2x128xf32>
    %79 = arith.truncf %78 : vector<2x128xf32> to vector<2x128xbf16>
    %80 = arith.truncf %57 : vector<2x128xf32> to vector<2x128xbf16>
    %81 = tpu.concatenate %79, %80 in 1 : vector<2x128xbf16>, vector<2x128xbf16> -> vector<2x256xbf16>
    %cst_22 = arith.constant dense<0.000000e+00> : vector<2x512xf32>
    %82 = tpu.matmul %81, %9, %cst_22 {dimension_numbers = #tpu.dot_dimension_numbers<[1], [0], [0], [1], [0, 0, 1, 1], [], []>} : vector<2x256xbf16>, vector<256x512xbf16>, vector<2x512xf32> -> vector<2x512xf32>
    %83 = vector.broadcast %10 : vector<1x512xf32> to vector<2x512xf32>
    %84 = arith.addf %82, %83 : vector<2x512xf32>
    %85 = vector.extract_strided_slice %84 {offsets = [0, 0], sizes = [2, 384], strides = [1, 1]} : vector<2x512xf32> to vector<2x384xf32>
    %86 = arith.negf %85 : vector<2x384xf32>
    %87 = math.exp %86 : vector<2x384xf32>
    %cst_23 = arith.constant 1.000000e+00 : f32
    %88 = vector.broadcast %cst_23 : f32 to vector<2x384xf32>
    %89 = arith.addf %88, %87 : vector<2x384xf32>
    %90 = arith.divf %88, %89 : vector<2x384xf32>
    %91 = vector.extract_strided_slice %90 {offsets = [0, 0], sizes = [2, 128], strides = [1, 1]} : vector<2x384xf32> to vector<2x128xf32>
    %92 = vector.extract_strided_slice %90 {offsets = [0, 128], sizes = [2, 128], strides = [1, 1]} : vector<2x384xf32> to vector<2x128xf32>
    %93 = vector.extract_strided_slice %90 {offsets = [0, 256], sizes = [2, 128], strides = [1, 1]} : vector<2x384xf32> to vector<2x128xf32>
    %94 = vector.extract_strided_slice %84 {offsets = [0, 384], sizes = [2, 128], strides = [1, 1]} : vector<2x512xf32> to vector<2x128xf32>
    %95 = math.tanh %94 : vector<2x128xf32>
    %96 = arith.mulf %92, %55 : vector<2x128xf32>
    %97 = arith.mulf %91, %95 : vector<2x128xf32>
    %98 = arith.addf %96, %97 : vector<2x128xf32>
    %99 = math.tanh %98 : vector<2x128xf32>
    %100 = arith.mulf %93, %99 : vector<2x128xf32>
    %101 = vector.extract_strided_slice %7 {offsets = [0, 2, 0], sizes = [2, 1, 512], strides = [1, 1, 1]} : vector<2x8x512xf32> to vector<2x1x512xf32>
    %102 = vector.shape_cast %101 : vector<2x1x512xf32> to vector<2x512xf32>
    %103 = arith.truncf %78 : vector<2x128xf32> to vector<2x128xbf16>
    %cst_24 = arith.constant dense<0.000000e+00> : vector<2x512xf32>
    %104 = tpu.matmul %103, %8, %cst_24 {dimension_numbers = #tpu.dot_dimension_numbers<[1], [0], [0], [1], [0, 0, 1, 1], [], []>} : vector<2x128xbf16>, vector<128x512xbf16>, vector<2x512xf32> -> vector<2x512xf32>
    %105 = arith.addf %102, %104 : vector<2x512xf32>
    %106 = vector.extract_strided_slice %105 {offsets = [0, 0], sizes = [2, 384], strides = [1, 1]} : vector<2x512xf32> to vector<2x384xf32>
    %107 = arith.negf %106 : vector<2x384xf32>
    %108 = math.exp %107 : vector<2x384xf32>
    %cst_25 = arith.constant 1.000000e+00 : f32
    %109 = vector.broadcast %cst_25 : f32 to vector<2x384xf32>
    %110 = arith.addf %109, %108 : vector<2x384xf32>
    %111 = arith.divf %109, %110 : vector<2x384xf32>
    %112 = vector.extract_strided_slice %111 {offsets = [0, 0], sizes = [2, 128], strides = [1, 1]} : vector<2x384xf32> to vector<2x128xf32>
    %113 = vector.extract_strided_slice %111 {offsets = [0, 128], sizes = [2, 128], strides = [1, 1]} : vector<2x384xf32> to vector<2x128xf32>
    %114 = vector.extract_strided_slice %111 {offsets = [0, 256], sizes = [2, 128], strides = [1, 1]} : vector<2x384xf32> to vector<2x128xf32>
    %115 = vector.extract_strided_slice %105 {offsets = [0, 384], sizes = [2, 128], strides = [1, 1]} : vector<2x512xf32> to vector<2x128xf32>
    %116 = math.tanh %115 : vector<2x128xf32>
    %117 = arith.mulf %113, %76 : vector<2x128xf32>
    %118 = arith.mulf %112, %116 : vector<2x128xf32>
    %119 = arith.addf %117, %118 : vector<2x128xf32>
    %120 = math.tanh %119 : vector<2x128xf32>
    %121 = arith.mulf %114, %120 : vector<2x128xf32>
    %122 = arith.truncf %121 : vector<2x128xf32> to vector<2x128xbf16>
    %123 = arith.truncf %100 : vector<2x128xf32> to vector<2x128xbf16>
    %124 = tpu.concatenate %122, %123 in 1 : vector<2x128xbf16>, vector<2x128xbf16> -> vector<2x256xbf16>
    %cst_26 = arith.constant dense<0.000000e+00> : vector<2x512xf32>
    %125 = tpu.matmul %124, %9, %cst_26 {dimension_numbers = #tpu.dot_dimension_numbers<[1], [0], [0], [1], [0, 0, 1, 1], [], []>} : vector<2x256xbf16>, vector<256x512xbf16>, vector<2x512xf32> -> vector<2x512xf32>
    %126 = vector.broadcast %10 : vector<1x512xf32> to vector<2x512xf32>
    %127 = arith.addf %125, %126 : vector<2x512xf32>
    %128 = vector.extract_strided_slice %127 {offsets = [0, 0], sizes = [2, 384], strides = [1, 1]} : vector<2x512xf32> to vector<2x384xf32>
    %129 = arith.negf %128 : vector<2x384xf32>
    %130 = math.exp %129 : vector<2x384xf32>
    %cst_27 = arith.constant 1.000000e+00 : f32
    %131 = vector.broadcast %cst_27 : f32 to vector<2x384xf32>
    %132 = arith.addf %131, %130 : vector<2x384xf32>
    %133 = arith.divf %131, %132 : vector<2x384xf32>
    %134 = vector.extract_strided_slice %133 {offsets = [0, 0], sizes = [2, 128], strides = [1, 1]} : vector<2x384xf32> to vector<2x128xf32>
    %135 = vector.extract_strided_slice %133 {offsets = [0, 128], sizes = [2, 128], strides = [1, 1]} : vector<2x384xf32> to vector<2x128xf32>
    %136 = vector.extract_strided_slice %133 {offsets = [0, 256], sizes = [2, 128], strides = [1, 1]} : vector<2x384xf32> to vector<2x128xf32>
    %137 = vector.extract_strided_slice %127 {offsets = [0, 384], sizes = [2, 128], strides = [1, 1]} : vector<2x512xf32> to vector<2x128xf32>
    %138 = math.tanh %137 : vector<2x128xf32>
    %139 = arith.mulf %135, %98 : vector<2x128xf32>
    %140 = arith.mulf %134, %138 : vector<2x128xf32>
    %141 = arith.addf %139, %140 : vector<2x128xf32>
    %142 = math.tanh %141 : vector<2x128xf32>
    %143 = arith.mulf %136, %142 : vector<2x128xf32>
    %144 = vector.extract_strided_slice %7 {offsets = [0, 3, 0], sizes = [2, 1, 512], strides = [1, 1, 1]} : vector<2x8x512xf32> to vector<2x1x512xf32>
    %145 = vector.shape_cast %144 : vector<2x1x512xf32> to vector<2x512xf32>
    %146 = arith.truncf %121 : vector<2x128xf32> to vector<2x128xbf16>
    %cst_28 = arith.constant dense<0.000000e+00> : vector<2x512xf32>
    %147 = tpu.matmul %146, %8, %cst_28 {dimension_numbers = #tpu.dot_dimension_numbers<[1], [0], [0], [1], [0, 0, 1, 1], [], []>} : vector<2x128xbf16>, vector<128x512xbf16>, vector<2x512xf32> -> vector<2x512xf32>
    %148 = arith.addf %145, %147 : vector<2x512xf32>
    %149 = vector.extract_strided_slice %148 {offsets = [0, 0], sizes = [2, 384], strides = [1, 1]} : vector<2x512xf32> to vector<2x384xf32>
    %150 = arith.negf %149 : vector<2x384xf32>
    %151 = math.exp %150 : vector<2x384xf32>
    %cst_29 = arith.constant 1.000000e+00 : f32
    %152 = vector.broadcast %cst_29 : f32 to vector<2x384xf32>
    %153 = arith.addf %152, %151 : vector<2x384xf32>
    %154 = arith.divf %152, %153 : vector<2x384xf32>
    %155 = vector.extract_strided_slice %154 {offsets = [0, 0], sizes = [2, 128], strides = [1, 1]} : vector<2x384xf32> to vector<2x128xf32>
    %156 = vector.extract_strided_slice %154 {offsets = [0, 128], sizes = [2, 128], strides = [1, 1]} : vector<2x384xf32> to vector<2x128xf32>
    %157 = vector.extract_strided_slice %154 {offsets = [0, 256], sizes = [2, 128], strides = [1, 1]} : vector<2x384xf32> to vector<2x128xf32>
    %158 = vector.extract_strided_slice %148 {offsets = [0, 384], sizes = [2, 128], strides = [1, 1]} : vector<2x512xf32> to vector<2x128xf32>
    %159 = math.tanh %158 : vector<2x128xf32>
    %160 = arith.mulf %156, %119 : vector<2x128xf32>
    %161 = arith.mulf %155, %159 : vector<2x128xf32>
    %162 = arith.addf %160, %161 : vector<2x128xf32>
    %163 = math.tanh %162 : vector<2x128xf32>
    %164 = arith.mulf %157, %163 : vector<2x128xf32>
    %165 = arith.truncf %164 : vector<2x128xf32> to vector<2x128xbf16>
    %166 = arith.truncf %143 : vector<2x128xf32> to vector<2x128xbf16>
    %167 = tpu.concatenate %165, %166 in 1 : vector<2x128xbf16>, vector<2x128xbf16> -> vector<2x256xbf16>
    %cst_30 = arith.constant dense<0.000000e+00> : vector<2x512xf32>
    %168 = tpu.matmul %167, %9, %cst_30 {dimension_numbers = #tpu.dot_dimension_numbers<[1], [0], [0], [1], [0, 0, 1, 1], [], []>} : vector<2x256xbf16>, vector<256x512xbf16>, vector<2x512xf32> -> vector<2x512xf32>
    %169 = vector.broadcast %10 : vector<1x512xf32> to vector<2x512xf32>
    %170 = arith.addf %168, %169 : vector<2x512xf32>
    %171 = vector.extract_strided_slice %170 {offsets = [0, 0], sizes = [2, 384], strides = [1, 1]} : vector<2x512xf32> to vector<2x384xf32>
    %172 = arith.negf %171 : vector<2x384xf32>
    %173 = math.exp %172 : vector<2x384xf32>
    %cst_31 = arith.constant 1.000000e+00 : f32
    %174 = vector.broadcast %cst_31 : f32 to vector<2x384xf32>
    %175 = arith.addf %174, %173 : vector<2x384xf32>
    %176 = arith.divf %174, %175 : vector<2x384xf32>
    %177 = vector.extract_strided_slice %176 {offsets = [0, 0], sizes = [2, 128], strides = [1, 1]} : vector<2x384xf32> to vector<2x128xf32>
    %178 = vector.extract_strided_slice %176 {offsets = [0, 128], sizes = [2, 128], strides = [1, 1]} : vector<2x384xf32> to vector<2x128xf32>
    %179 = vector.extract_strided_slice %176 {offsets = [0, 256], sizes = [2, 128], strides = [1, 1]} : vector<2x384xf32> to vector<2x128xf32>
    %180 = vector.extract_strided_slice %170 {offsets = [0, 384], sizes = [2, 128], strides = [1, 1]} : vector<2x512xf32> to vector<2x128xf32>
    %181 = math.tanh %180 : vector<2x128xf32>
    %182 = arith.mulf %178, %141 : vector<2x128xf32>
    %183 = arith.mulf %177, %181 : vector<2x128xf32>
    %184 = arith.addf %182, %183 : vector<2x128xf32>
    %185 = math.tanh %184 : vector<2x128xf32>
    %186 = arith.mulf %179, %185 : vector<2x128xf32>
    %187 = vector.extract_strided_slice %7 {offsets = [0, 4, 0], sizes = [2, 1, 512], strides = [1, 1, 1]} : vector<2x8x512xf32> to vector<2x1x512xf32>
    %188 = vector.shape_cast %187 : vector<2x1x512xf32> to vector<2x512xf32>
    %189 = arith.truncf %164 : vector<2x128xf32> to vector<2x128xbf16>
    %cst_32 = arith.constant dense<0.000000e+00> : vector<2x512xf32>
    %190 = tpu.matmul %189, %8, %cst_32 {dimension_numbers = #tpu.dot_dimension_numbers<[1], [0], [0], [1], [0, 0, 1, 1], [], []>} : vector<2x128xbf16>, vector<128x512xbf16>, vector<2x512xf32> -> vector<2x512xf32>
    %191 = arith.addf %188, %190 : vector<2x512xf32>
    %192 = vector.extract_strided_slice %191 {offsets = [0, 0], sizes = [2, 384], strides = [1, 1]} : vector<2x512xf32> to vector<2x384xf32>
    %193 = arith.negf %192 : vector<2x384xf32>
    %194 = math.exp %193 : vector<2x384xf32>
    %cst_33 = arith.constant 1.000000e+00 : f32
    %195 = vector.broadcast %cst_33 : f32 to vector<2x384xf32>
    %196 = arith.addf %195, %194 : vector<2x384xf32>
    %197 = arith.divf %195, %196 : vector<2x384xf32>
    %198 = vector.extract_strided_slice %197 {offsets = [0, 0], sizes = [2, 128], strides = [1, 1]} : vector<2x384xf32> to vector<2x128xf32>
    %199 = vector.extract_strided_slice %197 {offsets = [0, 128], sizes = [2, 128], strides = [1, 1]} : vector<2x384xf32> to vector<2x128xf32>
    %200 = vector.extract_strided_slice %197 {offsets = [0, 256], sizes = [2, 128], strides = [1, 1]} : vector<2x384xf32> to vector<2x128xf32>
    %201 = vector.extract_strided_slice %191 {offsets = [0, 384], sizes = [2, 128], strides = [1, 1]} : vector<2x512xf32> to vector<2x128xf32>
    %202 = math.tanh %201 : vector<2x128xf32>
    %203 = arith.mulf %199, %162 : vector<2x128xf32>
    %204 = arith.mulf %198, %202 : vector<2x128xf32>
    %205 = arith.addf %203, %204 : vector<2x128xf32>
    %206 = math.tanh %205 : vector<2x128xf32>
    %207 = arith.mulf %200, %206 : vector<2x128xf32>
    %208 = arith.truncf %207 : vector<2x128xf32> to vector<2x128xbf16>
    %209 = arith.truncf %186 : vector<2x128xf32> to vector<2x128xbf16>
    %210 = tpu.concatenate %208, %209 in 1 : vector<2x128xbf16>, vector<2x128xbf16> -> vector<2x256xbf16>
    %cst_34 = arith.constant dense<0.000000e+00> : vector<2x512xf32>
    %211 = tpu.matmul %210, %9, %cst_34 {dimension_numbers = #tpu.dot_dimension_numbers<[1], [0], [0], [1], [0, 0, 1, 1], [], []>} : vector<2x256xbf16>, vector<256x512xbf16>, vector<2x512xf32> -> vector<2x512xf32>
    %212 = vector.broadcast %10 : vector<1x512xf32> to vector<2x512xf32>
    %213 = arith.addf %211, %212 : vector<2x512xf32>
    %214 = vector.extract_strided_slice %213 {offsets = [0, 0], sizes = [2, 384], strides = [1, 1]} : vector<2x512xf32> to vector<2x384xf32>
    %215 = arith.negf %214 : vector<2x384xf32>
    %216 = math.exp %215 : vector<2x384xf32>
    %cst_35 = arith.constant 1.000000e+00 : f32
    %217 = vector.broadcast %cst_35 : f32 to vector<2x384xf32>
    %218 = arith.addf %217, %216 : vector<2x384xf32>
    %219 = arith.divf %217, %218 : vector<2x384xf32>
    %220 = vector.extract_strided_slice %219 {offsets = [0, 0], sizes = [2, 128], strides = [1, 1]} : vector<2x384xf32> to vector<2x128xf32>
    %221 = vector.extract_strided_slice %219 {offsets = [0, 128], sizes = [2, 128], strides = [1, 1]} : vector<2x384xf32> to vector<2x128xf32>
    %222 = vector.extract_strided_slice %219 {offsets = [0, 256], sizes = [2, 128], strides = [1, 1]} : vector<2x384xf32> to vector<2x128xf32>
    %223 = vector.extract_strided_slice %213 {offsets = [0, 384], sizes = [2, 128], strides = [1, 1]} : vector<2x512xf32> to vector<2x128xf32>
    %224 = math.tanh %223 : vector<2x128xf32>
    %225 = arith.mulf %221, %184 : vector<2x128xf32>
    %226 = arith.mulf %220, %224 : vector<2x128xf32>
    %227 = arith.addf %225, %226 : vector<2x128xf32>
    %228 = math.tanh %227 : vector<2x128xf32>
    %229 = arith.mulf %222, %228 : vector<2x128xf32>
    %230 = vector.extract_strided_slice %7 {offsets = [0, 5, 0], sizes = [2, 1, 512], strides = [1, 1, 1]} : vector<2x8x512xf32> to vector<2x1x512xf32>
    %231 = vector.shape_cast %230 : vector<2x1x512xf32> to vector<2x512xf32>
    %232 = arith.truncf %207 : vector<2x128xf32> to vector<2x128xbf16>
    %cst_36 = arith.constant dense<0.000000e+00> : vector<2x512xf32>
    %233 = tpu.matmul %232, %8, %cst_36 {dimension_numbers = #tpu.dot_dimension_numbers<[1], [0], [0], [1], [0, 0, 1, 1], [], []>} : vector<2x128xbf16>, vector<128x512xbf16>, vector<2x512xf32> -> vector<2x512xf32>
    %234 = arith.addf %231, %233 : vector<2x512xf32>
    %235 = vector.extract_strided_slice %234 {offsets = [0, 0], sizes = [2, 384], strides = [1, 1]} : vector<2x512xf32> to vector<2x384xf32>
    %236 = arith.negf %235 : vector<2x384xf32>
    %237 = math.exp %236 : vector<2x384xf32>
    %cst_37 = arith.constant 1.000000e+00 : f32
    %238 = vector.broadcast %cst_37 : f32 to vector<2x384xf32>
    %239 = arith.addf %238, %237 : vector<2x384xf32>
    %240 = arith.divf %238, %239 : vector<2x384xf32>
    %241 = vector.extract_strided_slice %240 {offsets = [0, 0], sizes = [2, 128], strides = [1, 1]} : vector<2x384xf32> to vector<2x128xf32>
    %242 = vector.extract_strided_slice %240 {offsets = [0, 128], sizes = [2, 128], strides = [1, 1]} : vector<2x384xf32> to vector<2x128xf32>
    %243 = vector.extract_strided_slice %240 {offsets = [0, 256], sizes = [2, 128], strides = [1, 1]} : vector<2x384xf32> to vector<2x128xf32>
    %244 = vector.extract_strided_slice %234 {offsets = [0, 384], sizes = [2, 128], strides = [1, 1]} : vector<2x512xf32> to vector<2x128xf32>
    %245 = math.tanh %244 : vector<2x128xf32>
    %246 = arith.mulf %242, %205 : vector<2x128xf32>
    %247 = arith.mulf %241, %245 : vector<2x128xf32>
    %248 = arith.addf %246, %247 : vector<2x128xf32>
    %249 = math.tanh %248 : vector<2x128xf32>
    %250 = arith.mulf %243, %249 : vector<2x128xf32>
    %251 = arith.truncf %250 : vector<2x128xf32> to vector<2x128xbf16>
    %252 = arith.truncf %229 : vector<2x128xf32> to vector<2x128xbf16>
    %253 = tpu.concatenate %251, %252 in 1 : vector<2x128xbf16>, vector<2x128xbf16> -> vector<2x256xbf16>
    %cst_38 = arith.constant dense<0.000000e+00> : vector<2x512xf32>
    %254 = tpu.matmul %253, %9, %cst_38 {dimension_numbers = #tpu.dot_dimension_numbers<[1], [0], [0], [1], [0, 0, 1, 1], [], []>} : vector<2x256xbf16>, vector<256x512xbf16>, vector<2x512xf32> -> vector<2x512xf32>
    %255 = vector.broadcast %10 : vector<1x512xf32> to vector<2x512xf32>
    %256 = arith.addf %254, %255 : vector<2x512xf32>
    %257 = vector.extract_strided_slice %256 {offsets = [0, 0], sizes = [2, 384], strides = [1, 1]} : vector<2x512xf32> to vector<2x384xf32>
    %258 = arith.negf %257 : vector<2x384xf32>
    %259 = math.exp %258 : vector<2x384xf32>
    %cst_39 = arith.constant 1.000000e+00 : f32
    %260 = vector.broadcast %cst_39 : f32 to vector<2x384xf32>
    %261 = arith.addf %260, %259 : vector<2x384xf32>
    %262 = arith.divf %260, %261 : vector<2x384xf32>
    %263 = vector.extract_strided_slice %262 {offsets = [0, 0], sizes = [2, 128], strides = [1, 1]} : vector<2x384xf32> to vector<2x128xf32>
    %264 = vector.extract_strided_slice %262 {offsets = [0, 128], sizes = [2, 128], strides = [1, 1]} : vector<2x384xf32> to vector<2x128xf32>
    %265 = vector.extract_strided_slice %262 {offsets = [0, 256], sizes = [2, 128], strides = [1, 1]} : vector<2x384xf32> to vector<2x128xf32>
    %266 = vector.extract_strided_slice %256 {offsets = [0, 384], sizes = [2, 128], strides = [1, 1]} : vector<2x512xf32> to vector<2x128xf32>
    %267 = math.tanh %266 : vector<2x128xf32>
    %268 = arith.mulf %264, %227 : vector<2x128xf32>
    %269 = arith.mulf %263, %267 : vector<2x128xf32>
    %270 = arith.addf %268, %269 : vector<2x128xf32>
    %271 = math.tanh %270 : vector<2x128xf32>
    %272 = arith.mulf %265, %271 : vector<2x128xf32>
    %273 = vector.extract_strided_slice %7 {offsets = [0, 6, 0], sizes = [2, 1, 512], strides = [1, 1, 1]} : vector<2x8x512xf32> to vector<2x1x512xf32>
    %274 = vector.shape_cast %273 : vector<2x1x512xf32> to vector<2x512xf32>
    %275 = arith.truncf %250 : vector<2x128xf32> to vector<2x128xbf16>
    %cst_40 = arith.constant dense<0.000000e+00> : vector<2x512xf32>
    %276 = tpu.matmul %275, %8, %cst_40 {dimension_numbers = #tpu.dot_dimension_numbers<[1], [0], [0], [1], [0, 0, 1, 1], [], []>} : vector<2x128xbf16>, vector<128x512xbf16>, vector<2x512xf32> -> vector<2x512xf32>
    %277 = arith.addf %274, %276 : vector<2x512xf32>
    %278 = vector.extract_strided_slice %277 {offsets = [0, 0], sizes = [2, 384], strides = [1, 1]} : vector<2x512xf32> to vector<2x384xf32>
    %279 = arith.negf %278 : vector<2x384xf32>
    %280 = math.exp %279 : vector<2x384xf32>
    %cst_41 = arith.constant 1.000000e+00 : f32
    %281 = vector.broadcast %cst_41 : f32 to vector<2x384xf32>
    %282 = arith.addf %281, %280 : vector<2x384xf32>
    %283 = arith.divf %281, %282 : vector<2x384xf32>
    %284 = vector.extract_strided_slice %283 {offsets = [0, 0], sizes = [2, 128], strides = [1, 1]} : vector<2x384xf32> to vector<2x128xf32>
    %285 = vector.extract_strided_slice %283 {offsets = [0, 128], sizes = [2, 128], strides = [1, 1]} : vector<2x384xf32> to vector<2x128xf32>
    %286 = vector.extract_strided_slice %283 {offsets = [0, 256], sizes = [2, 128], strides = [1, 1]} : vector<2x384xf32> to vector<2x128xf32>
    %287 = vector.extract_strided_slice %277 {offsets = [0, 384], sizes = [2, 128], strides = [1, 1]} : vector<2x512xf32> to vector<2x128xf32>
    %288 = math.tanh %287 : vector<2x128xf32>
    %289 = arith.mulf %285, %248 : vector<2x128xf32>
    %290 = arith.mulf %284, %288 : vector<2x128xf32>
    %291 = arith.addf %289, %290 : vector<2x128xf32>
    %292 = math.tanh %291 : vector<2x128xf32>
    %293 = arith.mulf %286, %292 : vector<2x128xf32>
    %294 = arith.truncf %293 : vector<2x128xf32> to vector<2x128xbf16>
    %295 = arith.truncf %272 : vector<2x128xf32> to vector<2x128xbf16>
    %296 = tpu.concatenate %294, %295 in 1 : vector<2x128xbf16>, vector<2x128xbf16> -> vector<2x256xbf16>
    %cst_42 = arith.constant dense<0.000000e+00> : vector<2x512xf32>
    %297 = tpu.matmul %296, %9, %cst_42 {dimension_numbers = #tpu.dot_dimension_numbers<[1], [0], [0], [1], [0, 0, 1, 1], [], []>} : vector<2x256xbf16>, vector<256x512xbf16>, vector<2x512xf32> -> vector<2x512xf32>
    %298 = vector.broadcast %10 : vector<1x512xf32> to vector<2x512xf32>
    %299 = arith.addf %297, %298 : vector<2x512xf32>
    %300 = vector.extract_strided_slice %299 {offsets = [0, 0], sizes = [2, 384], strides = [1, 1]} : vector<2x512xf32> to vector<2x384xf32>
    %301 = arith.negf %300 : vector<2x384xf32>
    %302 = math.exp %301 : vector<2x384xf32>
    %cst_43 = arith.constant 1.000000e+00 : f32
    %303 = vector.broadcast %cst_43 : f32 to vector<2x384xf32>
    %304 = arith.addf %303, %302 : vector<2x384xf32>
    %305 = arith.divf %303, %304 : vector<2x384xf32>
    %306 = vector.extract_strided_slice %305 {offsets = [0, 0], sizes = [2, 128], strides = [1, 1]} : vector<2x384xf32> to vector<2x128xf32>
    %307 = vector.extract_strided_slice %305 {offsets = [0, 128], sizes = [2, 128], strides = [1, 1]} : vector<2x384xf32> to vector<2x128xf32>
    %308 = vector.extract_strided_slice %305 {offsets = [0, 256], sizes = [2, 128], strides = [1, 1]} : vector<2x384xf32> to vector<2x128xf32>
    %309 = vector.extract_strided_slice %299 {offsets = [0, 384], sizes = [2, 128], strides = [1, 1]} : vector<2x512xf32> to vector<2x128xf32>
    %310 = math.tanh %309 : vector<2x128xf32>
    %311 = arith.mulf %307, %270 : vector<2x128xf32>
    %312 = arith.mulf %306, %310 : vector<2x128xf32>
    %313 = arith.addf %311, %312 : vector<2x128xf32>
    %314 = math.tanh %313 : vector<2x128xf32>
    %315 = arith.mulf %308, %314 : vector<2x128xf32>
    %316 = vector.extract_strided_slice %7 {offsets = [0, 7, 0], sizes = [2, 1, 512], strides = [1, 1, 1]} : vector<2x8x512xf32> to vector<2x1x512xf32>
    %317 = vector.shape_cast %316 : vector<2x1x512xf32> to vector<2x512xf32>
    %318 = arith.truncf %293 : vector<2x128xf32> to vector<2x128xbf16>
    %cst_44 = arith.constant dense<0.000000e+00> : vector<2x512xf32>
    %319 = tpu.matmul %318, %8, %cst_44 {dimension_numbers = #tpu.dot_dimension_numbers<[1], [0], [0], [1], [0, 0, 1, 1], [], []>} : vector<2x128xbf16>, vector<128x512xbf16>, vector<2x512xf32> -> vector<2x512xf32>
    %320 = arith.addf %317, %319 : vector<2x512xf32>
    %321 = vector.extract_strided_slice %320 {offsets = [0, 0], sizes = [2, 384], strides = [1, 1]} : vector<2x512xf32> to vector<2x384xf32>
    %322 = arith.negf %321 : vector<2x384xf32>
    %323 = math.exp %322 : vector<2x384xf32>
    %cst_45 = arith.constant 1.000000e+00 : f32
    %324 = vector.broadcast %cst_45 : f32 to vector<2x384xf32>
    %325 = arith.addf %324, %323 : vector<2x384xf32>
    %326 = arith.divf %324, %325 : vector<2x384xf32>
    %327 = vector.extract_strided_slice %326 {offsets = [0, 0], sizes = [2, 128], strides = [1, 1]} : vector<2x384xf32> to vector<2x128xf32>
    %328 = vector.extract_strided_slice %326 {offsets = [0, 128], sizes = [2, 128], strides = [1, 1]} : vector<2x384xf32> to vector<2x128xf32>
    %329 = vector.extract_strided_slice %326 {offsets = [0, 256], sizes = [2, 128], strides = [1, 1]} : vector<2x384xf32> to vector<2x128xf32>
    %330 = vector.extract_strided_slice %320 {offsets = [0, 384], sizes = [2, 128], strides = [1, 1]} : vector<2x512xf32> to vector<2x128xf32>
    %331 = math.tanh %330 : vector<2x128xf32>
    %332 = arith.mulf %328, %291 : vector<2x128xf32>
    %333 = arith.mulf %327, %331 : vector<2x128xf32>
    %334 = arith.addf %332, %333 : vector<2x128xf32>
    %335 = math.tanh %334 : vector<2x128xf32>
    %336 = arith.mulf %329, %335 : vector<2x128xf32>
    %337 = arith.truncf %336 : vector<2x128xf32> to vector<2x128xbf16>
    %338 = arith.truncf %315 : vector<2x128xf32> to vector<2x128xbf16>
    %339 = tpu.concatenate %337, %338 in 1 : vector<2x128xbf16>, vector<2x128xbf16> -> vector<2x256xbf16>
    %cst_46 = arith.constant dense<0.000000e+00> : vector<2x512xf32>
    %340 = tpu.matmul %339, %9, %cst_46 {dimension_numbers = #tpu.dot_dimension_numbers<[1], [0], [0], [1], [0, 0, 1, 1], [], []>} : vector<2x256xbf16>, vector<256x512xbf16>, vector<2x512xf32> -> vector<2x512xf32>
    %341 = vector.broadcast %10 : vector<1x512xf32> to vector<2x512xf32>
    %342 = arith.addf %340, %341 : vector<2x512xf32>
    %343 = vector.extract_strided_slice %342 {offsets = [0, 0], sizes = [2, 384], strides = [1, 1]} : vector<2x512xf32> to vector<2x384xf32>
    %344 = arith.negf %343 : vector<2x384xf32>
    %345 = math.exp %344 : vector<2x384xf32>
    %cst_47 = arith.constant 1.000000e+00 : f32
    %346 = vector.broadcast %cst_47 : f32 to vector<2x384xf32>
    %347 = arith.addf %346, %345 : vector<2x384xf32>
    %348 = arith.divf %346, %347 : vector<2x384xf32>
    %349 = vector.extract_strided_slice %348 {offsets = [0, 0], sizes = [2, 128], strides = [1, 1]} : vector<2x384xf32> to vector<2x128xf32>
    %350 = vector.extract_strided_slice %348 {offsets = [0, 128], sizes = [2, 128], strides = [1, 1]} : vector<2x384xf32> to vector<2x128xf32>
    %351 = vector.extract_strided_slice %348 {offsets = [0, 256], sizes = [2, 128], strides = [1, 1]} : vector<2x384xf32> to vector<2x128xf32>
    %352 = vector.extract_strided_slice %342 {offsets = [0, 384], sizes = [2, 128], strides = [1, 1]} : vector<2x512xf32> to vector<2x128xf32>
    %353 = math.tanh %352 : vector<2x128xf32>
    %354 = arith.mulf %350, %313 : vector<2x128xf32>
    %355 = arith.mulf %349, %353 : vector<2x128xf32>
    %356 = arith.addf %354, %355 : vector<2x128xf32>
    %357 = math.tanh %356 : vector<2x128xf32>
    %358 = arith.mulf %351, %357 : vector<2x128xf32>
    %359 = arith.truncf %358 : vector<2x128xf32> to vector<2x128xbf16>
    %c0_48 = arith.constant 0 : index
    %c0_49 = arith.constant 0 : index
    %360 = vector.load %arg6[%c0_48, %c0_49] : memref<128x4xbf16, #tpu.memory_space<vmem>>, vector<128x4xbf16>
    %cst_50 = arith.constant dense<0.000000e+00> : vector<2x4xf32>
    %361 = tpu.matmul %359, %360, %cst_50 {dimension_numbers = #tpu.dot_dimension_numbers<[1], [0], [0], [1], [0, 0, 1, 1], [], []>} : vector<2x128xbf16>, vector<128x4xbf16>, vector<2x4xf32> -> vector<2x4xf32>
    %c0_51 = arith.constant 0 : index
    %c0_52 = arith.constant 0 : index
    %362 = vector.load %arg7[%c0_51, %c0_52] : memref<1x4xf32, #tpu.memory_space<vmem>>, vector<1x4xf32>
    %363 = vector.broadcast %362 : vector<1x4xf32> to vector<2x4xf32>
    %364 = arith.addf %361, %363 : vector<2x4xf32>
    %c0_53 = arith.constant 0 : index
    %c0_54 = arith.constant 0 : index
    %365 = vector.load %arg8[%c0_53, %c0_54] : memref<2x4xf32, #tpu.memory_space<vmem>>, vector<2x4xf32>
    tpu.vector_store %arg8[%c0_53, %c0_54], %364 {strides = array<i32>} : memref<2x4xf32, #tpu.memory_space<vmem>>, vector<2x4xf32>,
    return
  }
}

</mosaic_0001>

<bundles_post_ra>
// kernel: lstm_regression_forward.1
= control target key start
LH: loop header
LB: loop body
LE: loop exit
PB: predicated region body
PF: predicated region fallthrough
CT: control target
= control target key end

     0   :  { %v35_v0 = vlaneseq  ;;  %v4222_v2 = vmov 1983009808   ;;  %v6800_v4 = vmov 0   ;;  %vm82_vm0 = vcmask 1041408   ;;  %s6791_s2 = inlined_call_operand.vmem [shape: bf16[128,512], index: 2, kind: input, shape index: {}]   ;;  %s6792_s1 = inlined_call_operand.vmem [shape: bf16[4,512], index: 1, kind: input, shape index: {}]   ;;  %s6793_s0 = inlined_call_operand.vmem [shape: bf16[2,8,4], index: 0, kind: input, shape index: {}]   ;;  %s6794_s4 = inlined_call_operand.vmem [shape: bf16[256,512], index: 4, kind: input, shape index: {}]   ;;  %s6795_s3 = inlined_call_operand.vmem [shape: f32[1,512], index: 3, kind: input, shape index: {}]   ;;  %s6796_s5 = inlined_call_operand.vmem [shape: f32[1,512], index: 5, kind: input, shape index: {}]   ;;  %s6797_s6 = inlined_call_operand.vmem [shape: bf16[128,4], index: 6, kind: input, shape index: {}]   ;;  %s6798_s7 = inlined_call_operand.vmem [shape: f32[1,4], index: 7, kind: input, shape index: {}]   ;;  %s6799_s8 = inlined_call_operand.vmem [shape: f32[2,4], index: 8, kind: output, shape index: {}]  }
   0x1   :  { %v4274_v1 = vld [vmem:[%s6791_s2 + $0xe4] ss:$16 sps:$4 sm:$0xff]   ;;  %v63_v3 = vunpack.c.l.s4 %v4222_v2  ;;  %127 = vmatprep.mubr.bf16.mxu1 %v6800_v4  ;;  %470 = vmatprep.mubr.bf16.mxu0 %v6800_v4  ;;  %v4281_v5 = vld [vmem:[%s6791_s2 + $0xe0] ss:$16 sps:$4 sm:$0xff]   ;;  %vm78_vm1 = vcmask 31744   ;;  %vm599_vm2 = vcmask 1041409  }
   0x2   :  { %v4283_v6 = vshrl.u32 %v35_v0, 7  ;;  %438 = vmatprep.subr.bf16.mxu0 %v4274_v1  ;;  %v4289_v7 = vld [vmem:[%s6791_s2 + $0xc4] ss:$16 sps:$4 sm:$0xff]   ;;  %v4298_v10 = vld [vmem:[%s6791_s2 + $0xc0] ss:$16 sps:$4 sm:$0xff]   ;;  %vm1218_vm3 = vcmask 1042434  }
   0x3   :  { %v32_v8 = vld [vmem:[%s6792_s1] sm:$0xff]  ;;  %v64_v9 = vunpack.c.0.s8 %v63_v3  ;;  %439 = vmatpush1.bf16.msra.mxu0 %v4281_v5  ;;  %v4341_v25 = vld [vmem:[%s6791_s2 + $0xec] ss:$16 sps:$4 sm:$0xff]   ;;  %v4361_v28 = vld [vmem:[%s6791_s2 + $0xe8] ss:$16 sps:$4 sm:$0xff]   ;;  %vm1526_vm4 = vcmask 1043459  }
   0x4   :  { %v61_v11 = vcombine.high %v32_v8, %v32_v8  ;;  %440 = vmatprep.subr.bf16.mxu0 %v4289_v7  ;;  %v4305_v13 = vld [vmem:[%s6791_s2 + $0xa4] ss:$16 sps:$4 sm:$0xff]   ;;  %v4311_v16 = vld [vmem:[%s6791_s2 + $0xa0] ss:$16 sps:$4 sm:$0xff]   ;;  %7191 = vst [vmem:[#allocation2_spill] sm:$0xff] %v4341_v25  ;;  %vm1818_vm5 = vcmask 1044484  }
   0x5   :  { %v67_v12 = vsub.s32 %v64_v9, %v4283_v6  ;;  %v4318_v20 = vld [vmem:[%s6791_s2 + $0x84] ss:$16 sps:$4 sm:$0xff]   ;;  %v4328_v22 = vld [vmem:[%s6791_s2 + $0x80] ss:$16 sps:$4 sm:$0xff]   ;;  %v4372_v30 = vld [vmem:[%s6791_s2 + $0xcc] ss:$16 sps:$4 sm:$0xff]  }
   0x6   :  { %v3502_v21 = vld [vmem:[%s6793_s0] sm:$0xff]   ;;  %v4386_v32 = vld [vmem:[%s6791_s2 + $0xc8] ss:$16 sps:$4 sm:$0xff]   ;;  %v4398_v34 = vld [vmem:[%s6791_s2 + $0xac] ss:$16 sps:$4 sm:$0xff]   ;;  %vm2130_vm6 = vcmask 1045509  }
   0x7   :  { %v68_v14 = vrot.slane %v32_v8, %v67_v12  ;;  %v75_v15 = vrot.slane %v61_v11, %v67_v12  ;;  %441 = vmatpush1.bf16.msra.mxu0 %v4298_v10  ;;  %v4336_v24 = vld [vmem:[%s6791_s2 + $0x64] ss:$16 sps:$4 sm:$0xff]   ;;  %v4348_v26 = vld [vmem:[%s6791_s2 + $0x60] ss:$16 sps:$4 sm:$0xff]   ;;  %v4411_v36 = vld [vmem:[%s6791_s2 + $0xa8] ss:$16 sps:$4 sm:$0xff]  }
   0x8   :  { %442 = vmatprep.subr.bf16.mxu0 %v4305_v13  ;;  %v4355_v27 = vld [vmem:[%s6791_s2 + $0x44] ss:$16 sps:$4 sm:$0xff]   ;;  %v4367_v29 = vld [vmem:[%s6791_s2 + $0x40] ss:$16 sps:$4 sm:$0xff]   ;;  %v4423_v38 = vld [vmem:[%s6791_s2 + $0x8c] ss:$16 sps:$4 sm:$0xff]  }
   0x9   :  { %v76_v17 = vcombine.high %v68_v14, %v68_v14  ;;  %v84_v18 = vsel %vm82_vm0, %v68_v14, 0  ;;  %v77_v19 = vcombine.high %v75_v15, %v75_v15  ;;  %v90_v23 = vsel %vm82_vm0, %v75_v15, 0  ;;  %v4378_v31 = vld [vmem:[%s6791_s2 + $0x24] ss:$16 sps:$4 sm:$0xff]   ;;  %v4391_v33 = vld [vmem:[%s6791_s2 + $0x20] ss:$16 sps:$4 sm:$0xff]  }
   0xa   :  { %v4403_v35 = vld [vmem:[%s6791_s2 + $0x4] ss:$16 sps:$4 sm:$0xff]   ;;  %v4416_v37 = vld [vmem:[%s6791_s2] ss:$16 sps:$4 sm:$0xff]   ;;  %v4430_v39 = vld [vmem:[%s6791_s2 + $0x88] ss:$16 sps:$4 sm:$0xff]  }
   0xb   :  { %3278 = vmatprep.subr.msk.bf16.mxu1 %vm82_vm0, %v76_v17  ;;  %443 = vmatpush1.bf16.msra.mxu0 %v4311_v16  ;;  %v4436_v40 = vld [vmem:[%s6791_s2 + $0x6c] ss:$16 sps:$4 sm:$0xff]   ;;  %v4443_v41 = vld [vmem:[%s6791_s2 + $0x68] ss:$16 sps:$4 sm:$0xff]   ;;  %v4489_v48 = vld [vmem:[%s6794_s4 + $0xe4] ss:$16 sps:$4 sm:$0xff]  }
   0xc   :  { %110 = vmatpush1.bf16.msra.mxu1 %v84_v18  ;;  %444 = vmatprep.subr.bf16.mxu0 %v4318_v20  ;;  %v4450_v42 = vld [vmem:[%s6791_s2 + $0x4c] ss:$16 sps:$4 sm:$0xff]   ;;  %v4456_v43 = vld [vmem:[%s6791_s2 + $0x48] ss:$16 sps:$4 sm:$0xff]   ;;  %v4500_v50 = vld [vmem:[%s6794_s4 + $0xe0] ss:$16 sps:$4 sm:$0xff]  }
   0xd   :  { %3280 = vmatprep.subr.msk.bf16.mxu1 %vm82_vm0, %v77_v19  ;;  %v4462_v44 = vld [vmem:[%s6791_s2 + $0x2c] ss:$16 sps:$4 sm:$0xff]   ;;  %v4468_v45 = vld [vmem:[%s6791_s2 + $0x28] ss:$16 sps:$4 sm:$0xff]   ;;  %v4513_v52 = vld [vmem:[%s6794_s4 + $0xc4] ss:$16 sps:$4 sm:$0xff]  }
   0xe   :  { %v4474_v46 = vld [vmem:[%s6791_s2 + $0xc] ss:$16 sps:$4 sm:$0xff]   ;;  %v4480_v47 = vld [vmem:[%s6791_s2 + $0x8] ss:$16 sps:$4 sm:$0xff]   ;;  %v4523_v54 = vld [vmem:[%s6794_s4 + $0xc0] ss:$16 sps:$4 sm:$0xff]  }
   0xf   :  { %3279 = vmatmul.mubr.msk.bf16.vlgmr.msra.gmra.mxu1 %vm78_vm1, %v3502_v21  ;;  %445 = vmatpush1.bf16.msra.mxu0 %v4328_v22  ;;  %v4494_v49 = vld [vmem:[%s6794_s4 + $0xec] ss:$16 sps:$4 sm:$0xff]   ;;  %v4505_v51 = vld [vmem:[%s6794_s4 + $0xe8] ss:$16 sps:$4 sm:$0xff]   ;;  %v4537_v56 = vld [vmem:[%s6794_s4 + $0xa4] ss:$16 sps:$4 sm:$0xff]  }
  0x10   :  { %153 = vmatpush1.bf16.msra.mxu1 %v90_v23  ;;  %446 = vmatprep.subr.bf16.mxu0 %v4336_v24  ;;  %v4518_v53 = vld [vmem:[%s6794_s4 + $0xcc] ss:$16 sps:$4 sm:$0xff]   ;;  %v4528_v55 = vld [vmem:[%s6794_s4 + $0xc8] ss:$16 sps:$4 sm:$0xff]   ;;  %v4547_v58 = vld [vmem:[%s6794_s4 + $0xa0] ss:$16 sps:$4 sm:$0xff]  }
  0x11   :  { %170 = vmatprep.mubr.bf16.mxu1 %v6800_v4  ;;  %479 = vmatprep.subr.bf16.mxu1 %v4341_v25  ;;  %v4542_v57 = vld [vmem:[%s6794_s4 + $0xac] ss:$16 sps:$4 sm:$0xff]   ;;  %v4552_v59 = vld [vmem:[%s6794_s4 + $0xa8] ss:$16 sps:$4 sm:$0xff]   ;;  %v4561_v60 = vld [vmem:[%s6794_s4 + $0x84] ss:$16 sps:$4 sm:$0xff]  }
  0x12   :  { %7192 = vst [vmem:[#allocation3_spill] sm:$0xff] %v4552_v59  ;;  %7193 = vst [vmem:[#allocation4_spill] sm:$0xff] %v4561_v60  ;;  %v4566_v61 = vld [vmem:[%s6794_s4 + $0x8c] ss:$16 sps:$4 sm:$0xff]   ;;  %v4571_v62 = vld [vmem:[%s6794_s4 + $0x80] ss:$16 sps:$4 sm:$0xff]  }
  0x13   :  { %447 = vmatpush1.bf16.msra.mxu0 %v4348_v26  ;;  %7194 = vst [vmem:[#allocation5_spill] sm:$0xff] %v4566_v61  ;;  %7195 = vst [vmem:[#allocation6_spill] sm:$0xff] %v4571_v62  ;;  %v4576_v63 = vld [vmem:[%s6794_s4 + $0x88] ss:$16 sps:$4 sm:$0xff]   ;;  %v4585_v0 = vld [vmem:[%s6794_s4 + $0x64] ss:$16 sps:$4 sm:$0xff]  }
  0x14   :  { %448 = vmatprep.subr.bf16.mxu0 %v4355_v27  ;;  %7196 = vst [vmem:[#allocation7_spill] sm:$0xff] %v4576_v63  ;;  %7197 = vst [vmem:[#allocation8_spill] sm:$0xff] %v4585_v0  ;;  %v4590_v2 = vld [vmem:[%s6794_s4 + $0x6c] ss:$16 sps:$4 sm:$0xff]   ;;  %v4597_v3 = vld [vmem:[%s6794_s4 + $0x60] ss:$16 sps:$4 sm:$0xff]  }
  0x15   :  { %7198 = vst [vmem:[#allocation9_spill] sm:$0xff] %v4590_v2  ;;  %7199 = vst [vmem:[#allocation10_spill] sm:$0xff] %v4597_v3  ;;  %v4602_v8 = vld [vmem:[%s6794_s4 + $0x68] ss:$16 sps:$4 sm:$0xff]   ;;  %v4609_v9 = vld [vmem:[%s6794_s4 + $0x44] ss:$16 sps:$4 sm:$0xff]  }
  0x16   :  { %7200 = vst [vmem:[#allocation11_spill] sm:$0xff] %v4602_v8  ;;  %7201 = vst [vmem:[#allocation12_spill] sm:$0xff] %v4609_v9  ;;  %v4614_v11 = vld [vmem:[%s6794_s4 + $0x4c] ss:$16 sps:$4 sm:$0xff]   ;;  %v4619_v12 = vld [vmem:[%s6794_s4 + $0x40] ss:$16 sps:$4 sm:$0xff]  }
  0x17   :  { %3281 = vmatmul.mubr.msk.bf16.vlgmr.msra.gmra.mxu1 %vm78_vm1, %v3502_v21  ;;  %449 = vmatpush1.bf16.msra.mxu0 %v4367_v29  ;;  %7202 = vst [vmem:[#allocation13_spill] sm:$0xff] %v4614_v11  ;;  %7203 = vst [vmem:[#allocation14_spill] sm:$0xff] %v4619_v12  ;;  %v4624_v14 = vld [vmem:[%s6794_s4 + $0x48] ss:$16 sps:$4 sm:$0xff]   ;;  %v4633_v15 = vld [vmem:[%s6794_s4 + $0x24] ss:$16 sps:$4 sm:$0xff]  }
  0x18   :  { %480 = vmatpush1.bf16.msra.mxu1 %v4361_v28  ;;  %450 = vmatprep.subr.bf16.mxu0 %v4378_v31  ;;  %7204 = vst [vmem:[#allocation15_spill] sm:$0xff] %v4624_v14  ;;  %7205 = vst [vmem:[#allocation16_spill] sm:$0xff] %v4633_v15  ;;  %v4638_v17 = vld [vmem:[%s6794_s4 + $0x2c] ss:$16 sps:$4 sm:$0xff]   ;;  %v4643_v18 = vld [vmem:[%s6794_s4 + $0x20] ss:$16 sps:$4 sm:$0xff]  }
  0x19   :  { %481 = vmatprep.subr.bf16.mxu1 %v4372_v30  ;;  %511 = vmatprep.mubr.bf16.mxu1 %v6800_v4  ;;  %7206 = vst [vmem:[#allocation17_spill] sm:$0xff] %v4638_v17  ;;  %7207 = vst [vmem:[#allocation18_spill] sm:$0xff] %v4643_v18  ;;  %v4648_v19 = vld [vmem:[%s6794_s4 + $0x28] ss:$16 sps:$4 sm:$0xff]   ;;  %v4657_v21 = vld [vmem:[%s6794_s4 + $0x4] ss:$16 sps:$4 sm:$0xff]  }
  0x1a   :  { %7208 = vst [vmem:[#allocation19_spill] sm:$0xff] %v4648_v19  ;;  %7209 = vst [vmem:[#allocation20_spill] sm:$0xff] %v4657_v21  ;;  %v4662_v23 = vld [vmem:[%s6794_s4 + $0xc] ss:$16 sps:$4 sm:$0xff]   ;;  %vm2422_vm7 = vcmask 1046534   ;;  %vm2734_vm8 = vcmask 1047559  }
  0x1b   :  { %451 = vmatpush1.bf16.msra.mxu0 %v4391_v33  ;;  %7210 = vst [vmem:[#allocation21_spill] sm:$0xff] %v4662_v23  ;;  %vm4225_vm9 = vmmov 0   ;;  %vm3271_vm10 = vcmask 25600  }
  0x1c   :  { %482 = vmatpush1.bf16.msra.mxu1 %v4386_v32  ;;  %452 = vmatprep.subr.bf16.mxu0 %v4403_v35 }
  0x1d   :  { %483 = vmatprep.subr.bf16.mxu1 %v4398_v34 }
  0x1f   :  { %453 = vmatpush1.bf16.msra.mxu0 %v4416_v37 }
  0x20   :  { %484 = vmatpush1.bf16.msra.mxu1 %v4411_v36  ;;  %944 = vmatprep.subr.bf16.mxu0 %v4489_v48 }
  0x21   :  { %485 = vmatprep.subr.bf16.mxu1 %v4423_v38 }
  0x22   :  { %471 = vmatmul.mubr.bf16.vlgmr.msra.gmra.mxu0 %v6800_v4 }
  0x23   :  { %976 = vmatprep.mubr.bf16.mxu0 %v6800_v4  ;;  %945 = vmatpush1.bf16.msra.mxu0 %v4500_v50 }
  0x24   :  { %486 = vmatpush1.bf16.msra.mxu1 %v4430_v39  ;;  %946 = vmatprep.subr.bf16.mxu0 %v4513_v52 }
  0x25   :  { %487 = vmatprep.subr.bf16.mxu1 %v4436_v40 }
  0x27   :  { %947 = vmatpush1.bf16.msra.mxu0 %v4523_v54 }
  0x28   :  { %488 = vmatpush1.bf16.msra.mxu1 %v4443_v41  ;;  %948 = vmatprep.subr.bf16.mxu0 %v4537_v56 }
  0x29   :  { %489 = vmatprep.subr.bf16.mxu1 %v4450_v42 }
  0x2b   :  { %949 = vmatpush1.bf16.msra.mxu0 %v4547_v58 }
  0x2c   :  { %490 = vmatpush1.bf16.msra.mxu1 %v4456_v43  ;;  %950 = vmatprep.subr.bf16.mxu0 %v4561_v60 }
  0x2d   :  { %491 = vmatprep.subr.bf16.mxu1 %v4462_v44 }
  0x2f   :  { %951 = vmatpush1.bf16.msra.mxu0 %v4571_v62 }
  0x30   :  { %492 = vmatpush1.bf16.msra.mxu1 %v4468_v45  ;;  %952 = vmatprep.subr.bf16.mxu0 %v4585_v0 }
  0x31   :  { %493 = vmatprep.subr.bf16.mxu1 %v4474_v46 }
  0x33   :  { %953 = vmatpush1.bf16.msra.mxu0 %v4597_v3 }
  0x34   :  { %494 = vmatpush1.bf16.msra.mxu1 %v4480_v47  ;;  %954 = vmatprep.subr.bf16.mxu0 %v4609_v9 }
  0x35   :  { %985 = vmatprep.subr.bf16.mxu1 %v4494_v49 }
  0x37   :  { %512 = vmatmul.mubr.bf16.vlgmr.msra.gmra.mxu1 %v6800_v4  ;;  %955 = vmatpush1.bf16.msra.mxu0 %v4619_v12 }
  0x38   :  { %1017 = vmatprep.mubr.bf16.mxu1 %v6800_v4  ;;  %986 = vmatpush1.bf16.msra.mxu1 %v4505_v51  ;;  %v4667_v4 = vld [vmem:[%s6794_s4] ss:$16 sps:$4 sm:$0xff]  }
  0x39   :  { %987 = vmatprep.subr.bf16.mxu1 %v4518_v53  ;;  %956 = vmatprep.subr.bf16.mxu0 %v4633_v15  ;;  %7211 = vst [vmem:[#allocation22_spill] sm:$0xff] %v4667_v4  ;;  %v4763_v15 = vld [vmem:[%s6794_s4 + $0x180] ss:$16 sps:$4 sm:$0xff]  }
  0x3a   :  { %7227 = vst [vmem:[#allocation38_spill] sm:$0xff] %v4763_v15 }
  0x3b   :  { %957 = vmatpush1.bf16.msra.mxu0 %v4643_v18  ;;  %v4672_v18 = vld [vmem:[%s6794_s4 + $0x8] ss:$16 sps:$4 sm:$0xff]  }
  0x3c   :  { %988 = vmatpush1.bf16.msra.mxu1 %v4528_v55  ;;  %7212 = vst [vmem:[#allocation23_spill] sm:$0xff] %v4672_v18  ;;  %958 = vmatprep.subr.bf16.mxu0 %v4657_v21  ;;  %v4691_v21 = vld [vmem:[%s6794_s4 + $0x1e0] ss:$16 sps:$4 sm:$0xff]  }
  0x3d   :  { %989 = vmatprep.subr.bf16.mxu1 %v4542_v57  ;;  %7215 = vst [vmem:[#allocation26_spill] sm:$0xff] %v4691_v21 }
  0x3f   :  { %959 = vmatpush1.bf16.msra.mxu0 %v4667_v4  ;;  %v4696_v4 = vld [vmem:[%s6794_s4 + $0x1e8] ss:$16 sps:$4 sm:$0xff]  }
  0x40   :  { %990 = vmatpush1.bf16.msra.mxu1 %v4552_v59  ;;  %7216 = vst [vmem:[#allocation27_spill] sm:$0xff] %v4696_v4 }
  0x41   :  { %991 = vmatprep.subr.bf16.mxu1 %v4566_v61 }
  0x44   :  { %992 = vmatpush1.bf16.msra.mxu1 %v4576_v63 }
  0x45   :  { %993 = vmatprep.subr.bf16.mxu1 %v4590_v2 }
  0x48   :  { %994 = vmatpush1.bf16.msra.mxu1 %v4602_v8 }
  0x49   :  { %995 = vmatprep.subr.bf16.mxu1 %v4614_v11 }
  0x4c   :  { %996 = vmatpush1.bf16.msra.mxu1 %v4624_v14  ;;  %v33_v14 = vld [vmem:[%s6795_s3] sm:$0xf] }
  0x4d   :  { %997 = vmatprep.subr.bf16.mxu1 %v4638_v17  ;;  %v4686_v17 = vld [vmem:[%s6794_s4 + $0x1ec] ss:$16 sps:$4 sm:$0xff]  }
  0x4e   :  { %7214 = vst [vmem:[#allocation25_spill] sm:$0xff] %v4686_v17 }
  0x50   :  { %998 = vmatpush1.bf16.msra.mxu1 %v4648_v19  ;;  %v4681_v19 = vld [vmem:[%s6794_s4 + $0x1e4] ss:$16 sps:$4 sm:$0xff]  }
  0x51   :  { %999 = vmatprep.subr.bf16.mxu1 %v4662_v23  ;;  %7213 = vst [vmem:[#allocation24_spill] sm:$0xff] %v4681_v19  ;;  %960 = vmatprep.subr.bf16.mxu0 %v4681_v19  ;;  %v4710_v23 = vld [vmem:[%s6794_s4 + $0x1cc] ss:$16 sps:$4 sm:$0xff]   ;;  %v4715_v19 = vld [vmem:[%s6794_s4 + $0x1c0] ss:$16 sps:$4 sm:$0xff]  }
  0x52   :  { %961 = vmatpush2.bf16.msra.mxu0 %v4691_v21  ;;  %7218 = vst [vmem:[#allocation29_spill] sm:$0xff] %v4710_v23  ;;  %7219 = vst [vmem:[#allocation30_spill] sm:$0xff] %v4715_v19  ;;  %v4720_v21 = vld [vmem:[%s6794_s4 + $0x1c8] ss:$16 sps:$4 sm:$0xff]  }
  0x53   :  { %7220 = vst [vmem:[#allocation31_spill] sm:$0xff] %v4720_v21 }
  0x54   :  { %1000 = vmatpush1.bf16.msra.mxu1 %v4672_v18  ;;  %v4705_v18 = vld [vmem:[%s6794_s4 + $0x1c4] ss:$16 sps:$4 sm:$0xff]  }
  0x55   :  { %1001 = vmatprep.subr.bf16.mxu1 %v4686_v17  ;;  %7217 = vst [vmem:[#allocation28_spill] sm:$0xff] %v4705_v18  ;;  %962 = vmatprep.subr.bf16.mxu0 %v4705_v18  ;;  %v4734_v17 = vld [vmem:[%s6794_s4 + $0x1ac] ss:$16 sps:$4 sm:$0xff]   ;;  %v4739_v18 = vld [vmem:[%s6794_s4 + $0x1a0] ss:$16 sps:$4 sm:$0xff]  }
  0x56   :  { %963 = vmatpush2.bf16.msra.mxu0 %v4715_v19  ;;  %7222 = vst [vmem:[#allocation33_spill] sm:$0xff] %v4734_v17  ;;  %7223 = vst [vmem:[#allocation34_spill] sm:$0xff] %v4739_v18  ;;  %v4744_v19 = vld [vmem:[%s6794_s4 + $0x1a8] ss:$16 sps:$4 sm:$0xff]  }
  0x57   :  { %7224 = vst [vmem:[#allocation35_spill] sm:$0xff] %v4744_v19 }
  0x58   :  { %1002 = vmatpush2.bf16.msra.mxu1 %v4696_v4  ;;  %v4729_v4 = vld [vmem:[%s6794_s4 + $0x1a4] ss:$16 sps:$4 sm:$0xff]  }
  0x59   :  { %1003 = vmatprep.subr.bf16.mxu1 %v4710_v23  ;;  %7221 = vst [vmem:[#allocation32_spill] sm:$0xff] %v4729_v4  ;;  %964 = vmatprep.subr.bf16.mxu0 %v4729_v4  ;;  %v4756_v23 = vld [vmem:[%s6794_s4 + $0x18c] ss:$16 sps:$4 sm:$0xff]   ;;  %v4768_v4 = vld [vmem:[%s6794_s4 + $0x188] ss:$16 sps:$4 sm:$0xff]  }
  0x5a   :  { %7226 = vst [vmem:[#allocation37_spill] sm:$0xff] %v4756_v23  ;;  %965 = vmatpush2.bf16.msra.mxu0 %v4739_v18  ;;  %7228 = vst [vmem:[#allocation39_spill] sm:$0xff] %v4768_v4  ;;  %v4775_v18 = vld [vmem:[%s6794_s4 + $0x164] ss:$16 sps:$4 sm:$0xff]  }
  0x5b   :  { %7229 = vst [vmem:[#allocation40_spill] sm:$0xff] %v4775_v18 }
  0x5c   :  { %1004 = vmatpush2.bf16.msra.mxu1 %v4720_v21  ;;  %v4749_v21 = vld [vmem:[%s6794_s4 + $0x184] ss:$16 sps:$4 sm:$0xff]  }
  0x5d   :  { %7225 = vst [vmem:[#allocation36_spill] sm:$0xff] %v4749_v21  ;;  %1005 = vmatprep.subr.bf16.mxu1 %v4734_v17  ;;  %966 = vmatprep.subr.bf16.mxu0 %v4749_v21  ;;  %v4787_v21 = vld [vmem:[%s6794_s4 + $0x160] ss:$16 sps:$4 sm:$0xff]  }
  0x5e   :  { %967 = vmatpush2.bf16.msra.mxu0 %v4763_v15  ;;  %7231 = vst [vmem:[#allocation42_spill] sm:$0xff] %v4787_v21  ;;  %v4799_v15 = vld [vmem:[%s6794_s4 + $0x144] ss:$16 sps:$4 sm:$0xff]  }
  0x5f   :  { %968 = vmatprep.subr.bf16.mxu0 %v4775_v18  ;;  %7233 = vst [vmem:[#allocation44_spill] sm:$0xff] %v4799_v15  ;;  %v4811_v18 = vld [vmem:[%s6794_s4 + $0x140] ss:$16 sps:$4 sm:$0xff]  }
  0x60   :  { %1006 = vmatpush2.bf16.msra.mxu1 %v4744_v19  ;;  %v4780_v19 = vld [vmem:[%s6794_s4 + $0x16c] ss:$16 sps:$4 sm:$0xff]   ;;  %7235 = vst [vmem:[#allocation46_spill] sm:$0xff] %v4811_v18 }
  0x61   :  { %1007 = vmatprep.subr.bf16.mxu1 %v4756_v23  ;;  %7230 = vst [vmem:[#allocation41_spill] sm:$0xff] %v4780_v19  ;;  %v4792_v23 = vld [vmem:[%s6794_s4 + $0x168] ss:$16 sps:$4 sm:$0xff]  }
  0x62   :  { %7232 = vst [vmem:[#allocation43_spill] sm:$0xff] %v4792_v23  ;;  %969 = vmatpush2.bf16.msra.mxu0 %v4787_v21  ;;  %v4823_v21 = vld [vmem:[%s6794_s4 + $0x124] ss:$16 sps:$4 sm:$0xff]  }
  0x63   :  { %970 = vmatprep.subr.bf16.mxu0 %v4799_v15  ;;  %7237 = vst [vmem:[#allocation48_spill] sm:$0xff] %v4823_v21  ;;  %v4835_v15 = vld [vmem:[%s6794_s4 + $0x120] ss:$16 sps:$4 sm:$0xff]  }
  0x64   :  { %1008 = vmatpush2.bf16.msra.mxu1 %v4768_v4  ;;  %v4804_v4 = vld [vmem:[%s6794_s4 + $0x14c] ss:$16 sps:$4 sm:$0xff]   ;;  %7239 = vst [vmem:[#allocation50_spill] sm:$0xff] %v4835_v15 }
  0x65   :  { %1009 = vmatprep.subr.bf16.mxu1 %v4780_v19  ;;  %7234 = vst [vmem:[#allocation45_spill] sm:$0xff] %v4804_v4  ;;  %v4816_v19 = vld [vmem:[%s6794_s4 + $0x148] ss:$16 sps:$4 sm:$0xff]  }
  0x66   :  { %7236 = vst [vmem:[#allocation47_spill] sm:$0xff] %v4816_v19  ;;  %971 = vmatpush2.bf16.msra.mxu0 %v4811_v18  ;;  %v4847_v18 = vld [vmem:[%s6794_s4 + $0x104] ss:$16 sps:$4 sm:$0xff]  }
  0x67   :  { %972 = vmatprep.subr.bf16.mxu0 %v4823_v21  ;;  %7241 = vst [vmem:[#allocation52_spill] sm:$0xff] %v4847_v18  ;;  %v4859_v21 = vld [vmem:[%s6794_s4 + $0x100] ss:$16 sps:$4 sm:$0xff]  }
  0x68   :  { %1010 = vmatpush2.bf16.msra.mxu1 %v4792_v23  ;;  %v4828_v23 = vld [vmem:[%s6794_s4 + $0x12c] ss:$16 sps:$4 sm:$0xff]   ;;  %7243 = vst [vmem:[#allocation54_spill] sm:$0xff] %v4859_v21 }
  0x69   :  { %1011 = vmatprep.subr.bf16.mxu1 %v4804_v4  ;;  %7238 = vst [vmem:[#allocation49_spill] sm:$0xff] %v4828_v23  ;;  %v4840_v4 = vld [vmem:[%s6794_s4 + $0x128] ss:$16 sps:$4 sm:$0xff]  }
  0x6a   :  { %7240 = vst [vmem:[#allocation51_spill] sm:$0xff] %v4840_v4  ;;  %973 = vmatpush2.bf16.msra.mxu0 %v4835_v15  ;;  %v6891_v15 = vsub.s32 0, %v4283_v6 }
  0x6b   :  { %974 = vmatprep.subr.bf16.mxu0 %v4847_v18  ;;  %v6894_v18 = vsub.s32 1, %v4283_v6 }
  0x6c   :  { %1012 = vmatpush2.bf16.msra.mxu1 %v4816_v19  ;;  %v4852_v19 = vld [vmem:[%s6794_s4 + $0x10c] ss:$16 sps:$4 sm:$0xff]  }
  0x6d   :  { %1013 = vmatprep.subr.bf16.mxu1 %v4828_v23  ;;  %7242 = vst [vmem:[#allocation53_spill] sm:$0xff] %v4852_v19  ;;  %v4864_v23 = vld [vmem:[%s6794_s4 + $0x108] ss:$16 sps:$4 sm:$0xff]  }
  0x6e   :  { %7244 = vst [vmem:[#allocation55_spill] sm:$0xff] %v4864_v23  ;;  %975 = vmatpush2.bf16.msra.mxu0 %v4859_v21 }
  0x6f   :  { %1050 = vmatprep.subr.bf16.mxu0 %v4274_v1 }
  0x70   :  { %1014 = vmatpush2.bf16.msra.mxu1 %v4840_v4 }
  0x71   :  { %1015 = vmatprep.subr.bf16.mxu1 %v4852_v19  ;;  %v38_v19 = vrot.slane %v33_v14, %v6891_v15 }
  0x74   :  { %1016 = vmatpush2.bf16.msra.mxu1 %v4864_v23  ;;  %v42_v23 = vrot.slane %v33_v14, %v6894_v18 }
  0x75   :  { %1091 = vmatprep.subr.bf16.mxu1 %v4341_v25 }
  0xcf   :  { %v129_v4 = vpop.f32.mrf.mxu1 }
  0xd0   :  { %v4881_v1 = vadd.f32 %v129_v4, %v38_v19 }
  0xd1   :  { %v131_v17 = vpop.f32.mrf.mxu1 }
  0xd2   :  { %7245 = vst [vmem:[#allocation56_spill] sm:$0xff] %v4881_v1  ;;  %v4883_v11 = vadd.f32 %v131_v17, %v42_v23 }
  0xd3   :  { %v133_v21 = vpop.f32.mrf.mxu1 }
  0xd4   :  { %7246 = vst [vmem:[#allocation57_spill] sm:$0xff] %v4883_v11  ;;  %v4885_v9 = vadd.f32 %v133_v21, %v38_v19 }
  0xd5   :  { %v135_v25 = vpop.f32.mrf.mxu1 }
  0xd6   :  { %7247 = vst [vmem:[#allocation58_spill] sm:$0xff] %v4885_v9  ;;  %v4888_v2 = vadd.f32 %v135_v25, %v42_v23 }
  0xd7   :  { %v172_v19 = vpop.f32.mrf.mxu1 }
  0xd8   :  { %7248 = vst [vmem:[#allocation59_spill] sm:$0xff] %v4888_v2 }
  0xd9   :  { %v174_v25 = vpop.f32.mrf.mxu1 }
  0xe2   :  { %v472_v12 = vpop.f32.mrf.mxu0 }
  0xe3   :  { %v524_v8 = vrot.slane %v472_v12, 1  ;;  %v536_v3 = vadd.f32 %v472_v12, %v4881_v1  ;;  %v6904_v12 = vsub.s32 2, %v4283_v6 }
  0xe4   :  { %v474_v0 = vpop.f32.mrf.mxu0 }
  0xe5   :  { %v540_v15 = vadd.f32 %v524_v8, %v4885_v9  ;;  %v3314_v63 = vmul.f32 -1.442695, %v536_v3  ;;  %v525_v62 = vrot.slane %v474_v0, 1  ;;  %v537_v18 = vadd.f32 %v474_v0, %v4883_v11  ;;  %v176_v8 = vpop.f32.mrf.mxu1 }
  0xe6   :  { %v476_v4 = vpop.f32.mrf.mxu0  ;;  %v6907_v3 = vsub.s32 3, %v4283_v6  ;;  %v46_v0 = vrot.slane %v33_v14, %v6904_v12 }
  0xe7   :  { %3646 = vpow2.f32 %v3314_v63  ;;  %v3317_v61 = vmul.f32 -1.442695, %v540_v15  ;;  %v541_v17 = vadd.f32 %v525_v62, %v4888_v2  ;;  %v3315_v60 = vmul.f32 -1.442695, %v537_v18  ;;  %v178_v15 = vpop.f32.mrf.mxu1 }
  0xe8   :  { %v477_v21 = vpop.f32.mrf.mxu0  ;;  %v50_v62 = vrot.slane %v33_v14, %v6907_v3  ;;  %v4899_v18 = vadd.f32 %v172_v19, %v46_v0  ;;  %v4901_v4 = vadd.f32 %v176_v8, %v46_v0 }
  0xe9   :  { %3648 = vpow2.f32 %v3317_v61  ;;  %v3318_v59 = vmul.f32 -1.442695, %v541_v17 }
  0xea   :  { %3650 = vpow2.f32 %v3315_v60  ;;  %7249 = vst [vmem:[#allocation60_spill] sm:$0xff] %v4899_v18  ;;  %v4904_v1 = vadd.f32 %v174_v25, %v50_v62  ;;  %v4907_v3 = vadd.f32 %v178_v15, %v50_v62 }
  0xeb   :  { %3652 = vpow2.f32 %v3318_v59 }
  0xec   :  { %7250 = vst [vmem:[#allocation61_spill] sm:$0xff] %v4907_v3 }
  0xf4   :  { %v3647_v63 = vpop.eup %3646 }
  0xf5   :  { %v562_v61 = vadd.f32 1.0, %v3647_v63 }
  0xf6   :  { %v3649_v23 = vpop.eup %3648 }
  0xf7   :  { %v513_v60 = vpop.f32.mrf.mxu1  ;;  %v3651_v59 = vpop.eup %3650  ;;  %v565_v17 = vadd.f32 1.0, %v3649_v23  ;;  %3654 = vrcp.f32 %v562_v61 }
  0xf8   :  { %v526_v21 = vrot.slane %v513_v60, 1  ;;  %v538_v11 = vadd.f32 %v513_v60, %v4899_v18  ;;  %v3653_v2 = vpop.eup %3652  ;;  %v563_v12 = vadd.f32 1.0, %v3651_v59 }
  0xf9   :  { %v515_v9 = vpop.f32.mrf.mxu1  ;;  %3656 = vrcp.f32 %v565_v17  ;;  %v566_v14 = vadd.f32 1.0, %v3653_v2 }
  0xfa   :  { %v542_v19 = vadd.f32 %v526_v21, %v4901_v4  ;;  %v3316_v63 = vmul.f32 -1.442695, %v538_v11  ;;  %3658 = vrcp.f32 %v563_v12  ;;  %v527_v8 = vrot.slane %v515_v9, 1 }
  0xfb   :  { %v539_v0 = vadd.f32 %v515_v9, %v4904_v1  ;;  %v517_v23 = vpop.f32.mrf.mxu1  ;;  %3660 = vrcp.f32 %v566_v14 }
  0xfc   :  { %v3319_v60 = vmul.f32 -1.442695, %v542_v19  ;;  %3662 = vpow2.f32 %v3316_v63  ;;  %v543_v25 = vadd.f32 %v527_v8, %v4907_v3 }
  0xfd   :  { %v518_v61 = vpop.f32.mrf.mxu1 }
  0xfe   :  { %3664 = vpow2.f32 %v3319_v60 }
  0xff   :  { %3666 = vtanh.f32 %v539_v0 }
 0x100   :  { %3668 = vtanh.f32 %v543_v25 }
 0x104   :  { %v3655_v2 = vpop.eup %3654 }
 0x106   :  { %v3657_v59 = vpop.eup %3656 }
 0x107   :  { %v3659_v17 = vpop.eup %3658 }
 0x108   :  { %v3661_v11 = vpop.eup %3660  ;;  %v582_v12 = vmul.f32 0.0, %v3659_v17 }
 0x109   :  { %v3663_v62 = vpop.eup %3662  ;;  %v583_v9 = vmul.f32 0.0, %v3661_v11 }
 0x10a   :  { %v564_v21 = vadd.f32 1.0, %v3663_v62 }
 0x10b   :  { %v3665_v15 = vpop.eup %3664 }
 0x10c   :  { %v3667_v18 = vpop.eup %3666  ;;  %v567_v23 = vadd.f32 1.0, %v3665_v15  ;;  %3670 = vrcp.f32 %v564_v21 }
 0x10d   :  { %v3669_v14 = vpop.eup %3668  ;;  %v584_v19 = vmul.f32 %v3667_v18, %v3655_v2 }
 0x10e   :  { %v585_v63 = vmul.f32 %v3669_v14, %v3657_v59  ;;  %3672 = vrcp.f32 %v567_v23  ;;  %v7294_v23 = vld [vmem:[#allocation45_spill] sm:$0xff]  ;;  %v7295_v14 = vld [vmem:[#allocation46_spill] sm:$0xff] }
 0x10f   :  { %v4911_v8 = vadd.f32 %v584_v19, %v582_v12  ;;  %v7296_v19 = vld [vmem:[#allocation47_spill] sm:$0xff] }
 0x110   :  { %v4913_v0 = vadd.f32 %v585_v63, %v583_v9  ;;  %v7251_v9 = vmov 0   ;;  %v7297_v63 = vld [vmem:[#allocation48_spill] sm:$0xff] }
 0x111   :  { %3674 = vtanh.f32 %v4911_v8 }
 0x112   :  { %3676 = vtanh.f32 %v4913_v0 }
 0x119   :  { %v3671_v60 = vpop.eup %3670 }
 0x11b   :  { %v3673_v25 = vpop.eup %3672 }
 0x11e   :  { %v3675_v61 = vpop.eup %3674 }
 0x11f   :  { %v3677_v17 = vpop.eup %3676  ;;  %v590_v62 = vmul.f32 %v3675_v61, %v3671_v60  ;;  %v7298_v60 = vld [vmem:[#allocation49_spill] sm:$0xff]  ;;  %v7300_v61 = vld [vmem:[#allocation51_spill] sm:$0xff] }
 0x120   :  { %v591_v11 = vmul.f32 %v3677_v17, %v3673_v25  ;;  %v7299_v25 = vld [vmem:[#allocation50_spill] sm:$0xff]  ;;  %v7301_v17 = vld [vmem:[#allocation52_spill] sm:$0xff] }
 0x121   :  { %v592_v15 = vpack.c.bf16 %v590_v62, %v590_v62  ;;  %v7302_v62 = vld [vmem:[#allocation53_spill] sm:$0xff] }
 0x122   :  { %v593_v3 = vpack.c.bf16 %v591_v11, %v591_v11  ;;  %v7303_v11 = vld [vmem:[#allocation54_spill] sm:$0xff] }
 0x123   :  { %v596_v2 = vunpack.c.l.b16 %v592_v15  ;;  %v7304_v15 = vld [vmem:[#allocation55_spill] sm:$0xff] }
 0x124   :  { %v597_v18 = vunpack.c.l.b16 %v593_v3  ;;  %v7293_v3 = vld [vmem:[#allocation44_spill] sm:$0xff] }
 0x126   :  { %v598_v59 = vrot.slane %v597_v18, 7  ;;  %v5017_v18 = vld [vmem:[%s6791_s2 + $0xe4] ss:$16 sps:$4 sm:$0xff]  }
 0x128   :  { %v600_v12 = vsel %vm599_vm2, %v598_v59, %v596_v2  ;;  %v7306_v2 = vld [vmem:[#allocation2_spill] sm:$0xff] }
 0x129   :  { %v601_v21 = vpack.c.b16 %v600_v12, %v600_v12  ;;  %v277_v59 = vld [vmem:[%s6796_s5] sm:$0xf]  ;;  %v7307_v12 = vsub.s32 0, %v4283_v6 }
 0x12b   :  { %977 = vmatmul.mubr.bf16.vlgmr.msra.gmra.mxu0 %v601_v21  ;;  %1018 = vmatmul.mubr.bf16.vlgmr.msra.gmra.mxu1 %v601_v21 }
 0x12c   :  { %1051 = vmatpush1.bf16.msra.mxu0 %v4281_v5  ;;  %1092 = vmatpush1.bf16.msra.mxu1 %v4361_v28  ;;  %v7252_v5 = vld [vmem:[#allocation3_spill] sm:$0xff]  ;;  %v7262_v28 = vld [vmem:[#allocation13_spill] sm:$0xff] }
 0x12d   :  { %1052 = vmatprep.subr.bf16.mxu0 %v4289_v7  ;;  %1093 = vmatprep.subr.bf16.mxu1 %v4372_v30  ;;  %v7253_v7 = vld [vmem:[#allocation4_spill] sm:$0xff]  ;;  %v7264_v30 = vld [vmem:[#allocation15_spill] sm:$0xff]  ;;  %7305 = vst [vmem:[#allocation3_spill] sm:$0xff] %v5017_v18 }
 0x12e   :  { %1082 = vmatprep.mubr.bf16.mxu0 %v7251_v9  ;;  %1123 = vmatprep.mubr.bf16.mxu1 %v7251_v9 }
 0x130   :  { %1053 = vmatpush1.bf16.msra.mxu0 %v4298_v10  ;;  %1094 = vmatpush1.bf16.msra.mxu1 %v4386_v32  ;;  %v7254_v10 = vld [vmem:[#allocation5_spill] sm:$0xff] }
 0x131   :  { %1054 = vmatprep.subr.bf16.mxu0 %v4305_v13  ;;  %1095 = vmatprep.subr.bf16.mxu1 %v4398_v34  ;;  %v7255_v13 = vld [vmem:[#allocation6_spill] sm:$0xff]  ;;  %v7266_v32 = vld [vmem:[#allocation17_spill] sm:$0xff]  ;;  %v7268_v34 = vld [vmem:[#allocation19_spill] sm:$0xff] }
 0x134   :  { %1055 = vmatpush1.bf16.msra.mxu0 %v4311_v16  ;;  %1096 = vmatpush1.bf16.msra.mxu1 %v4411_v36  ;;  %v7256_v16 = vld [vmem:[#allocation7_spill] sm:$0xff]  ;;  %v7270_v36 = vld [vmem:[#allocation21_spill] sm:$0xff] }
 0x135   :  { %1056 = vmatprep.subr.bf16.mxu0 %v4318_v20  ;;  %1097 = vmatprep.subr.bf16.mxu1 %v4423_v38  ;;  %v7257_v20 = vld [vmem:[#allocation8_spill] sm:$0xff]  ;;  %v7272_v38 = vld [vmem:[#allocation23_spill] sm:$0xff] }
 0x138   :  { %1057 = vmatpush1.bf16.msra.mxu0 %v4328_v22  ;;  %1098 = vmatpush1.bf16.msra.mxu1 %v4430_v39  ;;  %v7258_v22 = vld [vmem:[#allocation9_spill] sm:$0xff]  ;;  %v7273_v39 = vld [vmem:[#allocation24_spill] sm:$0xff] }
 0x139   :  { %1058 = vmatprep.subr.bf16.mxu0 %v4336_v24  ;;  %1099 = vmatprep.subr.bf16.mxu1 %v4436_v40  ;;  %v7259_v24 = vld [vmem:[#allocation10_spill] sm:$0xff]  ;;  %v7274_v40 = vld [vmem:[#allocation25_spill] sm:$0xff] }
 0x13c   :  { %1059 = vmatpush1.bf16.msra.mxu0 %v4348_v26  ;;  %1100 = vmatpush1.bf16.msra.mxu1 %v4443_v41  ;;  %v7260_v26 = vld [vmem:[#allocation11_spill] sm:$0xff]  ;;  %v7275_v41 = vld [vmem:[#allocation26_spill] sm:$0xff] }
 0x13d   :  { %1060 = vmatprep.subr.bf16.mxu0 %v4355_v27  ;;  %1101 = vmatprep.subr.bf16.mxu1 %v4450_v42  ;;  %v7261_v27 = vld [vmem:[#allocation12_spill] sm:$0xff]  ;;  %v7276_v42 = vld [vmem:[#allocation27_spill] sm:$0xff] }
 0x140   :  { %1061 = vmatpush1.bf16.msra.mxu0 %v4367_v29  ;;  %1102 = vmatpush1.bf16.msra.mxu1 %v4456_v43  ;;  %v7263_v29 = vld [vmem:[#allocation14_spill] sm:$0xff]  ;;  %v7277_v43 = vld [vmem:[#allocation28_spill] sm:$0xff] }
 0x141   :  { %1062 = vmatprep.subr.bf16.mxu0 %v4378_v31  ;;  %1103 = vmatprep.subr.bf16.mxu1 %v4462_v44  ;;  %v7265_v31 = vld [vmem:[#allocation16_spill] sm:$0xff]  ;;  %v7278_v44 = vld [vmem:[#allocation29_spill] sm:$0xff] }
 0x144   :  { %1063 = vmatpush1.bf16.msra.mxu0 %v4391_v33  ;;  %1104 = vmatpush1.bf16.msra.mxu1 %v4468_v45  ;;  %v7267_v33 = vld [vmem:[#allocation18_spill] sm:$0xff] }
 0x145   :  { %1064 = vmatprep.subr.bf16.mxu0 %v4403_v35  ;;  %1105 = vmatprep.subr.bf16.mxu1 %v4474_v46  ;;  %v7269_v35 = vld [vmem:[#allocation20_spill] sm:$0xff]  ;;  %v7279_v45 = vld [vmem:[#allocation30_spill] sm:$0xff]  ;;  %v7280_v46 = vld [vmem:[#allocation31_spill] sm:$0xff] }
 0x148   :  { %1065 = vmatpush1.bf16.msra.mxu0 %v4416_v37  ;;  %1106 = vmatpush1.bf16.msra.mxu1 %v4480_v47  ;;  %v7271_v37 = vld [vmem:[#allocation22_spill] sm:$0xff]  ;;  %v7281_v47 = vld [vmem:[#allocation32_spill] sm:$0xff] }
 0x149   :  { %1244 = vmatprep.subr.bf16.mxu0 %v4489_v48  ;;  %1285 = vmatprep.subr.bf16.mxu1 %v4494_v49  ;;  %v7282_v48 = vld [vmem:[#allocation33_spill] sm:$0xff]  ;;  %v7283_v49 = vld [vmem:[#allocation34_spill] sm:$0xff] }
 0x14b   :  { %1083 = vmatmul.mubr.bf16.vlgmr.msra.gmra.mxu0 %v601_v21  ;;  %1124 = vmatmul.mubr.bf16.vlgmr.msra.gmra.mxu1 %v601_v21  ;;  %v5026_v21 = vrot.slane %v277_v59, %v7307_v12  ;;  %v7311_v12 = vsub.s32 2, %v4283_v6 }
 0x14c   :  { %1245 = vmatpush1.bf16.msra.mxu0 %v4500_v50  ;;  %1286 = vmatpush1.bf16.msra.mxu1 %v4505_v51  ;;  %v7284_v50 = vld [vmem:[#allocation35_spill] sm:$0xff]  ;;  %v7285_v51 = vld [vmem:[#allocation36_spill] sm:$0xff] }
 0x14d   :  { %1246 = vmatprep.subr.bf16.mxu0 %v4513_v52  ;;  %1287 = vmatprep.subr.bf16.mxu1 %v4518_v53  ;;  %v7286_v52 = vld [vmem:[#allocation37_spill] sm:$0xff]  ;;  %v7287_v53 = vld [vmem:[#allocation38_spill] sm:$0xff]  ;;  %7308 = vst [vmem:[#allocation4_spill] sm:$0xff] %v5026_v21 }
 0x150   :  { %1247 = vmatpush1.bf16.msra.mxu0 %v4523_v54  ;;  %1288 = vmatpush1.bf16.msra.mxu1 %v4528_v55  ;;  %v7288_v54 = vld [vmem:[#allocation39_spill] sm:$0xff]  ;;  %v7289_v55 = vld [vmem:[#allocation40_spill] sm:$0xff] }
 0x151   :  { %1248 = vmatprep.subr.bf16.mxu0 %v4537_v56  ;;  %1289 = vmatprep.subr.bf16.mxu1 %v4542_v57  ;;  %v7290_v56 = vld [vmem:[#allocation41_spill] sm:$0xff]  ;;  %v7291_v57 = vld [vmem:[#allocation42_spill] sm:$0xff] }
 0x154   :  { %1249 = vmatpush1.bf16.msra.mxu0 %v4547_v58  ;;  %1290 = vmatpush1.bf16.msra.mxu1 %v7252_v5  ;;  %v7292_v58 = vld [vmem:[#allocation43_spill] sm:$0xff]  ;;  %v7309_v5 = vsub.s32 1, %v4283_v6 }
 0x155   :  { %1250 = vmatprep.subr.bf16.mxu0 %v7253_v7  ;;  %1291 = vmatprep.subr.bf16.mxu1 %v7254_v10 }
 0x156   :  { %v5030_v7 = vrot.slane %v277_v59, %v7309_v5  ;;  %v5036_v5 = vrot.slane %v277_v59, %v7311_v12 }
 0x158   :  { %1251 = vmatpush1.bf16.msra.mxu0 %v7255_v13  ;;  %1292 = vmatpush1.bf16.msra.mxu1 %v7256_v16  ;;  %7310 = vst [vmem:[#allocation5_spill] sm:$0xff] %v5030_v7  ;;  %7312 = vst [vmem:[#allocation6_spill] sm:$0xff] %v5036_v5 }
 0x159   :  { %1252 = vmatprep.subr.bf16.mxu0 %v7257_v20  ;;  %1293 = vmatprep.subr.bf16.mxu1 %v7258_v22 }
 0x15c   :  { %1253 = vmatpush1.bf16.msra.mxu0 %v7259_v24  ;;  %1294 = vmatpush1.bf16.msra.mxu1 %v7260_v26 }
 0x15d   :  { %1254 = vmatprep.subr.bf16.mxu0 %v7261_v27  ;;  %1295 = vmatprep.subr.bf16.mxu1 %v7262_v28 }
 0x160   :  { %1255 = vmatpush1.bf16.msra.mxu0 %v7263_v29  ;;  %1296 = vmatpush1.bf16.msra.mxu1 %v7264_v30 }
 0x161   :  { %1256 = vmatprep.subr.bf16.mxu0 %v7265_v31  ;;  %1297 = vmatprep.subr.bf16.mxu1 %v7266_v32 }
 0x164   :  { %1257 = vmatpush1.bf16.msra.mxu0 %v7267_v33  ;;  %1298 = vmatpush1.bf16.msra.mxu1 %v7268_v34 }
 0x165   :  { %1258 = vmatprep.subr.bf16.mxu0 %v7269_v35  ;;  %1299 = vmatprep.subr.bf16.mxu1 %v7270_v36 }
 0x168   :  { %1259 = vmatpush1.bf16.msra.mxu0 %v7271_v37  ;;  %1300 = vmatpush1.bf16.msra.mxu1 %v7272_v38 }
 0x169   :  { %1260 = vmatprep.subr.bf16.mxu0 %v7273_v39  ;;  %1301 = vmatprep.subr.bf16.mxu1 %v7274_v40 }
 0x16c   :  { %1261 = vmatpush2.bf16.msra.mxu0 %v7275_v41  ;;  %1302 = vmatpush2.bf16.msra.mxu1 %v7276_v42 }
 0x16d   :  { %1262 = vmatprep.subr.bf16.mxu0 %v7277_v43  ;;  %1303 = vmatprep.subr.bf16.mxu1 %v7278_v44 }
 0x170   :  { %1263 = vmatpush2.bf16.msra.mxu0 %v7279_v45  ;;  %1304 = vmatpush2.bf16.msra.mxu1 %v7280_v46 }
 0x171   :  { %1264 = vmatprep.subr.bf16.mxu0 %v7281_v47  ;;  %1305 = vmatprep.subr.bf16.mxu1 %v7282_v48 }
 0x174   :  { %1265 = vmatpush2.bf16.msra.mxu0 %v7283_v49  ;;  %1306 = vmatpush2.bf16.msra.mxu1 %v7284_v50 }
 0x175   :  { %1266 = vmatprep.subr.bf16.mxu0 %v7285_v51  ;;  %1307 = vmatprep.subr.bf16.mxu1 %v7286_v52 }
 0x178   :  { %1267 = vmatpush2.bf16.msra.mxu0 %v7287_v53  ;;  %1308 = vmatpush2.bf16.msra.mxu1 %v7288_v54 }
 0x179   :  { %1268 = vmatprep.subr.bf16.mxu0 %v7289_v55  ;;  %1309 = vmatprep.subr.bf16.mxu1 %v7290_v56 }
 0x17c   :  { %1269 = vmatpush2.bf16.msra.mxu0 %v7291_v57  ;;  %1310 = vmatpush2.bf16.msra.mxu1 %v7292_v58 }
 0x17d   :  { %1270 = vmatprep.subr.bf16.mxu0 %v7293_v3  ;;  %1311 = vmatprep.subr.bf16.mxu1 %v7294_v23 }
 0x180   :  { %1271 = vmatpush2.bf16.msra.mxu0 %v7295_v14  ;;  %1312 = vmatpush2.bf16.msra.mxu1 %v7296_v19 }
 0x181   :  { %1272 = vmatprep.subr.bf16.mxu0 %v7297_v63  ;;  %1313 = vmatprep.subr.bf16.mxu1 %v7298_v60 }
 0x184   :  { %1273 = vmatpush2.bf16.msra.mxu0 %v7299_v25  ;;  %1314 = vmatpush2.bf16.msra.mxu1 %v7300_v61  ;;  %v7318_v61 = vld [vmem:[#allocation57_spill] sm:$0xff] }
 0x185   :  { %1274 = vmatprep.subr.bf16.mxu0 %v7301_v17  ;;  %1315 = vmatprep.subr.bf16.mxu1 %v7302_v62 }
 0x188   :  { %1275 = vmatpush2.bf16.msra.mxu0 %v7303_v11  ;;  %1316 = vmatpush2.bf16.msra.mxu1 %v7304_v15 }
 0x189   :  { %1354 = vmatprep.subr.bf16.mxu0 %v5017_v18  ;;  %1395 = vmatprep.subr.bf16.mxu1 %v7306_v2 }
 0x1eb   :  { %v978_v10 = vpop.f32.mrf.mxu0  ;;  %v1019_v13 = vpop.f32.mrf.mxu1 }
 0x1ec   :  { %v979_v16 = vadd.f32 %v978_v10, %v5026_v21  ;;  %v1020_v18 = vadd.f32 %v1019_v13, %v5036_v5  ;;  %v7313_v10 = vsub.s32 3, %v4283_v6  ;;  %v7315_v13 = vld [vmem:[#allocation58_spill] sm:$0xff]  ;;  %v7316_v5 = vld [vmem:[#allocation56_spill] sm:$0xff] }
 0x1ed   :  { %v980_v20 = vpop.f32.mrf.mxu0  ;;  %v1021_v22 = vpop.f32.mrf.mxu1 }
 0x1ee   :  { %v3384_v24 = vmul.f32 -1.442695, %v979_v16  ;;  %v981_v26 = vadd.f32 %v980_v20, %v5030_v7  ;;  %v5041_v21 = vrot.slane %v277_v59, %v7313_v10  ;;  %v3386_v16 = vmul.f32 -1.442695, %v1020_v18 }
 0x1ef   :  { %v982_v27 = vpop.f32.mrf.mxu0  ;;  %v1023_v28 = vpop.f32.mrf.mxu1 }
 0x1f0   :  { %3678 = vpow2.f32 %v3384_v24  ;;  %v3385_v29 = vmul.f32 -1.442695, %v981_v26  ;;  %7314 = vst [vmem:[#allocation7_spill] sm:$0xff] %v5041_v21  ;;  %v1022_v20 = vadd.f32 %v1021_v22, %v5041_v21 }
 0x1f1   :  { %v983_v30 = vpop.f32.mrf.mxu0  ;;  %v1024_v2 = vpop.f32.mrf.mxu1 }
 0x1f2   :  { %3680 = vpow2.f32 %v3385_v29 }
 0x1f3   :  { %3682 = vpow2.f32 %v3386_v16 }
 0x1fd   :  { %v3679_v15 = vpop.eup %3678 }
 0x1fe   :  { %v1035_v27 = vadd.f32 1.0, %v3679_v15 }
 0x1ff   :  { %v3681_v24 = vpop.eup %3680 }
 0x200   :  { %3684 = vrcp.f32 %v1035_v27  ;;  %v1036_v26 = vadd.f32 1.0, %v3681_v24  ;;  %v3683_v30 = vpop.eup %3682  ;;  %v7317_v27 = vld [vmem:[#allocation59_spill] sm:$0xff] }
 0x201   :  { %3686 = vtanh.f32 %v1022_v20  ;;  %v1037_v21 = vadd.f32 1.0, %v3683_v30 }
 0x202   :  { %3688 = vrcp.f32 %v1036_v26 }
 0x20b   :  { %v1084_v28 = vpop.f32.mrf.mxu0  ;;  %v1125_v29 = vpop.f32.mrf.mxu1 }
 0x20c   :  { %v1136_v2 = vrot.slane %v1084_v28, 7  ;;  %v1152_v12 = vadd.f32 %v1084_v28, %v7315_v13  ;;  %v1138_v30 = vrot.slane %v1125_v29, 7 }
 0x20d   :  { %v3685_v6 = vpop.eup %3684  ;;  %v1086_v59 = vpop.f32.mrf.mxu0 }
 0x20e   :  { %v1127_v10 = vpop.f32.mrf.mxu1  ;;  %v3687_v18 = vpop.eup %3686  ;;  %v1148_v7 = vadd.f32 %v1136_v2, %v7316_v5  ;;  %v3390_v22 = vmul.f32 -1.442695, %v1152_v12  ;;  %v1137_v16 = vrot.slane %v1086_v59, 7  ;;  %v1153_v24 = vadd.f32 %v1086_v59, %v7317_v27 }
 0x20f   :  { %v3689_v15 = vpop.eup %3688  ;;  %v1088_v20 = vpop.f32.mrf.mxu0  ;;  %v1046_v62 = vmul.f32 %v3687_v18, %v3685_v6  ;;  %v1154_v59 = vadd.f32 %v1125_v29, %v4901_v4  ;;  %v7319_v6 = vld [vmem:[#allocation60_spill] sm:$0xff]  ;;  %v1139_v18 = vrot.slane %v1127_v10, 7 }
 0x210   :  { %v1129_v26 = vpop.f32.mrf.mxu1  ;;  %v1045_v11 = vmul.f32 0.0, %v3689_v15  ;;  %v3387_v17 = vmul.f32 -1.442695, %v1148_v7  ;;  %3690 = vpow2.f32 %v3390_v22  ;;  %v1149_v28 = vadd.f32 %v1137_v16, %v7318_v61 }
 0x211   :  { %v1089_v13 = vpop.f32.mrf.mxu0  ;;  %v3391_v2 = vmul.f32 -1.442695, %v1153_v24  ;;  %v1150_v7 = vadd.f32 %v1138_v30, %v7319_v6  ;;  %v3392_v22 = vmul.f32 -1.442695, %v1154_v59 }
 0x212   :  { %v1130_v25 = vpop.f32.mrf.mxu1  ;;  %v5048_v60 = vadd.f32 %v1046_v62, %v1045_v11  ;;  %3692 = vpow2.f32 %v3387_v17  ;;  %v3388_v12 = vmul.f32 -1.442695, %v1149_v28  ;;  %v7320_v62 = vld [vmem:[#allocation61_spill] sm:$0xff] }
 0x213   :  { %3694 = vrcp.f32 %v1037_v21  ;;  %v3389_v15 = vmul.f32 -1.442695, %v1150_v7  ;;  %v1151_v25 = vadd.f32 %v1139_v18, %v4904_v1  ;;  %v1155_v17 = vadd.f32 %v1127_v10, %v7320_v62 }
 0x214   :  { %3696 = vtanh.f32 %v5048_v60 }
 0x215   :  { %3698 = vpow2.f32 %v3388_v12 }
 0x216   :  { %3700 = vpow2.f32 %v3391_v2 }
 0x217   :  { %3702 = vpow2.f32 %v3392_v22 }
 0x218   :  { %3704 = vpow2.f32 %v3389_v15 }
 0x219   :  { %3706 = vtanh.f32 %v1151_v25 }
 0x21a   :  { %3708 = vtanh.f32 %v1155_v17 }
 0x21d   :  { %v3691_v13 = vpop.eup %3690 }
 0x21e   :  { %v1177_v24 = vadd.f32 1.0, %v3691_v13 }
 0x21f   :  { %v3693_v11 = vpop.eup %3692 }
 0x220   :  { %v3695_v21 = vpop.eup %3694  ;;  %v1174_v16 = vadd.f32 1.0, %v3693_v11 }
 0x221   :  { %v3697_v20 = vpop.eup %3696 }
 0x222   :  { %v3699_v26 = vpop.eup %3698  ;;  %v1049_v29 = vmul.f32 %v3697_v20, %v3695_v21  ;;  %3710 = vrcp.f32 %v1174_v16 }
 0x223   :  { %v3701_v28 = vpop.eup %3700  ;;  %v1175_v2 = vadd.f32 1.0, %v3699_v26  ;;  %3712 = vrcp.f32 %v1177_v24  ;;  %v1196_v24 = vrot.slane %v4911_v8, 7 }
 0x224   :  { %v1178_v12 = vadd.f32 1.0, %v3701_v28  ;;  %v1212_v30 = vpack.c.bf16 %v1049_v29, %v1049_v29  ;;  %v3703_v22 = vpop.eup %3702 }
 0x225   :  { %3714 = vrcp.f32 %v1175_v2  ;;  %v3705_v15 = vpop.eup %3704  ;;  %v1179_v26 = vadd.f32 1.0, %v3703_v22  ;;  %v1197_v2 = vrot.slane %v4913_v0, 7 }
 0x226   :  { %3716 = vrcp.f32 %v1178_v12  ;;  %v1222_v10 = vshrl.u32 %v1212_v30, 16  ;;  %v1225_v7 = vshll.u32 %v1212_v30, 16  ;;  %v3707_v11 = vpop.eup %3706  ;;  %v1176_v28 = vadd.f32 1.0, %v3705_v15 }
 0x227   :  { %v3709_v17 = vpop.eup %3708  ;;  %3718 = vrcp.f32 %v1179_v26 }
 0x228   :  { %v1224_v59 = vrot.slane %v1222_v10, 7  ;;  %3720 = vrcp.f32 %v1176_v28 }
 0x22a   :  { %v1227_v18 = vor.u32 %v1225_v7, %v1224_v59 }
 0x22c   :  { %v1238_v13 = vshll.u32 %v1227_v18, 16  ;;  %v1236_v25 = vshrl.u32 %v1227_v18, 16 }
 0x22e   :  { %v1240_v62 = vrot.slane %v1238_v13, 1 }
 0x22f   :  { %v3711_v21 = vpop.eup %3710 }
 0x230   :  { %v1241_v20 = vor.u32 %v1240_v62, %v1236_v25  ;;  %v3713_v16 = vpop.eup %3712  ;;  %v1202_v10 = vmul.f32 %v3711_v21, %v3707_v11 }
 0x231   :  { %v1203_v7 = vmul.f32 %v3713_v16, %v3709_v17 }
 0x232   :  { %v3715_v29 = vpop.eup %3714  ;;  %1276 = vmatprep.mubr.bf16.mxu0 %v1241_v20  ;;  %1317 = vmatprep.mubr.bf16.mxu1 %v1241_v20 }
 0x233   :  { %v3717_v12 = vpop.eup %3716  ;;  %v1200_v30 = vmul.f32 %v3715_v29, %v1196_v24 }
 0x234   :  { %v1201_v59 = vmul.f32 %v3717_v12, %v1197_v2  ;;  %v3719_v8 = vpop.eup %3718 }
 0x235   :  { %v5057_v18 = vadd.f32 %v1202_v10, %v1200_v30  ;;  %v3721_v22 = vpop.eup %3720 }
 0x236   :  { %v5059_v62 = vadd.f32 %v1203_v7, %v1201_v59  ;;  %v5069_v59 = vld [vmem:[%s6791_s2 + $0xe0] ss:$16 sps:$4 sm:$0xff]   ;;  %v5075_v7 = vld [vmem:[%s6791_s2 + $0xe8] ss:$16 sps:$4 sm:$0xff]  }
 0x237   :  { %3722 = vtanh.f32 %v5057_v18 }
 0x238   :  { %3724 = vtanh.f32 %v5059_v62 }
 0x244   :  { %v3723_v0 = vpop.eup %3722 }
 0x245   :  { %v3725_v13 = vpop.eup %3724  ;;  %v1208_v15 = vmul.f32 %v3723_v0, %v3721_v22  ;;  %v5087_v22 = vld [vmem:[%s6791_s2 + $0xcc] ss:$16 sps:$4 sm:$0xff]   ;;  %v5095_v0 = vld [vmem:[%s6791_s2 + $0xc0] ss:$16 sps:$4 sm:$0xff]  }
 0x246   :  { %v1209_v25 = vmul.f32 %v3725_v13, %v3719_v8  ;;  %v5081_v8 = vld [vmem:[%s6791_s2 + $0xc4] ss:$16 sps:$4 sm:$0xff]   ;;  %v5101_v13 = vld [vmem:[%s6791_s2 + $0xc8] ss:$16 sps:$4 sm:$0xff]  }
 0x247   :  { %v1210_v20 = vpack.c.bf16 %v1208_v15, %v1208_v15  ;;  %v5107_v15 = vld [vmem:[%s6791_s2 + $0xa4] ss:$16 sps:$4 sm:$0xff]  }
 0x248   :  { %v1211_v11 = vpack.c.bf16 %v1209_v25, %v1209_v25  ;;  %v5113_v25 = vld [vmem:[%s6791_s2 + $0xac] ss:$16 sps:$4 sm:$0xff]  }
 0x249   :  { %v1215_v21 = vunpack.c.l.b16 %v1210_v20  ;;  %v5119_v20 = vld [vmem:[%s6791_s2 + $0xa0] ss:$16 sps:$4 sm:$0xff]  }
 0x24a   :  { %v1216_v17 = vunpack.c.l.b16 %v1211_v11  ;;  %v5125_v11 = vld [vmem:[%s6791_s2 + $0xa8] ss:$16 sps:$4 sm:$0xff]  }
 0x24b   :  { %v1350_v16 = vrot.slane %v1215_v21, 1 }
 0x24c   :  { %v1217_v24 = vrot.slane %v1216_v17, 7 }
 0x24d   :  { %v5064_v26 = vsel %vm599_vm2, %v1216_v17, %v1350_v16  ;;  %v5137_v17 = vld [vmem:[%s6791_s2 + $0x8c] ss:$16 sps:$4 sm:$0xff]   ;;  %v5143_v16 = vld [vmem:[%s6791_s2 + $0x80] ss:$16 sps:$4 sm:$0xff]  }
 0x24e   :  { %v1219_v29 = vsel %vm1218_vm3, %v1217_v24, %v1215_v21  ;;  %v5131_v21 = vld [vmem:[%s6791_s2 + $0x84] ss:$16 sps:$4 sm:$0xff]   ;;  %v5149_v24 = vld [vmem:[%s6791_s2 + $0x88] ss:$16 sps:$4 sm:$0xff]  }
 0x24f   :  { %v1220_v28 = vpack.c.b16 %v1219_v29, %v1219_v29  ;;  %v5155_v29 = vld [vmem:[%s6791_s2 + $0x64] ss:$16 sps:$4 sm:$0xff]  }
 0x251   :  { %v1231_v2 = vshll.u32 %v1220_v28, 16  ;;  %v1229_v12 = vshrl.u32 %v1220_v28, 16  ;;  %v5161_v28 = vld [vmem:[%s6791_s2 + $0x6c] ss:$16 sps:$4 sm:$0xff]  }
 0x253   :  { %v1233_v30 = vrot.slane %v1231_v2, 1  ;;  %v5167_v2 = vld [vmem:[%s6791_s2 + $0x60] ss:$16 sps:$4 sm:$0xff]  }
 0x254   :  { %7321 = vst [vmem:[#allocation8_spill] sm:$0xff] %v5167_v2 }
 0x255   :  { %v1234_v10 = vor.u32 %v1233_v30, %v1229_v12  ;;  %v5173_v12 = vld [vmem:[%s6791_s2 + $0x68] ss:$16 sps:$4 sm:$0xff]   ;;  %v5179_v30 = vld [vmem:[%s6791_s2 + $0x44] ss:$16 sps:$4 sm:$0xff]  }
 0x256   :  { %7322 = vst [vmem:[#allocation9_spill] sm:$0xff] %v5173_v12  ;;  %7323 = vst [vmem:[#allocation10_spill] sm:$0xff] %v5179_v30 }
 0x257   :  { %1277 = vmatmul.mubr.bf16.vlgmr.msra.gmra.mxu0 %v1234_v10  ;;  %1318 = vmatmul.mubr.bf16.vlgmr.msra.gmra.mxu1 %v1234_v10  ;;  %v5185_v10 = vld [vmem:[%s6791_s2 + $0x4c] ss:$16 sps:$4 sm:$0xff]  }
 0x258   :  { %1355 = vmatpush1.bf16.msra.mxu0 %v5069_v59  ;;  %1396 = vmatpush1.bf16.msra.mxu1 %v5075_v7  ;;  %7324 = vst [vmem:[#allocation11_spill] sm:$0xff] %v5185_v10 }
 0x259   :  { %1356 = vmatprep.subr.bf16.mxu0 %v5081_v8  ;;  %1397 = vmatprep.subr.bf16.mxu1 %v5087_v22 }
 0x25a   :  { %1386 = vmatprep.mubr.bf16.mxu0 %v7251_v9  ;;  %1427 = vmatprep.mubr.bf16.mxu1 %v7251_v9 }
 0x25c   :  { %1357 = vmatpush1.bf16.msra.mxu0 %v5095_v0  ;;  %1398 = vmatpush1.bf16.msra.mxu1 %v5101_v13 }
 0x25d   :  { %1358 = vmatprep.subr.bf16.mxu0 %v5107_v15  ;;  %1399 = vmatprep.subr.bf16.mxu1 %v5113_v25 }
 0x260   :  { %1359 = vmatpush1.bf16.msra.mxu0 %v5119_v20  ;;  %1400 = vmatpush1.bf16.msra.mxu1 %v5125_v11 }
 0x261   :  { %1360 = vmatprep.subr.bf16.mxu0 %v5131_v21  ;;  %1401 = vmatprep.subr.bf16.mxu1 %v5137_v17 }
 0x264   :  { %1361 = vmatpush1.bf16.msra.mxu0 %v5143_v16  ;;  %1402 = vmatpush1.bf16.msra.mxu1 %v5149_v24 }
 0x265   :  { %1362 = vmatprep.subr.bf16.mxu0 %v5155_v29  ;;  %1403 = vmatprep.subr.bf16.mxu1 %v5161_v28 }
 0x268   :  { %1363 = vmatpush1.bf16.msra.mxu0 %v5167_v2  ;;  %1404 = vmatpush1.bf16.msra.mxu1 %v5173_v12  ;;  %v5191_v2 = vld [vmem:[%s6791_s2 + $0x40] ss:$16 sps:$4 sm:$0xff]   ;;  %v5197_v12 = vld [vmem:[%s6791_s2 + $0x48] ss:$16 sps:$4 sm:$0xff]  }
 0x269   :  { %1364 = vmatprep.subr.bf16.mxu0 %v5179_v30  ;;  %1405 = vmatprep.subr.bf16.mxu1 %v5185_v10  ;;  %7325 = vst [vmem:[#allocation12_spill] sm:$0xff] %v5191_v2  ;;  %7326 = vst [vmem:[#allocation13_spill] sm:$0xff] %v5197_v12  ;;  %v5203_v30 = vld [vmem:[%s6791_s2 + $0x24] ss:$16 sps:$4 sm:$0xff]   ;;  %v5209_v10 = vld [vmem:[%s6791_s2 + $0x2c] ss:$16 sps:$4 sm:$0xff]  }
 0x26a   :  { %7327 = vst [vmem:[#allocation14_spill] sm:$0xff] %v5203_v30  ;;  %7328 = vst [vmem:[#allocation15_spill] sm:$0xff] %v5209_v10 }
 0x26c   :  { %1365 = vmatpush1.bf16.msra.mxu0 %v5191_v2  ;;  %1406 = vmatpush1.bf16.msra.mxu1 %v5197_v12  ;;  %v5215_v2 = vld [vmem:[%s6791_s2 + $0x20] ss:$16 sps:$4 sm:$0xff]   ;;  %v5221_v12 = vld [vmem:[%s6791_s2 + $0x28] ss:$16 sps:$4 sm:$0xff]  }
 0x26d   :  { %1366 = vmatprep.subr.bf16.mxu0 %v5203_v30  ;;  %1407 = vmatprep.subr.bf16.mxu1 %v5209_v10  ;;  %7329 = vst [vmem:[#allocation16_spill] sm:$0xff] %v5215_v2  ;;  %7330 = vst [vmem:[#allocation17_spill] sm:$0xff] %v5221_v12  ;;  %v5227_v30 = vld [vmem:[%s6791_s2 + $0x4] ss:$16 sps:$4 sm:$0xff]   ;;  %v5233_v10 = vld [vmem:[%s6791_s2 + $0xc] ss:$16 sps:$4 sm:$0xff]  }
 0x26e   :  { %7331 = vst [vmem:[#allocation18_spill] sm:$0xff] %v5227_v30  ;;  %7332 = vst [vmem:[#allocation19_spill] sm:$0xff] %v5233_v10 }
 0x270   :  { %1367 = vmatpush1.bf16.msra.mxu0 %v5215_v2  ;;  %1408 = vmatpush1.bf16.msra.mxu1 %v5221_v12  ;;  %v5239_v2 = vld [vmem:[%s6791_s2] ss:$16 sps:$4 sm:$0xff]   ;;  %v5245_v12 = vld [vmem:[%s6791_s2 + $0x8] ss:$16 sps:$4 sm:$0xff]  }
 0x271   :  { %1368 = vmatprep.subr.bf16.mxu0 %v5227_v30  ;;  %1409 = vmatprep.subr.bf16.mxu1 %v5233_v10  ;;  %7333 = vst [vmem:[#allocation20_spill] sm:$0xff] %v5239_v2  ;;  %7334 = vst [vmem:[#allocation21_spill] sm:$0xff] %v5245_v12  ;;  %v1352_v30 = vpack.c.b16 %v5064_v26, %v5064_v26  ;;  %v5253_v10 = vld [vmem:[%s6794_s4 + $0xe4] ss:$16 sps:$4 sm:$0xff]   ;;  %v5265_v26 = vld [vmem:[%s6794_s4 + $0xe0] ss:$16 sps:$4 sm:$0xff]  }
 0x272   :  { %7335 = vst [vmem:[#allocation22_spill] sm:$0xff] %v5253_v10  ;;  %7337 = vst [vmem:[#allocation24_spill] sm:$0xff] %v5265_v26 }
 0x274   :  { %1369 = vmatpush1.bf16.msra.mxu0 %v5239_v2  ;;  %1410 = vmatpush1.bf16.msra.mxu1 %v5245_v12  ;;  %v5259_v2 = vld [vmem:[%s6794_s4 + $0xec] ss:$16 sps:$4 sm:$0xff]  }
 0x275   :  { %1535 = vmatprep.subr.bf16.mxu0 %v5253_v10  ;;  %7336 = vst [vmem:[#allocation23_spill] sm:$0xff] %v5259_v2  ;;  %1576 = vmatprep.subr.bf16.mxu1 %v5259_v2  ;;  %v5271_v10 = vld [vmem:[%s6794_s4 + $0xe8] ss:$16 sps:$4 sm:$0xff]   ;;  %v5277_v2 = vld [vmem:[%s6794_s4 + $0xc4] ss:$16 sps:$4 sm:$0xff]  }
 0x276   :  { %7338 = vst [vmem:[#allocation25_spill] sm:$0xff] %v5271_v10  ;;  %7339 = vst [vmem:[#allocation26_spill] sm:$0xff] %v5277_v2 }
 0x277   :  { %1387 = vmatmul.mubr.bf16.vlgmr.msra.gmra.mxu0 %v1352_v30  ;;  %1428 = vmatmul.mubr.bf16.vlgmr.msra.gmra.mxu1 %v1352_v30  ;;  %v5283_v30 = vld [vmem:[%s6794_s4 + $0xcc] ss:$16 sps:$4 sm:$0xff]  }
 0x278   :  { %1536 = vmatpush1.bf16.msra.mxu0 %v5265_v26  ;;  %1577 = vmatpush1.bf16.msra.mxu1 %v5271_v10  ;;  %7340 = vst [vmem:[#allocation27_spill] sm:$0xff] %v5283_v30  ;;  %v5289_v26 = vld [vmem:[%s6794_s4 + $0xc0] ss:$16 sps:$4 sm:$0xff]   ;;  %v5295_v10 = vld [vmem:[%s6794_s4 + $0xc8] ss:$16 sps:$4 sm:$0xff]  }
 0x279   :  { %1537 = vmatprep.subr.bf16.mxu0 %v5277_v2  ;;  %1578 = vmatprep.subr.bf16.mxu1 %v5283_v30  ;;  %7341 = vst [vmem:[#allocation28_spill] sm:$0xff] %v5289_v26  ;;  %7342 = vst [vmem:[#allocation29_spill] sm:$0xff] %v5295_v10  ;;  %v5301_v2 = vld [vmem:[%s6794_s4 + $0xa4] ss:$16 sps:$4 sm:$0xff]   ;;  %v5307_v30 = vld [vmem:[%s6794_s4 + $0xac] ss:$16 sps:$4 sm:$0xff]  }
 0x27a   :  { %7343 = vst [vmem:[#allocation30_spill] sm:$0xff] %v5301_v2  ;;  %7344 = vst [vmem:[#allocation31_spill] sm:$0xff] %v5307_v30 }
 0x27c   :  { %1538 = vmatpush1.bf16.msra.mxu0 %v5289_v26  ;;  %1579 = vmatpush1.bf16.msra.mxu1 %v5295_v10  ;;  %v5313_v26 = vld [vmem:[%s6794_s4 + $0xa0] ss:$16 sps:$4 sm:$0xff]   ;;  %v5319_v10 = vld [vmem:[%s6794_s4 + $0xa8] ss:$16 sps:$4 sm:$0xff]  }
 0x27d   :  { %1539 = vmatprep.subr.bf16.mxu0 %v5301_v2  ;;  %1580 = vmatprep.subr.bf16.mxu1 %v5307_v30  ;;  %7345 = vst [vmem:[#allocation32_spill] sm:$0xff] %v5313_v26  ;;  %7346 = vst [vmem:[#allocation33_spill] sm:$0xff] %v5319_v10  ;;  %v5325_v2 = vld [vmem:[%s6794_s4 + $0x84] ss:$16 sps:$4 sm:$0xff]   ;;  %v5331_v30 = vld [vmem:[%s6794_s4 + $0x8c] ss:$16 sps:$4 sm:$0xff]  }
 0x27e   :  { %7347 = vst [vmem:[#allocation34_spill] sm:$0xff] %v5325_v2  ;;  %7348 = vst [vmem:[#allocation35_spill] sm:$0xff] %v5331_v30 }
 0x280   :  { %1540 = vmatpush1.bf16.msra.mxu0 %v5313_v26  ;;  %1581 = vmatpush1.bf16.msra.mxu1 %v5319_v10  ;;  %v5337_v26 = vld [vmem:[%s6794_s4 + $0x80] ss:$16 sps:$4 sm:$0xff]   ;;  %v5343_v10 = vld [vmem:[%s6794_s4 + $0x88] ss:$16 sps:$4 sm:$0xff]  }
 0x281   :  { %1541 = vmatprep.subr.bf16.mxu0 %v5325_v2  ;;  %1582 = vmatprep.subr.bf16.mxu1 %v5331_v30  ;;  %7349 = vst [vmem:[#allocation36_spill] sm:$0xff] %v5337_v26  ;;  %7350 = vst [vmem:[#allocation37_spill] sm:$0xff] %v5343_v10  ;;  %v5349_v2 = vld [vmem:[%s6794_s4 + $0x64] ss:$16 sps:$4 sm:$0xff]   ;;  %v5355_v30 = vld [vmem:[%s6794_s4 + $0x6c] ss:$16 sps:$4 sm:$0xff]  }
 0x282   :  { %7351 = vst [vmem:[#allocation38_spill] sm:$0xff] %v5349_v2  ;;  %7352 = vst [vmem:[#allocation39_spill] sm:$0xff] %v5355_v30 }
 0x284   :  { %1542 = vmatpush1.bf16.msra.mxu0 %v5337_v26  ;;  %1583 = vmatpush1.bf16.msra.mxu1 %v5343_v10  ;;  %v5361_v26 = vld [vmem:[%s6794_s4 + $0x60] ss:$16 sps:$4 sm:$0xff]   ;;  %v5367_v10 = vld [vmem:[%s6794_s4 + $0x68] ss:$16 sps:$4 sm:$0xff]  }
 0x285   :  { %1543 = vmatprep.subr.bf16.mxu0 %v5349_v2  ;;  %1584 = vmatprep.subr.bf16.mxu1 %v5355_v30  ;;  %7353 = vst [vmem:[#allocation40_spill] sm:$0xff] %v5361_v26  ;;  %7354 = vst [vmem:[#allocation41_spill] sm:$0xff] %v5367_v10  ;;  %v5373_v2 = vld [vmem:[%s6794_s4 + $0x44] ss:$16 sps:$4 sm:$0xff]   ;;  %v5379_v30 = vld [vmem:[%s6794_s4 + $0x4c] ss:$16 sps:$4 sm:$0xff]  }
 0x286   :  { %7355 = vst [vmem:[#allocation42_spill] sm:$0xff] %v5373_v2  ;;  %7356 = vst [vmem:[#allocation43_spill] sm:$0xff] %v5379_v30 }
 0x288   :  { %1544 = vmatpush1.bf16.msra.mxu0 %v5361_v26  ;;  %1585 = vmatpush1.bf16.msra.mxu1 %v5367_v10  ;;  %v5385_v26 = vld [vmem:[%s6794_s4 + $0x40] ss:$16 sps:$4 sm:$0xff]   ;;  %v5391_v10 = vld [vmem:[%s6794_s4 + $0x48] ss:$16 sps:$4 sm:$0xff]  }
 0x289   :  { %1545 = vmatprep.subr.bf16.mxu0 %v5373_v2  ;;  %1586 = vmatprep.subr.bf16.mxu1 %v5379_v30  ;;  %7357 = vst [vmem:[#allocation44_spill] sm:$0xff] %v5385_v26  ;;  %7358 = vst [vmem:[#allocation45_spill] sm:$0xff] %v5391_v10 }
 0x28c   :  { %1546 = vmatpush1.bf16.msra.mxu0 %v5385_v26  ;;  %1587 = vmatpush1.bf16.msra.mxu1 %v5391_v10 }
 0x28d   :  { %1547 = vmatprep.subr.bf16.mxu0 %v7265_v31  ;;  %1588 = vmatprep.subr.bf16.mxu1 %v7266_v32  ;;  %v7359_v31 = vld [vmem:[#allocation49_spill] sm:$0xff]  ;;  %v7360_v32 = vld [vmem:[#allocation50_spill] sm:$0xff] }
 0x290   :  { %1548 = vmatpush1.bf16.msra.mxu0 %v7267_v33  ;;  %1589 = vmatpush1.bf16.msra.mxu1 %v7268_v34  ;;  %v7361_v33 = vld [vmem:[#allocation51_spill] sm:$0xff]  ;;  %v7362_v34 = vld [vmem:[#allocation52_spill] sm:$0xff] }
 0x291   :  { %1549 = vmatprep.subr.bf16.mxu0 %v7269_v35  ;;  %1590 = vmatprep.subr.bf16.mxu1 %v7270_v36  ;;  %v7363_v35 = vld [vmem:[#allocation53_spill] sm:$0xff]  ;;  %v7364_v36 = vld [vmem:[#allocation54_spill] sm:$0xff] }
 0x294   :  { %1550 = vmatpush1.bf16.msra.mxu0 %v7271_v37  ;;  %1591 = vmatpush1.bf16.msra.mxu1 %v7272_v38  ;;  %v7365_v37 = vld [vmem:[#allocation55_spill] sm:$0xff] }
 0x295   :  { %1551 = vmatprep.subr.bf16.mxu0 %v7273_v39  ;;  %1592 = vmatprep.subr.bf16.mxu1 %v7274_v40  ;;  %v7366_v38 = vld [vmem:[#allocation3_spill] sm:$0xff] }
 0x296   :  { %v5438_v39 = vld [vmem:[%s6791_s2 + $0xec] ss:$16 sps:$4 sm:$0xff]  }
 0x297   :  { %7367 = vst [vmem:[#allocation46_spill] sm:$0xff] %v5438_v39 }
 0x298   :  { %1552 = vmatpush2.bf16.msra.mxu0 %v7275_v41  ;;  %1593 = vmatpush2.bf16.msra.mxu1 %v7276_v42  ;;  %v7368_v42 = vld [vmem:[#allocation4_spill] sm:$0xff] }
 0x299   :  { %1553 = vmatprep.subr.bf16.mxu0 %v7277_v43  ;;  %1594 = vmatprep.subr.bf16.mxu1 %v7278_v44 }
 0x29c   :  { %1554 = vmatpush2.bf16.msra.mxu0 %v7279_v45  ;;  %1595 = vmatpush2.bf16.msra.mxu1 %v7280_v46 }
 0x29d   :  { %1555 = vmatprep.subr.bf16.mxu0 %v7281_v47  ;;  %1596 = vmatprep.subr.bf16.mxu1 %v7282_v48  ;;  %v7369_v47 = vld [vmem:[#allocation5_spill] sm:$0xff] }
 0x2a0   :  { %1556 = vmatpush2.bf16.msra.mxu0 %v7283_v49  ;;  %1597 = vmatpush2.bf16.msra.mxu1 %v7284_v50 }
 0x2a1   :  { %1557 = vmatprep.subr.bf16.mxu0 %v7285_v51  ;;  %1598 = vmatprep.subr.bf16.mxu1 %v7286_v52 }
 0x2a4   :  { %1558 = vmatpush2.bf16.msra.mxu0 %v7287_v53  ;;  %1599 = vmatpush2.bf16.msra.mxu1 %v7288_v54  ;;  %v7370_v54 = vld [vmem:[#allocation6_spill] sm:$0xff] }
 0x2a5   :  { %1559 = vmatprep.subr.bf16.mxu0 %v7289_v55  ;;  %1600 = vmatprep.subr.bf16.mxu1 %v7290_v56 }
 0x2a8   :  { %1560 = vmatpush2.bf16.msra.mxu0 %v7291_v57  ;;  %1601 = vmatpush2.bf16.msra.mxu1 %v7292_v58  ;;  %v7371_v58 = vld [vmem:[#allocation7_spill] sm:$0xff] }
 0x2a9   :  { %1561 = vmatprep.subr.bf16.mxu0 %v7293_v3  ;;  %1602 = vmatprep.subr.bf16.mxu1 %v7294_v23 }
 0x2ac   :  { %1562 = vmatpush2.bf16.msra.mxu0 %v7295_v14  ;;  %1603 = vmatpush2.bf16.msra.mxu1 %v7296_v19 }
 0x2ad   :  { %1563 = vmatprep.subr.bf16.mxu0 %v7297_v63  ;;  %1604 = vmatprep.subr.bf16.mxu1 %v7359_v31 }
 0x2b0   :  { %1564 = vmatpush2.bf16.msra.mxu0 %v7360_v32  ;;  %1605 = vmatpush2.bf16.msra.mxu1 %v7361_v33 }
 0x2b1   :  { %1565 = vmatprep.subr.bf16.mxu0 %v7362_v34  ;;  %1606 = vmatprep.subr.bf16.mxu1 %v7363_v35 }
 0x2b4   :  { %1566 = vmatpush2.bf16.msra.mxu0 %v7364_v36  ;;  %1607 = vmatpush2.bf16.msra.mxu1 %v7365_v37 }
 0x2b5   :  { %1646 = vmatprep.subr.bf16.mxu0 %v7366_v38  ;;  %1687 = vmatprep.subr.bf16.mxu1 %v5438_v39 }
 0x317   :  { %v1278_v40 = vpop.f32.mrf.mxu0  ;;  %v1319_v41 = vpop.f32.mrf.mxu1 }
 0x318   :  { %v1279_v43 = vadd.f32 %v1278_v40, %v7368_v42  ;;  %v1320_v55 = vadd.f32 %v1319_v41, %v7370_v54 }
 0x319   :  { %v1280_v44 = vpop.f32.mrf.mxu0  ;;  %v1321_v45 = vpop.f32.mrf.mxu1 }
 0x31a   :  { %v3393_v46 = vmul.f32 -1.442695, %v1279_v43  ;;  %v1281_v48 = vadd.f32 %v1280_v44, %v7369_v47  ;;  %v3395_v56 = vmul.f32 -1.442695, %v1320_v55  ;;  %v1322_v3 = vadd.f32 %v1321_v45, %v7371_v58  ;;  %v7372_v44 = vld [vmem:[#allocation58_spill] sm:$0xff] }
 0x31b   :  { %v1282_v49 = vpop.f32.mrf.mxu0  ;;  %v1323_v50 = vpop.f32.mrf.mxu1 }
 0x31c   :  { %3726 = vpow2.f32 %v3393_v46  ;;  %v3394_v51 = vmul.f32 -1.442695, %v1281_v48 }
 0x31d   :  { %v1283_v52 = vpop.f32.mrf.mxu0  ;;  %v1324_v53 = vpop.f32.mrf.mxu1 }
 0x31e   :  { %3728 = vpow2.f32 %v3394_v51 }
 0x31f   :  { %3730 = vpow2.f32 %v3395_v56 }
 0x329   :  { %v3727_v57 = vpop.eup %3726 }
 0x32a   :  { %v1335_v23 = vadd.f32 1.0, %v3727_v57 }
 0x32b   :  { %v3729_v14 = vpop.eup %3728 }
 0x32c   :  { %3732 = vrcp.f32 %v1335_v23  ;;  %v1336_v19 = vadd.f32 1.0, %v3729_v14  ;;  %v3731_v63 = vpop.eup %3730 }
 0x32d   :  { %3734 = vtanh.f32 %v1322_v3  ;;  %v1337_v36 = vadd.f32 1.0, %v3731_v63 }
 0x32e   :  { %3736 = vrcp.f32 %v1336_v19 }
 0x32f   :  { %3738 = vrcp.f32 %v1337_v36 }
 0x337   :  { %v1388_v31 = vpop.f32.mrf.mxu0  ;;  %v1429_v32 = vpop.f32.mrf.mxu1 }
 0x338   :  { %v1440_v33 = vrot.slane %v1388_v31, 6  ;;  %v1444_v34 = vrot.slane %v1388_v31, 7 }
 0x339   :  { %v3733_v35 = vpop.eup %3732  ;;  %v1390_v37 = vpop.f32.mrf.mxu0 }
 0x33a   :  { %v1431_v40 = vpop.f32.mrf.mxu1  ;;  %v3735_v41 = vpop.eup %3734  ;;  %v1456_v43 = vadd.f32 %v1440_v33, %v7316_v5  ;;  %v1460_v45 = vadd.f32 %v1444_v34, %v7372_v44  ;;  %v1441_v48 = vrot.slane %v1390_v37, 6  ;;  %v1445_v49 = vrot.slane %v1390_v37, 7 }
 0x33b   :  { %v3737_v46 = vpop.eup %3736  ;;  %v1392_v50 = vpop.f32.mrf.mxu0  ;;  %v1346_v53 = vmul.f32 %v3735_v41, %v3733_v35  ;;  %v1442_v33 = vrot.slane %v1429_v32, 6  ;;  %v1443_v36 = vrot.slane %v1431_v40, 6  ;;  %v1447_v37 = vrot.slane %v1431_v40, 7 }
 0x33c   :  { %v1433_v51 = vpop.f32.mrf.mxu1  ;;  %v1345_v52 = vmul.f32 %v3737_v46, %v5048_v60  ;;  %v3396_v55 = vmul.f32 -1.442695, %v1456_v43  ;;  %v3399_v56 = vmul.f32 -1.442695, %v1460_v45  ;;  %v1457_v57 = vadd.f32 %v1441_v48, %v7318_v61  ;;  %v3739_v43 = vpop.eup %3738  ;;  %v7373_v50 = vld [vmem:[#allocation61_spill] sm:$0xff] }
 0x33d   :  { %v1461_v3 = vadd.f32 %v1445_v49, %v7317_v27  ;;  %v1393_v23 = vpop.f32.mrf.mxu0  ;;  %v1446_v60 = vrot.slane %v1429_v32, 7  ;;  %v1458_v34 = vadd.f32 %v1442_v33, %v7319_v6  ;;  %v1459_v48 = vadd.f32 %v1443_v36, %v4904_v1 }
 0x33e   :  { %v1434_v14 = vpop.f32.mrf.mxu1  ;;  %v5450_v19 = vadd.f32 %v1346_v53, %v1345_v52  ;;  %3740 = vpow2.f32 %v3396_v55  ;;  %v3397_v63 = vmul.f32 -1.442695, %v1457_v57  ;;  %v1463_v51 = vadd.f32 %v1447_v37, %v7373_v50 }
 0x33f   :  { %3742 = vpow2.f32 %v3399_v56  ;;  %v3400_v31 = vmul.f32 -1.442695, %v1461_v3  ;;  %v1462_v35 = vadd.f32 %v1446_v60, %v4901_v4  ;;  %v3398_v41 = vmul.f32 -1.442695, %v1458_v34 }
 0x340   :  { %3744 = vtanh.f32 %v5450_v19  ;;  %v1504_v37 = vrot.slane %v5057_v18, 7 }
 0x341   :  { %3746 = vpow2.f32 %v3397_v63  ;;  %v3401_v45 = vmul.f32 -1.442695, %v1462_v35 }
 0x342   :  { %3748 = vpow2.f32 %v3400_v31 }
 0x343   :  { %3750 = vpow2.f32 %v3398_v41 }
 0x344   :  { %3752 = vpow2.f32 %v3401_v45  ;;  %v1505_v45 = vrot.slane %v5059_v62, 7 }
 0x345   :  { %3754 = vtanh.f32 %v1459_v48 }
 0x346   :  { %3756 = vtanh.f32 %v1463_v51 }
 0x34b   :  { %v3741_v46 = vpop.eup %3740 }
 0x34c   :  { %v3743_v49 = vpop.eup %3742  ;;  %v1482_v53 = vadd.f32 1.0, %v3741_v46 }
 0x34d   :  { %v3745_v52 = vpop.eup %3744  ;;  %v1485_v32 = vadd.f32 1.0, %v3743_v49 }
 0x34e   :  { %v1349_v55 = vmul.f32 %v3745_v52, %v3739_v43  ;;  %v3747_v56 = vpop.eup %3746  ;;  %3758 = vrcp.f32 %v1482_v53 }
 0x34f   :  { %v3749_v40 = vpop.eup %3748  ;;  %v1483_v3 = vadd.f32 1.0, %v3747_v56  ;;  %3760 = vrcp.f32 %v1485_v32 }
 0x350   :  { %v1520_v57 = vpack.c.bf16 %v1349_v55, %v1349_v55  ;;  %v1486_v23 = vadd.f32 1.0, %v3749_v40  ;;  %v3751_v31 = vpop.eup %3750 }
 0x351   :  { %3762 = vrcp.f32 %v1483_v3  ;;  %v3753_v33 = vpop.eup %3752  ;;  %v1484_v41 = vadd.f32 1.0, %v3751_v31 }
 0x352   :  { %v1530_v14 = vrot.slane %v1520_v57, 7  ;;  %3764 = vrcp.f32 %v1486_v23  ;;  %v3755_v60 = vpop.eup %3754  ;;  %v1487_v46 = vadd.f32 1.0, %v3753_v33 }
 0x353   :  { %v3757_v34 = vpop.eup %3756  ;;  %3766 = vrcp.f32 %v1484_v41 }
 0x354   :  { %v1532_v63 = vrot.slane %v1530_v14, 1  ;;  %3768 = vrcp.f32 %v1487_v46  ;;  %v7376_v46 = vld [vmem:[#allocation10_spill] sm:$0xff] }
 0x356   :  { %1567 = vmatprep.mubr.bf16.mxu0 %v1532_v63  ;;  %1608 = vmatprep.mubr.bf16.mxu1 %v1532_v63 }
 0x35b   :  { %v3759_v35 = vpop.eup %3758 }
 0x35c   :  { %v3761_v36 = vpop.eup %3760  ;;  %v1510_v51 = vmul.f32 %v3759_v35, %v3755_v60 }
 0x35d   :  { %v1511_v53 = vmul.f32 %v3761_v36, %v3757_v34 }
 0x35e   :  { %v3763_v43 = vpop.eup %3762 }
 0x35f   :  { %v3765_v48 = vpop.eup %3764  ;;  %v1508_v49 = vmul.f32 %v3763_v43, %v1504_v37  ;;  %v7374_v43 = vld [vmem:[#allocation8_spill] sm:$0xff] }
 0x360   :  { %v1509_v52 = vmul.f32 %v3765_v48, %v1505_v45  ;;  %v3767_v18 = vpop.eup %3766  ;;  %v7375_v45 = vld [vmem:[#allocation9_spill] sm:$0xff]  ;;  %v7377_v48 = vld [vmem:[#allocation11_spill] sm:$0xff] }
 0x361   :  { %v5459_v32 = vadd.f32 %v1510_v51, %v1508_v49  ;;  %v3769_v56 = vpop.eup %3768  ;;  %v7378_v49 = vld [vmem:[#allocation12_spill] sm:$0xff]  ;;  %v7379_v51 = vld [vmem:[#allocation13_spill] sm:$0xff] }
 0x362   :  { %v5461_v55 = vadd.f32 %v1511_v53, %v1509_v52  ;;  %v7380_v52 = vld [vmem:[#allocation14_spill] sm:$0xff]  ;;  %v7381_v53 = vld [vmem:[#allocation15_spill] sm:$0xff] }
 0x363   :  { %3770 = vtanh.f32 %v5459_v32 }
 0x364   :  { %3772 = vtanh.f32 %v5461_v55 }
 0x370   :  { %v3771_v57 = vpop.eup %3770 }
 0x371   :  { %v3773_v62 = vpop.eup %3772  ;;  %v1516_v40 = vmul.f32 %v3771_v57, %v3767_v18  ;;  %v7382_v18 = vld [vmem:[#allocation16_spill] sm:$0xff]  ;;  %v7384_v57 = vld [vmem:[#allocation18_spill] sm:$0xff] }
 0x372   :  { %v1517_v3 = vmul.f32 %v3773_v62, %v3769_v56  ;;  %v7383_v56 = vld [vmem:[#allocation17_spill] sm:$0xff]  ;;  %v7385_v62 = vld [vmem:[#allocation19_spill] sm:$0xff] }
 0x373   :  { %v1518_v23 = vpack.c.bf16 %v1516_v40, %v1516_v40  ;;  %v7386_v40 = vld [vmem:[#allocation20_spill] sm:$0xff] }
 0x374   :  { %v1519_v14 = vpack.c.bf16 %v1517_v3, %v1517_v3 }
 0x375   :  { %v1523_v63 = vunpack.c.l.b16 %v1518_v23  ;;  %v7387_v23 = vld [vmem:[#allocation22_spill] sm:$0xff] }
 0x376   :  { %v1524_v31 = vunpack.c.l.b16 %v1519_v14  ;;  %v7388_v14 = vld [vmem:[#allocation23_spill] sm:$0xff] }
 0x377   :  { %v1641_v33 = vrot.slane %v1523_v63, 2 }
 0x378   :  { %v1525_v60 = vrot.slane %v1524_v31, 7  ;;  %v1642_v34 = vrot.slane %v1524_v31, 1  ;;  %v7390_v31 = vld [vmem:[#allocation25_spill] sm:$0xff] }
 0x37a   :  { %v1527_v35 = vsel %vm1526_vm4, %v1525_v60, %v1523_v63  ;;  %v1643_v36 = vsel %vm599_vm2, %v1642_v34, %v1641_v33  ;;  %v7389_v63 = vld [vmem:[#allocation24_spill] sm:$0xff]  ;;  %v7391_v33 = vld [vmem:[#allocation26_spill] sm:$0xff]  ;;  %v7392_v60 = vld [vmem:[#allocation27_spill] sm:$0xff] }
 0x37b   :  { %v1528_v37 = vpack.c.b16 %v1527_v35, %v1527_v35  ;;  %v1644_v3 = vpack.c.b16 %v1643_v36, %v1643_v36  ;;  %v7393_v34 = vld [vmem:[#allocation28_spill] sm:$0xff]  ;;  %v7394_v35 = vld [vmem:[#allocation29_spill] sm:$0xff]  ;;  %v7396_v36 = vld [vmem:[#allocation31_spill] sm:$0xff] }
 0x37d   :  { %v1531_v41 = vrot.slane %v1528_v37, 1  ;;  %v7395_v37 = vld [vmem:[#allocation30_spill] sm:$0xff] }
 0x37f   :  { %1568 = vmatmul.mubr.bf16.vlgmr.msra.gmra.mxu0 %v1531_v41  ;;  %1609 = vmatmul.mubr.bf16.vlgmr.msra.gmra.mxu1 %v1531_v41  ;;  %v7397_v41 = vld [vmem:[#allocation32_spill] sm:$0xff] }
 0x380   :  { %1647 = vmatpush1.bf16.msra.mxu0 %v5069_v59  ;;  %1688 = vmatpush1.bf16.msra.mxu1 %v5075_v7 }
 0x381   :  { %1648 = vmatprep.subr.bf16.mxu0 %v5081_v8  ;;  %1689 = vmatprep.subr.bf16.mxu1 %v5087_v22 }
 0x382   :  { %1678 = vmatprep.mubr.bf16.mxu0 %v7251_v9  ;;  %1719 = vmatprep.mubr.bf16.mxu1 %v7251_v9 }
 0x384   :  { %1649 = vmatpush1.bf16.msra.mxu0 %v5095_v0  ;;  %1690 = vmatpush1.bf16.msra.mxu1 %v5101_v13 }
 0x385   :  { %1650 = vmatprep.subr.bf16.mxu0 %v5107_v15  ;;  %1691 = vmatprep.subr.bf16.mxu1 %v5113_v25 }
 0x388   :  { %1651 = vmatpush1.bf16.msra.mxu0 %v5119_v20  ;;  %1692 = vmatpush1.bf16.msra.mxu1 %v5125_v11 }
 0x389   :  { %1652 = vmatprep.subr.bf16.mxu0 %v5131_v21  ;;  %1693 = vmatprep.subr.bf16.mxu1 %v5137_v17 }
 0x38c   :  { %1653 = vmatpush1.bf16.msra.mxu0 %v5143_v16  ;;  %1694 = vmatpush1.bf16.msra.mxu1 %v5149_v24 }
 0x38d   :  { %1654 = vmatprep.subr.bf16.mxu0 %v5155_v29  ;;  %1695 = vmatprep.subr.bf16.mxu1 %v5161_v28 }
 0x390   :  { %1655 = vmatpush1.bf16.msra.mxu0 %v7374_v43  ;;  %1696 = vmatpush1.bf16.msra.mxu1 %v7375_v45 }
 0x391   :  { %1656 = vmatprep.subr.bf16.mxu0 %v7376_v46  ;;  %1697 = vmatprep.subr.bf16.mxu1 %v7377_v48 }
 0x394   :  { %1657 = vmatpush1.bf16.msra.mxu0 %v7378_v49  ;;  %1698 = vmatpush1.bf16.msra.mxu1 %v7379_v51 }
 0x395   :  { %1658 = vmatprep.subr.bf16.mxu0 %v7380_v52  ;;  %1699 = vmatprep.subr.bf16.mxu1 %v7381_v53 }
 0x398   :  { %1659 = vmatpush1.bf16.msra.mxu0 %v7382_v18  ;;  %1700 = vmatpush1.bf16.msra.mxu1 %v7383_v56 }
 0x399   :  { %1660 = vmatprep.subr.bf16.mxu0 %v7384_v57  ;;  %1701 = vmatprep.subr.bf16.mxu1 %v7385_v62 }
 0x39c   :  { %1661 = vmatpush1.bf16.msra.mxu0 %v7386_v40  ;;  %1702 = vmatpush1.bf16.msra.mxu1 %v5245_v12 }
 0x39d   :  { %1847 = vmatprep.subr.bf16.mxu0 %v7387_v23  ;;  %1888 = vmatprep.subr.bf16.mxu1 %v7388_v14  ;;  %v7398_v14 = vld [vmem:[#allocation33_spill] sm:$0xff] }
 0x39f   :  { %1679 = vmatmul.mubr.bf16.vlgmr.msra.gmra.mxu0 %v1644_v3  ;;  %1720 = vmatmul.mubr.bf16.vlgmr.msra.gmra.mxu1 %v1644_v3  ;;  %v7399_v3 = vld [vmem:[#allocation34_spill] sm:$0xff] }
 0x3a0   :  { %1848 = vmatpush1.bf16.msra.mxu0 %v7389_v63  ;;  %1889 = vmatpush1.bf16.msra.mxu1 %v7390_v31  ;;  %v7400_v63 = vld [vmem:[#allocation35_spill] sm:$0xff]  ;;  %v7401_v31 = vld [vmem:[#allocation36_spill] sm:$0xff] }
 0x3a1   :  { %1849 = vmatprep.subr.bf16.mxu0 %v7391_v33  ;;  %1890 = vmatprep.subr.bf16.mxu1 %v7392_v60  ;;  %v7402_v33 = vld [vmem:[#allocation37_spill] sm:$0xff]  ;;  %v7403_v60 = vld [vmem:[#allocation38_spill] sm:$0xff] }
 0x3a4   :  { %1850 = vmatpush1.bf16.msra.mxu0 %v7393_v34  ;;  %1891 = vmatpush1.bf16.msra.mxu1 %v7394_v35  ;;  %v7404_v34 = vld [vmem:[#allocation39_spill] sm:$0xff]  ;;  %v7405_v35 = vld [vmem:[#allocation40_spill] sm:$0xff] }
 0x3a5   :  { %1851 = vmatprep.subr.bf16.mxu0 %v7395_v37  ;;  %1892 = vmatprep.subr.bf16.mxu1 %v7396_v36  ;;  %v7406_v37 = vld [vmem:[#allocation41_spill] sm:$0xff] }
 0x3a8   :  { %1852 = vmatpush1.bf16.msra.mxu0 %v7397_v41  ;;  %1893 = vmatpush1.bf16.msra.mxu1 %v7398_v14 }
 0x3a9   :  { %1853 = vmatprep.subr.bf16.mxu0 %v7399_v3  ;;  %1894 = vmatprep.subr.bf16.mxu1 %v7400_v63 }
 0x3ac   :  { %1854 = vmatpush1.bf16.msra.mxu0 %v7401_v31  ;;  %1895 = vmatpush1.bf16.msra.mxu1 %v7402_v33  ;;  %v5525_v33 = vld [vmem:[%s6794_s4 + $0x24] ss:$16 sps:$4 sm:$0xff]  }
 0x3ad   :  { %1855 = vmatprep.subr.bf16.mxu0 %v7403_v60  ;;  %1896 = vmatprep.subr.bf16.mxu1 %v7404_v34  ;;  %7407 = vst [vmem:[#allocation47_spill] sm:$0xff] %v5525_v33 }
 0x3b0   :  { %1856 = vmatpush1.bf16.msra.mxu0 %v7405_v35  ;;  %1897 = vmatpush1.bf16.msra.mxu1 %v7406_v37  ;;  %v5531_v35 = vld [vmem:[%s6794_s4 + $0x2c] ss:$16 sps:$4 sm:$0xff]  }
 0x3b1   :  { %1857 = vmatprep.subr.bf16.mxu0 %v5373_v2  ;;  %1898 = vmatprep.subr.bf16.mxu1 %v5379_v30  ;;  %7408 = vst [vmem:[#allocation48_spill] sm:$0xff] %v5531_v35 }
 0x3b4   :  { %1858 = vmatpush1.bf16.msra.mxu0 %v5385_v26  ;;  %1899 = vmatpush1.bf16.msra.mxu1 %v5391_v10  ;;  %v5537_v26 = vld [vmem:[%s6794_s4 + $0x20] ss:$16 sps:$4 sm:$0xff]   ;;  %v5543_v10 = vld [vmem:[%s6794_s4 + $0x28] ss:$16 sps:$4 sm:$0xff]  }
 0x3b5   :  { %1859 = vmatprep.subr.bf16.mxu0 %v5525_v33  ;;  %1900 = vmatprep.subr.bf16.mxu1 %v5531_v35  ;;  %7409 = vst [vmem:[#allocation2_spill] sm:$0xff] %v5537_v26  ;;  %7410 = vst [vmem:[#allocation56_spill] sm:$0xff] %v5543_v10  ;;  %v5549_v33 = vld [vmem:[%s6794_s4 + $0x4] ss:$16 sps:$4 sm:$0xff]   ;;  %v5555_v35 = vld [vmem:[%s6794_s4 + $0xc] ss:$16 sps:$4 sm:$0xff]  }
 0x3b6   :  { %7411 = vst [vmem:[#allocation59_spill] sm:$0xff] %v5549_v33  ;;  %7412 = vst [vmem:[#allocation57_spill] sm:$0xff] %v5555_v35 }
 0x3b8   :  { %1860 = vmatpush1.bf16.msra.mxu0 %v5537_v26  ;;  %1901 = vmatpush1.bf16.msra.mxu1 %v5543_v10  ;;  %v5561_v26 = vld [vmem:[%s6794_s4] ss:$16 sps:$4 sm:$0xff]   ;;  %v5567_v10 = vld [vmem:[%s6794_s4 + $0x8] ss:$16 sps:$4 sm:$0xff]  }
 0x3b9   :  { %1861 = vmatprep.subr.bf16.mxu0 %v5549_v33  ;;  %1902 = vmatprep.subr.bf16.mxu1 %v5555_v35  ;;  %7413 = vst [vmem:[#allocation60_spill] sm:$0xff] %v5561_v26  ;;  %7414 = vst [vmem:[#allocation49_spill] sm:$0xff] %v5567_v10  ;;  %v5573_v33 = vld [vmem:[%s6794_s4 + $0x1e4] ss:$16 sps:$4 sm:$0xff]   ;;  %v5579_v35 = vld [vmem:[%s6794_s4 + $0x1ec] ss:$16 sps:$4 sm:$0xff]  }
 0x3ba   :  { %7415 = vst [vmem:[#allocation50_spill] sm:$0xff] %v5573_v33  ;;  %7416 = vst [vmem:[#allocation51_spill] sm:$0xff] %v5579_v35 }
 0x3bc   :  { %1862 = vmatpush1.bf16.msra.mxu0 %v5561_v26  ;;  %1903 = vmatpush1.bf16.msra.mxu1 %v5567_v10  ;;  %v5585_v26 = vld [vmem:[%s6794_s4 + $0x1e0] ss:$16 sps:$4 sm:$0xff]   ;;  %v5591_v10 = vld [vmem:[%s6794_s4 + $0x1e8] ss:$16 sps:$4 sm:$0xff]  }
 0x3bd   :  { %1863 = vmatprep.subr.bf16.mxu0 %v5573_v33  ;;  %1904 = vmatprep.subr.bf16.mxu1 %v5579_v35  ;;  %7417 = vst [vmem:[#allocation52_spill] sm:$0xff] %v5585_v26  ;;  %7418 = vst [vmem:[#allocation53_spill] sm:$0xff] %v5591_v10  ;;  %v5597_v33 = vld [vmem:[%s6794_s4 + $0x1c4] ss:$16 sps:$4 sm:$0xff]   ;;  %v5603_v35 = vld [vmem:[%s6794_s4 + $0x1cc] ss:$16 sps:$4 sm:$0xff]  }
 0x3be   :  { %7419 = vst [vmem:[#allocation54_spill] sm:$0xff] %v5597_v33  ;;  %7420 = vst [vmem:[#allocation55_spill] sm:$0xff] %v5603_v35 }
 0x3c0   :  { %1864 = vmatpush2.bf16.msra.mxu0 %v5585_v26  ;;  %1905 = vmatpush2.bf16.msra.mxu1 %v5591_v10  ;;  %v5609_v26 = vld [vmem:[%s6794_s4 + $0x1c0] ss:$16 sps:$4 sm:$0xff]   ;;  %v5615_v10 = vld [vmem:[%s6794_s4 + $0x1c8] ss:$16 sps:$4 sm:$0xff]  }
 0x3c1   :  { %1865 = vmatprep.subr.bf16.mxu0 %v5597_v33  ;;  %1906 = vmatprep.subr.bf16.mxu1 %v5603_v35  ;;  %7421 = vst [vmem:[#allocation3_spill] sm:$0xff] %v5609_v26  ;;  %7422 = vst [vmem:[#allocation58_spill] sm:$0xff] %v5615_v10  ;;  %v5621_v33 = vld [vmem:[%s6794_s4 + $0x1a4] ss:$16 sps:$4 sm:$0xff]   ;;  %v5627_v35 = vld [vmem:[%s6794_s4 + $0x1ac] ss:$16 sps:$4 sm:$0xff]  }
 0x3c2   :  { %7423 = vst [vmem:[#allocation61_spill] sm:$0xff] %v5621_v33  ;;  %7424 = vst [vmem:[#allocation8_spill] sm:$0xff] %v5627_v35 }
 0x3c4   :  { %1866 = vmatpush2.bf16.msra.mxu0 %v5609_v26  ;;  %1907 = vmatpush2.bf16.msra.mxu1 %v5615_v10  ;;  %v5633_v26 = vld [vmem:[%s6794_s4 + $0x1a0] ss:$16 sps:$4 sm:$0xff]   ;;  %v5639_v10 = vld [vmem:[%s6794_s4 + $0x1a8] ss:$16 sps:$4 sm:$0xff]  }
 0x3c5   :  { %1867 = vmatprep.subr.bf16.mxu0 %v5621_v33  ;;  %1908 = vmatprep.subr.bf16.mxu1 %v5627_v35  ;;  %7425 = vst [vmem:[#allocation9_spill] sm:$0xff] %v5633_v26  ;;  %7426 = vst [vmem:[#allocation10_spill] sm:$0xff] %v5639_v10  ;;  %v5645_v33 = vld [vmem:[%s6794_s4 + $0x184] ss:$16 sps:$4 sm:$0xff]   ;;  %v5651_v35 = vld [vmem:[%s6794_s4 + $0x18c] ss:$16 sps:$4 sm:$0xff]  }
 0x3c6   :  { %7427 = vst [vmem:[#allocation11_spill] sm:$0xff] %v5645_v33  ;;  %7428 = vst [vmem:[#allocation12_spill] sm:$0xff] %v5651_v35 }
 0x3c8   :  { %1868 = vmatpush2.bf16.msra.mxu0 %v5633_v26  ;;  %1909 = vmatpush2.bf16.msra.mxu1 %v5639_v10  ;;  %v5657_v26 = vld [vmem:[%s6794_s4 + $0x180] ss:$16 sps:$4 sm:$0xff]   ;;  %v5663_v10 = vld [vmem:[%s6794_s4 + $0x188] ss:$16 sps:$4 sm:$0xff]  }
 0x3c9   :  { %1869 = vmatprep.subr.bf16.mxu0 %v5645_v33  ;;  %1910 = vmatprep.subr.bf16.mxu1 %v5651_v35  ;;  %7429 = vst [vmem:[#allocation13_spill] sm:$0xff] %v5657_v26  ;;  %7430 = vst [vmem:[#allocation14_spill] sm:$0xff] %v5663_v10  ;;  %v5669_v33 = vld [vmem:[%s6794_s4 + $0x164] ss:$16 sps:$4 sm:$0xff]   ;;  %v5675_v35 = vld [vmem:[%s6794_s4 + $0x16c] ss:$16 sps:$4 sm:$0xff]  }
 0x3ca   :  { %7431 = vst [vmem:[#allocation15_spill] sm:$0xff] %v5669_v33  ;;  %7432 = vst [vmem:[#allocation16_spill] sm:$0xff] %v5675_v35 }
 0x3cc   :  { %1870 = vmatpush2.bf16.msra.mxu0 %v5657_v26  ;;  %1911 = vmatpush2.bf16.msra.mxu1 %v5663_v10  ;;  %v5681_v26 = vld [vmem:[%s6794_s4 + $0x160] ss:$16 sps:$4 sm:$0xff]   ;;  %v5687_v10 = vld [vmem:[%s6794_s4 + $0x168] ss:$16 sps:$4 sm:$0xff]  }
 0x3cd   :  { %1871 = vmatprep.subr.bf16.mxu0 %v5669_v33  ;;  %1912 = vmatprep.subr.bf16.mxu1 %v5675_v35  ;;  %7433 = vst [vmem:[#allocation17_spill] sm:$0xff] %v5681_v26  ;;  %7434 = vst [vmem:[#allocation18_spill] sm:$0xff] %v5687_v10  ;;  %v5693_v33 = vld [vmem:[%s6794_s4 + $0x144] ss:$16 sps:$4 sm:$0xff]   ;;  %v5699_v35 = vld [vmem:[%s6794_s4 + $0x14c] ss:$16 sps:$4 sm:$0xff]  }
 0x3ce   :  { %7435 = vst [vmem:[#allocation19_spill] sm:$0xff] %v5693_v33  ;;  %7436 = vst [vmem:[#allocation20_spill] sm:$0xff] %v5699_v35 }
 0x3d0   :  { %1872 = vmatpush2.bf16.msra.mxu0 %v5681_v26  ;;  %1913 = vmatpush2.bf16.msra.mxu1 %v5687_v10  ;;  %v5705_v26 = vld [vmem:[%s6794_s4 + $0x140] ss:$16 sps:$4 sm:$0xff]   ;;  %v5711_v10 = vld [vmem:[%s6794_s4 + $0x148] ss:$16 sps:$4 sm:$0xff]  }
 0x3d1   :  { %1873 = vmatprep.subr.bf16.mxu0 %v5693_v33  ;;  %1914 = vmatprep.subr.bf16.mxu1 %v5699_v35  ;;  %7437 = vst [vmem:[#allocation62_spill] sm:$0xff] %v5705_v26  ;;  %7438 = vst [vmem:[#allocation63_spill] sm:$0xff] %v5711_v10  ;;  %v5717_v33 = vld [vmem:[%s6794_s4 + $0x124] ss:$16 sps:$4 sm:$0xff]   ;;  %v5723_v35 = vld [vmem:[%s6794_s4 + $0x12c] ss:$16 sps:$4 sm:$0xff]  }
 0x3d2   :  { %7439 = vst [vmem:[#allocation64_spill] sm:$0xff] %v5717_v33  ;;  %7440 = vst [vmem:[#allocation65_spill] sm:$0xff] %v5723_v35 }
 0x3d4   :  { %1874 = vmatpush2.bf16.msra.mxu0 %v5705_v26  ;;  %1915 = vmatpush2.bf16.msra.mxu1 %v5711_v10  ;;  %v5729_v26 = vld [vmem:[%s6794_s4 + $0x120] ss:$16 sps:$4 sm:$0xff]   ;;  %v5735_v10 = vld [vmem:[%s6794_s4 + $0x128] ss:$16 sps:$4 sm:$0xff]  }
 0x3d5   :  { %1875 = vmatprep.subr.bf16.mxu0 %v5717_v33  ;;  %1916 = vmatprep.subr.bf16.mxu1 %v5723_v35  ;;  %7441 = vst [vmem:[#allocation66_spill] sm:$0xff] %v5729_v26  ;;  %7442 = vst [vmem:[#allocation67_spill] sm:$0xff] %v5735_v10  ;;  %v5741_v33 = vld [vmem:[%s6794_s4 + $0x104] ss:$16 sps:$4 sm:$0xff]   ;;  %v5747_v35 = vld [vmem:[%s6794_s4 + $0x10c] ss:$16 sps:$4 sm:$0xff]  }
 0x3d6   :  { %7443 = vst [vmem:[#allocation68_spill] sm:$0xff] %v5741_v33  ;;  %7444 = vst [vmem:[#allocation69_spill] sm:$0xff] %v5747_v35 }
 0x3d8   :  { %1876 = vmatpush2.bf16.msra.mxu0 %v5729_v26  ;;  %1917 = vmatpush2.bf16.msra.mxu1 %v5735_v10  ;;  %v5753_v26 = vld [vmem:[%s6794_s4 + $0x100] ss:$16 sps:$4 sm:$0xff]   ;;  %v5759_v10 = vld [vmem:[%s6794_s4 + $0x108] ss:$16 sps:$4 sm:$0xff]  }
 0x3d9   :  { %1877 = vmatprep.subr.bf16.mxu0 %v5741_v33  ;;  %1918 = vmatprep.subr.bf16.mxu1 %v5747_v35  ;;  %7445 = vst [vmem:[#allocation70_spill] sm:$0xff] %v5753_v26  ;;  %7446 = vst [vmem:[#allocation71_spill] sm:$0xff] %v5759_v10 }
 0x3dc   :  { %1878 = vmatpush2.bf16.msra.mxu0 %v5753_v26  ;;  %1919 = vmatpush2.bf16.msra.mxu1 %v5759_v10 }
 0x3dd   :  { %1958 = vmatprep.subr.bf16.mxu0 %v7366_v38  ;;  %1999 = vmatprep.subr.bf16.mxu1 %v5438_v39 }
 0x43f   :  { %v1569_v33 = vpop.f32.mrf.mxu0  ;;  %v1610_v35 = vpop.f32.mrf.mxu1 }
 0x440   :  { %v1570_v30 = vadd.f32 %v1569_v33, %v7368_v42  ;;  %v1611_v38 = vadd.f32 %v1610_v35, %v7370_v54 }
 0x441   :  { %v1571_v2 = vpop.f32.mrf.mxu0  ;;  %v1612_v37 = vpop.f32.mrf.mxu1 }
 0x442   :  { %v3402_v34 = vmul.f32 -1.442695, %v1570_v30  ;;  %v1572_v26 = vadd.f32 %v1571_v2, %v7369_v47  ;;  %v3404_v10 = vmul.f32 -1.442695, %v1611_v38  ;;  %v1613_v41 = vadd.f32 %v1612_v37, %v7371_v58 }
 0x443   :  { %v1573_v60 = vpop.f32.mrf.mxu0  ;;  %v1614_v31 = vpop.f32.mrf.mxu1 }
 0x444   :  { %3774 = vpow2.f32 %v3402_v34  ;;  %v3403_v63 = vmul.f32 -1.442695, %v1572_v26 }
 0x445   :  { %v1574_v3 = vpop.f32.mrf.mxu0  ;;  %v1615_v14 = vpop.f32.mrf.mxu1 }
 0x446   :  { %3776 = vpow2.f32 %v3403_v63 }
 0x447   :  { %3778 = vpow2.f32 %v3404_v10 }
 0x451   :  { %v3775_v39 = vpop.eup %3774 }
 0x452   :  { %v1626_v33 = vadd.f32 1.0, %v3775_v39 }
 0x453   :  { %v3777_v42 = vpop.eup %3776 }
 0x454   :  { %3780 = vrcp.f32 %v1626_v33  ;;  %v1627_v30 = vadd.f32 1.0, %v3777_v42  ;;  %v3779_v2 = vpop.eup %3778 }
 0x455   :  { %3782 = vtanh.f32 %v1613_v41  ;;  %v1628_v63 = vadd.f32 1.0, %v3779_v2 }
 0x456   :  { %3784 = vrcp.f32 %v1627_v30 }
 0x457   :  { %3786 = vrcp.f32 %v1628_v63 }
 0x45f   :  { %v1680_v31 = vpop.f32.mrf.mxu0  ;;  %v1721_v60 = vpop.f32.mrf.mxu1 }
 0x460   :  { %v1732_v26 = vrot.slane %v1680_v31, 5  ;;  %v1736_v34 = vrot.slane %v1680_v31, 6 }
 0x461   :  { %v3781_v14 = vpop.eup %3780  ;;  %v1682_v3 = vpop.f32.mrf.mxu0 }
 0x462   :  { %v1723_v35 = vpop.f32.mrf.mxu1  ;;  %v3783_v38 = vpop.eup %3782  ;;  %v1748_v10 = vadd.f32 %v1732_v26, %v7316_v5  ;;  %v1752_v37 = vadd.f32 %v1736_v34, %v7372_v44  ;;  %v1733_v58 = vrot.slane %v1682_v3, 5  ;;  %v1737_v33 = vrot.slane %v1682_v3, 6 }
 0x463   :  { %v3785_v39 = vpop.eup %3784  ;;  %v1684_v42 = vpop.f32.mrf.mxu0  ;;  %v1637_v54 = vmul.f32 %v3783_v38, %v3781_v14  ;;  %v1735_v63 = vrot.slane %v1723_v35, 5  ;;  %v1739_v38 = vrot.slane %v1723_v35, 6 }
 0x464   :  { %v1725_v41 = vpop.f32.mrf.mxu1  ;;  %v1636_v30 = vmul.f32 %v3785_v39, %v5450_v19  ;;  %v3405_v47 = vmul.f32 -1.442695, %v1748_v10  ;;  %v3408_v36 = vmul.f32 -1.442695, %v1752_v37  ;;  %v1749_v2 = vadd.f32 %v1733_v58, %v7318_v61 }
 0x465   :  { %v1753_v31 = vadd.f32 %v1737_v33, %v7317_v27  ;;  %v1685_v23 = vpop.f32.mrf.mxu0  ;;  %v1734_v42 = vrot.slane %v1721_v60, 5  ;;  %v1738_v19 = vrot.slane %v1721_v60, 6  ;;  %v1755_v37 = vadd.f32 %v1739_v38, %v7373_v50 }
 0x466   :  { %v1726_v12 = vpop.f32.mrf.mxu1  ;;  %v5773_v26 = vadd.f32 %v1637_v54, %v1636_v30  ;;  %3788 = vpow2.f32 %v3405_v47  ;;  %v3406_v34 = vmul.f32 -1.442695, %v1749_v2  ;;  %v1751_v47 = vadd.f32 %v1735_v63, %v4904_v1 }
 0x467   :  { %3790 = vpow2.f32 %v3408_v36  ;;  %v3409_v3 = vmul.f32 -1.442695, %v1753_v31  ;;  %v1750_v14 = vadd.f32 %v1734_v42, %v7319_v6  ;;  %v1754_v58 = vadd.f32 %v1738_v19, %v4901_v4  ;;  %v3787_v12 = vpop.eup %3786 }
 0x468   :  { %3792 = vtanh.f32 %v5773_v26 }
 0x469   :  { %3794 = vpow2.f32 %v3406_v34  ;;  %v3407_v23 = vmul.f32 -1.442695, %v1750_v14  ;;  %v3410_v54 = vmul.f32 -1.442695, %v1754_v58 }
 0x46a   :  { %3796 = vpow2.f32 %v3409_v3 }
 0x46b   :  { %3798 = vpow2.f32 %v3407_v23 }
 0x46c   :  { %3800 = vpow2.f32 %v3410_v54 }
 0x46d   :  { %3802 = vtanh.f32 %v1751_v47 }
 0x46e   :  { %3804 = vtanh.f32 %v1755_v37 }
 0x473   :  { %v3789_v10 = vpop.eup %3788 }
 0x474   :  { %v3791_v36 = vpop.eup %3790  ;;  %v1774_v33 = vadd.f32 1.0, %v3789_v10 }
 0x475   :  { %v3793_v39 = vpop.eup %3792  ;;  %v1777_v60 = vadd.f32 1.0, %v3791_v36 }
 0x476   :  { %v1640_v41 = vmul.f32 %v3793_v39, %v3787_v12  ;;  %v3795_v30 = vpop.eup %3794  ;;  %3806 = vrcp.f32 %v1774_v33 }
 0x477   :  { %v3797_v35 = vpop.eup %3796  ;;  %v1775_v31 = vadd.f32 1.0, %v3795_v30  ;;  %3808 = vrcp.f32 %v1777_v60  ;;  %v1796_v60 = vrot.slane %v5459_v32, 7 }
 0x478   :  { %v1812_v2 = vpack.c.bf16 %v1640_v41, %v1640_v41  ;;  %v1778_v34 = vadd.f32 1.0, %v3797_v35  ;;  %v3799_v23 = vpop.eup %3798 }
 0x479   :  { %3810 = vrcp.f32 %v1775_v31  ;;  %v3801_v10 = vpop.eup %3800  ;;  %v1776_v41 = vadd.f32 1.0, %v3799_v23 }
 0x47a   :  { %v1822_v3 = vshrl.u32 %v1812_v2, 16  ;;  %v1825_v42 = vshll.u32 %v1812_v2, 16  ;;  %3812 = vrcp.f32 %v1778_v34  ;;  %v3803_v47 = vpop.eup %3802  ;;  %v1797_v2 = vrot.slane %v5461_v55, 7 }
 0x47b   :  { %v3805_v37 = vpop.eup %3804  ;;  %v1779_v35 = vadd.f32 1.0, %v3801_v10  ;;  %3814 = vrcp.f32 %v1776_v41 }
 0x47c   :  { %v1824_v19 = vrot.slane %v1822_v3, 6  ;;  %v1827_v14 = vrot.slane %v1825_v42, 7 }
 0x47d   :  { %3816 = vrcp.f32 %v1779_v35 }
 0x47e   :  { %v1828_v58 = vor.u32 %v1827_v14, %v1824_v19 }
 0x480   :  { %v1838_v63 = vshrl.u32 %v1828_v58, 16  ;;  %v1841_v38 = vshll.u32 %v1828_v58, 16 }
 0x482   :  { %v1840_v12 = vrot.slane %v1838_v63, 1  ;;  %v1843_v54 = vrot.slane %v1841_v38, 2 }
 0x483   :  { %v3807_v39 = vpop.eup %3806 }
 0x484   :  { %v1844_v36 = vor.u32 %v1843_v54, %v1840_v12  ;;  %v3809_v33 = vpop.eup %3808  ;;  %v1802_v3 = vmul.f32 %v3807_v39, %v3803_v47 }
 0x485   :  { %v1803_v19 = vmul.f32 %v3809_v33, %v3805_v37 }
 0x486   :  { %1879 = vmatprep.mubr.bf16.mxu0 %v1844_v36  ;;  %1920 = vmatprep.mubr.bf16.mxu1 %v1844_v36  ;;  %v3811_v30 = vpop.eup %3810 }
 0x487   :  { %v3813_v31 = vpop.eup %3812  ;;  %v1800_v34 = vmul.f32 %v3811_v30, %v1796_v60 }
 0x488   :  { %v1801_v42 = vmul.f32 %v3813_v31, %v1797_v2  ;;  %v3815_v32 = vpop.eup %3814 }
 0x489   :  { %v5782_v14 = vadd.f32 %v1802_v3, %v1800_v34 }
 0x48a   :  { %v5784_v58 = vadd.f32 %v1803_v19, %v1801_v42  ;;  %v3817_v63 = vpop.eup %3816  ;;  %v7475_v42 = vld [vmem:[#allocation56_spill] sm:$0xff]  ;;  %v7476_v19 = vld [vmem:[#allocation59_spill] sm:$0xff] }
 0x48b   :  { %3818 = vtanh.f32 %v5782_v14 }
 0x48c   :  { %3820 = vtanh.f32 %v5784_v58 }
 0x498   :  { %v3819_v38 = vpop.eup %3818 }
 0x499   :  { %v3821_v55 = vpop.eup %3820  ;;  %v1808_v23 = vmul.f32 %v3819_v38, %v3815_v32  ;;  %v7477_v32 = vld [vmem:[#allocation57_spill] sm:$0xff] }
 0x49a   :  { %v1809_v12 = vmul.f32 %v3821_v55, %v3817_v63  ;;  %v7478_v63 = vld [vmem:[#allocation60_spill] sm:$0xff]  ;;  %v7479_v38 = vld [vmem:[#allocation49_spill] sm:$0xff]  ;;  %v7480_v55 = vld [vmem:[#allocation50_spill] sm:$0xff] }
 0x49b   :  { %v1810_v54 = vpack.c.bf16 %v1808_v23, %v1808_v23  ;;  %v7481_v23 = vld [vmem:[#allocation51_spill] sm:$0xff] }
 0x49c   :  { %v1811_v10 = vpack.c.bf16 %v1809_v12, %v1809_v12  ;;  %v7482_v12 = vld [vmem:[#allocation52_spill] sm:$0xff] }
 0x49d   :  { %v1815_v47 = vunpack.c.l.b16 %v1810_v54  ;;  %v7483_v54 = vld [vmem:[#allocation53_spill] sm:$0xff] }
 0x49e   :  { %v1816_v36 = vunpack.c.l.b16 %v1811_v10  ;;  %v7484_v10 = vld [vmem:[#allocation54_spill] sm:$0xff] }
 0x49f   :  { %v1953_v37 = vrot.slane %v1815_v47, 3 }
 0x4a0   :  { %v1817_v39 = vrot.slane %v1816_v36, 7  ;;  %v1954_v33 = vrot.slane %v1816_v36, 2  ;;  %v7486_v36 = vld [vmem:[#allocation3_spill] sm:$0xff] }
 0x4a2   :  { %v1819_v60 = vsel %vm1818_vm5, %v1817_v39, %v1815_v47  ;;  %v1955_v41 = vsel %vm599_vm2, %v1954_v33, %v1953_v37  ;;  %v7485_v47 = vld [vmem:[#allocation55_spill] sm:$0xff]  ;;  %v7487_v37 = vld [vmem:[#allocation58_spill] sm:$0xff]  ;;  %v7488_v39 = vld [vmem:[#allocation61_spill] sm:$0xff] }
 0x4a3   :  { %v1820_v30 = vpack.c.b16 %v1819_v60, %v1819_v60  ;;  %v7489_v33 = vld [vmem:[#allocation8_spill] sm:$0xff]  ;;  %v7490_v60 = vld [vmem:[#allocation9_spill] sm:$0xff] }
 0x4a5   :  { %v1830_v2 = vshrl.u32 %v1820_v30, 16  ;;  %v1833_v35 = vshll.u32 %v1820_v30, 16  ;;  %v7492_v30 = vld [vmem:[#allocation11_spill] sm:$0xff] }
 0x4a7   :  { %v1832_v31 = vrot.slane %v1830_v2, 1  ;;  %v1835_v34 = vrot.slane %v1833_v35, 2  ;;  %v7493_v2 = vld [vmem:[#allocation12_spill] sm:$0xff]  ;;  %v7494_v35 = vld [vmem:[#allocation13_spill] sm:$0xff] }
 0x4a9   :  { %v1836_v3 = vor.u32 %v1835_v34, %v1832_v31  ;;  %v7495_v31 = vld [vmem:[#allocation14_spill] sm:$0xff]  ;;  %v7496_v34 = vld [vmem:[#allocation15_spill] sm:$0xff] }
 0x4ab   :  { %1880 = vmatmul.mubr.bf16.vlgmr.msra.gmra.mxu0 %v1836_v3  ;;  %1921 = vmatmul.mubr.bf16.vlgmr.msra.gmra.mxu1 %v1836_v3  ;;  %v7497_v3 = vld [vmem:[#allocation16_spill] sm:$0xff] }
 0x4ac   :  { %1959 = vmatpush1.bf16.msra.mxu0 %v5069_v59  ;;  %2000 = vmatpush1.bf16.msra.mxu1 %v5075_v7  ;;  %v7447_v59 = vld [vmem:[#allocation21_spill] sm:$0xff]  ;;  %v1956_v7 = vpack.c.b16 %v1955_v41, %v1955_v41  ;;  %v7491_v41 = vld [vmem:[#allocation10_spill] sm:$0xff] }
 0x4ad   :  { %1960 = vmatprep.subr.bf16.mxu0 %v5081_v8  ;;  %2001 = vmatprep.subr.bf16.mxu1 %v5087_v22  ;;  %v7448_v8 = vld [vmem:[#allocation22_spill] sm:$0xff]  ;;  %v7449_v22 = vld [vmem:[#allocation23_spill] sm:$0xff] }
 0x4ae   :  { %1990 = vmatprep.mubr.bf16.mxu0 %v7251_v9  ;;  %2031 = vmatprep.mubr.bf16.mxu1 %v7251_v9 }
 0x4b0   :  { %1961 = vmatpush1.bf16.msra.mxu0 %v5095_v0  ;;  %2002 = vmatpush1.bf16.msra.mxu1 %v5101_v13  ;;  %v7450_v0 = vld [vmem:[#allocation24_spill] sm:$0xff]  ;;  %v7451_v13 = vld [vmem:[#allocation25_spill] sm:$0xff] }
 0x4b1   :  { %1962 = vmatprep.subr.bf16.mxu0 %v5107_v15  ;;  %2003 = vmatprep.subr.bf16.mxu1 %v5113_v25  ;;  %v7452_v15 = vld [vmem:[#allocation26_spill] sm:$0xff]  ;;  %v7453_v25 = vld [vmem:[#allocation27_spill] sm:$0xff] }
 0x4b4   :  { %1963 = vmatpush1.bf16.msra.mxu0 %v5119_v20  ;;  %2004 = vmatpush1.bf16.msra.mxu1 %v5125_v11  ;;  %v7454_v20 = vld [vmem:[#allocation28_spill] sm:$0xff]  ;;  %v7455_v11 = vld [vmem:[#allocation29_spill] sm:$0xff] }
 0x4b5   :  { %1964 = vmatprep.subr.bf16.mxu0 %v5131_v21  ;;  %2005 = vmatprep.subr.bf16.mxu1 %v5137_v17  ;;  %v7456_v21 = vld [vmem:[#allocation30_spill] sm:$0xff]  ;;  %v7457_v17 = vld [vmem:[#allocation31_spill] sm:$0xff] }
 0x4b8   :  { %1965 = vmatpush1.bf16.msra.mxu0 %v5143_v16  ;;  %2006 = vmatpush1.bf16.msra.mxu1 %v5149_v24  ;;  %v7458_v16 = vld [vmem:[#allocation32_spill] sm:$0xff]  ;;  %v7459_v24 = vld [vmem:[#allocation33_spill] sm:$0xff] }
 0x4b9   :  { %1966 = vmatprep.subr.bf16.mxu0 %v5155_v29  ;;  %2007 = vmatprep.subr.bf16.mxu1 %v5161_v28  ;;  %v7460_v29 = vld [vmem:[#allocation34_spill] sm:$0xff]  ;;  %v7461_v28 = vld [vmem:[#allocation35_spill] sm:$0xff] }
 0x4bc   :  { %1967 = vmatpush1.bf16.msra.mxu0 %v7374_v43  ;;  %2008 = vmatpush1.bf16.msra.mxu1 %v7375_v45  ;;  %v7462_v43 = vld [vmem:[#allocation36_spill] sm:$0xff]  ;;  %v7463_v45 = vld [vmem:[#allocation37_spill] sm:$0xff] }
 0x4bd   :  { %1968 = vmatprep.subr.bf16.mxu0 %v7376_v46  ;;  %2009 = vmatprep.subr.bf16.mxu1 %v7377_v48  ;;  %v7464_v46 = vld [vmem:[#allocation38_spill] sm:$0xff]  ;;  %v7465_v48 = vld [vmem:[#allocation39_spill] sm:$0xff] }
 0x4c0   :  { %1969 = vmatpush1.bf16.msra.mxu0 %v7378_v49  ;;  %2010 = vmatpush1.bf16.msra.mxu1 %v7379_v51  ;;  %v7466_v49 = vld [vmem:[#allocation40_spill] sm:$0xff]  ;;  %v7467_v51 = vld [vmem:[#allocation41_spill] sm:$0xff] }
 0x4c1   :  { %1970 = vmatprep.subr.bf16.mxu0 %v7380_v52  ;;  %2011 = vmatprep.subr.bf16.mxu1 %v7381_v53  ;;  %v7468_v52 = vld [vmem:[#allocation42_spill] sm:$0xff]  ;;  %v7469_v53 = vld [vmem:[#allocation43_spill] sm:$0xff] }
 0x4c4   :  { %1971 = vmatpush1.bf16.msra.mxu0 %v7382_v18  ;;  %2012 = vmatpush1.bf16.msra.mxu1 %v7383_v56  ;;  %v7470_v18 = vld [vmem:[#allocation44_spill] sm:$0xff]  ;;  %v7471_v56 = vld [vmem:[#allocation45_spill] sm:$0xff] }
 0x4c5   :  { %1972 = vmatprep.subr.bf16.mxu0 %v7384_v57  ;;  %2013 = vmatprep.subr.bf16.mxu1 %v7385_v62  ;;  %v7472_v57 = vld [vmem:[#allocation47_spill] sm:$0xff]  ;;  %v7473_v62 = vld [vmem:[#allocation48_spill] sm:$0xff] }
 0x4c8   :  { %1973 = vmatpush1.bf16.msra.mxu0 %v7386_v40  ;;  %2014 = vmatpush1.bf16.msra.mxu1 %v7447_v59  ;;  %v7474_v40 = vld [vmem:[#allocation2_spill] sm:$0xff]  ;;  %v7498_v59 = vld [vmem:[#allocation17_spill] sm:$0xff] }
 0x4c9   :  { %2139 = vmatprep.subr.bf16.mxu0 %v7448_v8  ;;  %2180 = vmatprep.subr.bf16.mxu1 %v7449_v22  ;;  %v7500_v8 = vld [vmem:[#allocation19_spill] sm:$0xff]  ;;  %v7501_v22 = vld [vmem:[#allocation20_spill] sm:$0xff] }
 0x4cb   :  { %1991 = vmatmul.mubr.bf16.vlgmr.msra.gmra.mxu0 %v1956_v7  ;;  %2032 = vmatmul.mubr.bf16.vlgmr.msra.gmra.mxu1 %v1956_v7  ;;  %v7499_v7 = vld [vmem:[#allocation18_spill] sm:$0xff] }
 0x4cc   :  { %2140 = vmatpush1.bf16.msra.mxu0 %v7450_v0  ;;  %2181 = vmatpush1.bf16.msra.mxu1 %v7451_v13  ;;  %v7502_v0 = vld [vmem:[#allocation62_spill] sm:$0xff]  ;;  %v7503_v13 = vld [vmem:[#allocation63_spill] sm:$0xff] }
 0x4cd   :  { %2141 = vmatprep.subr.bf16.mxu0 %v7452_v15  ;;  %2182 = vmatprep.subr.bf16.mxu1 %v7453_v25  ;;  %v7504_v15 = vld [vmem:[#allocation64_spill] sm:$0xff]  ;;  %v7505_v25 = vld [vmem:[#allocation65_spill] sm:$0xff] }
 0x4d0   :  { %2142 = vmatpush1.bf16.msra.mxu0 %v7454_v20  ;;  %2183 = vmatpush1.bf16.msra.mxu1 %v7455_v11  ;;  %v7506_v20 = vld [vmem:[#allocation66_spill] sm:$0xff]  ;;  %v7507_v11 = vld [vmem:[#allocation67_spill] sm:$0xff] }
 0x4d1   :  { %2143 = vmatprep.subr.bf16.mxu0 %v7456_v21  ;;  %2184 = vmatprep.subr.bf16.mxu1 %v7457_v17  ;;  %v7508_v21 = vld [vmem:[#allocation68_spill] sm:$0xff]  ;;  %v7509_v17 = vld [vmem:[#allocation69_spill] sm:$0xff] }
 0x4d4   :  { %2144 = vmatpush1.bf16.msra.mxu0 %v7458_v16  ;;  %2185 = vmatpush1.bf16.msra.mxu1 %v7459_v24  ;;  %v7510_v16 = vld [vmem:[#allocation70_spill] sm:$0xff]  ;;  %v7511_v24 = vld [vmem:[#allocation71_spill] sm:$0xff] }
 0x4d5   :  { %2145 = vmatprep.subr.bf16.mxu0 %v7460_v29  ;;  %2186 = vmatprep.subr.bf16.mxu1 %v7461_v28  ;;  %v5888_v29 = vld [vmem:[%s6791_s2 + $0xe4] ss:$16 sps:$4 sm:$0xff]  }
 0x4d6   :  { %7512 = vst [vmem:[#allocation21_spill] sm:$0xff] %v5888_v29  ;;  %v7513_v28 = vld [vmem:[#allocation46_spill] sm:$0xff] }
 0x4d8   :  { %2146 = vmatpush1.bf16.msra.mxu0 %v7462_v43  ;;  %2187 = vmatpush1.bf16.msra.mxu1 %v7463_v45 }
 0x4d9   :  { %2147 = vmatprep.subr.bf16.mxu0 %v7464_v46  ;;  %2188 = vmatprep.subr.bf16.mxu1 %v7465_v48  ;;  %v7514_v46 = vld [vmem:[#allocation4_spill] sm:$0xff] }
 0x4dc   :  { %2148 = vmatpush1.bf16.msra.mxu0 %v7466_v49  ;;  %2189 = vmatpush1.bf16.msra.mxu1 %v7467_v51 }
 0x4dd   :  { %2149 = vmatprep.subr.bf16.mxu0 %v7468_v52  ;;  %2190 = vmatprep.subr.bf16.mxu1 %v7469_v53  ;;  %v7515_v53 = vld [vmem:[#allocation5_spill] sm:$0xff] }
 0x4e0   :  { %2150 = vmatpush1.bf16.msra.mxu0 %v7470_v18  ;;  %2191 = vmatpush1.bf16.msra.mxu1 %v7471_v56 }
 0x4e1   :  { %2151 = vmatprep.subr.bf16.mxu0 %v7472_v57  ;;  %2192 = vmatprep.subr.bf16.mxu1 %v7473_v62 }
 0x4e4   :  { %2152 = vmatpush1.bf16.msra.mxu0 %v7474_v40  ;;  %2193 = vmatpush1.bf16.msra.mxu1 %v7475_v42 }
 0x4e5   :  { %2153 = vmatprep.subr.bf16.mxu0 %v7476_v19  ;;  %2194 = vmatprep.subr.bf16.mxu1 %v7477_v32 }
 0x4e8   :  { %2154 = vmatpush1.bf16.msra.mxu0 %v7478_v63  ;;  %2195 = vmatpush1.bf16.msra.mxu1 %v7479_v38 }
 0x4e9   :  { %2155 = vmatprep.subr.bf16.mxu0 %v7480_v55  ;;  %2196 = vmatprep.subr.bf16.mxu1 %v7481_v23 }
 0x4ec   :  { %2156 = vmatpush2.bf16.msra.mxu0 %v7482_v12  ;;  %2197 = vmatpush2.bf16.msra.mxu1 %v7483_v54 }
 0x4ed   :  { %2157 = vmatprep.subr.bf16.mxu0 %v7484_v10  ;;  %2198 = vmatprep.subr.bf16.mxu1 %v7485_v47 }
 0x4f0   :  { %2158 = vmatpush2.bf16.msra.mxu0 %v7486_v36  ;;  %2199 = vmatpush2.bf16.msra.mxu1 %v7487_v37 }
 0x4f1   :  { %2159 = vmatprep.subr.bf16.mxu0 %v7488_v39  ;;  %2200 = vmatprep.subr.bf16.mxu1 %v7489_v33 }
 0x4f4   :  { %2160 = vmatpush2.bf16.msra.mxu0 %v7490_v60  ;;  %2201 = vmatpush2.bf16.msra.mxu1 %v7491_v41 }
 0x4f5   :  { %2161 = vmatprep.subr.bf16.mxu0 %v7492_v30  ;;  %2202 = vmatprep.subr.bf16.mxu1 %v7493_v2 }
 0x4f8   :  { %2162 = vmatpush2.bf16.msra.mxu0 %v7494_v35  ;;  %2203 = vmatpush2.bf16.msra.mxu1 %v7495_v31 }
 0x4f9   :  { %2163 = vmatprep.subr.bf16.mxu0 %v7496_v34  ;;  %2204 = vmatprep.subr.bf16.mxu1 %v7497_v3 }
 0x4fc   :  { %2164 = vmatpush2.bf16.msra.mxu0 %v7498_v59  ;;  %2205 = vmatpush2.bf16.msra.mxu1 %v7499_v7 }
 0x4fd   :  { %2165 = vmatprep.subr.bf16.mxu0 %v7500_v8  ;;  %2206 = vmatprep.subr.bf16.mxu1 %v7501_v22 }
 0x500   :  { %2166 = vmatpush2.bf16.msra.mxu0 %v7502_v0  ;;  %2207 = vmatpush2.bf16.msra.mxu1 %v7503_v13 }
 0x501   :  { %2167 = vmatprep.subr.bf16.mxu0 %v7504_v15  ;;  %2208 = vmatprep.subr.bf16.mxu1 %v7505_v25  ;;  %v7517_v25 = vld [vmem:[#allocation7_spill] sm:$0xff] }
 0x504   :  { %2168 = vmatpush2.bf16.msra.mxu0 %v7506_v20  ;;  %2209 = vmatpush2.bf16.msra.mxu1 %v7507_v11  ;;  %v7516_v11 = vld [vmem:[#allocation6_spill] sm:$0xff] }
 0x505   :  { %2169 = vmatprep.subr.bf16.mxu0 %v7508_v21  ;;  %2210 = vmatprep.subr.bf16.mxu1 %v7509_v17 }
 0x508   :  { %2170 = vmatpush2.bf16.msra.mxu0 %v7510_v16  ;;  %2211 = vmatpush2.bf16.msra.mxu1 %v7511_v24 }
 0x509   :  { %2250 = vmatprep.subr.bf16.mxu0 %v5888_v29  ;;  %2291 = vmatprep.subr.bf16.mxu1 %v7513_v28 }
 0x56b   :  { %v1881_v43 = vpop.f32.mrf.mxu0  ;;  %v1922_v45 = vpop.f32.mrf.mxu1 }
 0x56c   :  { %v1882_v48 = vadd.f32 %v1881_v43, %v7514_v46  ;;  %v1923_v29 = vadd.f32 %v1922_v45, %v7516_v11 }
 0x56d   :  { %v1883_v49 = vpop.f32.mrf.mxu0  ;;  %v1924_v51 = vpop.f32.mrf.mxu1 }
 0x56e   :  { %v3411_v52 = vmul.f32 -1.442695, %v1882_v48  ;;  %v1884_v18 = vadd.f32 %v1883_v49, %v7515_v53  ;;  %v3413_v20 = vmul.f32 -1.442695, %v1923_v29  ;;  %v1925_v15 = vadd.f32 %v1924_v51, %v7517_v25 }
 0x56f   :  { %v1885_v56 = vpop.f32.mrf.mxu0  ;;  %v1926_v24 = vpop.f32.mrf.mxu1 }
 0x570   :  { %3822 = vpow2.f32 %v3411_v52  ;;  %v3412_v16 = vmul.f32 -1.442695, %v1884_v18 }
 0x571   :  { %v1886_v17 = vpop.f32.mrf.mxu0  ;;  %v1927_v21 = vpop.f32.mrf.mxu1 }
 0x572   :  { %3824 = vpow2.f32 %v3412_v16 }
 0x573   :  { %3826 = vpow2.f32 %v3413_v20 }
 0x57d   :  { %v3823_v28 = vpop.eup %3822 }
 0x57e   :  { %v1938_v43 = vadd.f32 1.0, %v3823_v28 }
 0x57f   :  { %v3825_v46 = vpop.eup %3824 }
 0x580   :  { %3828 = vrcp.f32 %v1938_v43  ;;  %v1939_v48 = vadd.f32 1.0, %v3825_v46  ;;  %v3827_v49 = vpop.eup %3826 }
 0x581   :  { %3830 = vtanh.f32 %v1925_v15  ;;  %v1940_v16 = vadd.f32 1.0, %v3827_v49 }
 0x582   :  { %3832 = vrcp.f32 %v1939_v48 }
 0x583   :  { %3834 = vrcp.f32 %v1940_v16 }
 0x58b   :  { %v1992_v24 = vpop.f32.mrf.mxu0  ;;  %v2033_v52 = vpop.f32.mrf.mxu1 }
 0x58c   :  { %v2044_v18 = vrot.slane %v1992_v24, 4  ;;  %v2048_v17 = vrot.slane %v1992_v24, 5 }
 0x58d   :  { %v3829_v21 = vpop.eup %3828  ;;  %v1994_v56 = vpop.f32.mrf.mxu0 }
 0x58e   :  { %v2035_v45 = vpop.f32.mrf.mxu1  ;;  %v3831_v29 = vpop.eup %3830  ;;  %v2060_v20 = vadd.f32 %v2044_v18, %v7316_v5  ;;  %v2064_v51 = vadd.f32 %v2048_v17, %v7372_v44  ;;  %v2045_v25 = vrot.slane %v1994_v56, 4  ;;  %v2049_v43 = vrot.slane %v1994_v56, 5 }
 0x58f   :  { %v3833_v28 = vpop.eup %3832  ;;  %v1996_v46 = vpop.f32.mrf.mxu0  ;;  %v1949_v11 = vmul.f32 %v3831_v29, %v3829_v21  ;;  %v2047_v16 = vrot.slane %v2035_v45, 4  ;;  %v2051_v29 = vrot.slane %v2035_v45, 5 }
 0x590   :  { %v2037_v15 = vpop.f32.mrf.mxu1  ;;  %v1948_v48 = vmul.f32 %v3833_v28, %v5773_v26  ;;  %v3414_v53 = vmul.f32 -1.442695, %v2060_v20  ;;  %v3417_v13 = vmul.f32 -1.442695, %v2064_v51  ;;  %v2061_v49 = vadd.f32 %v2045_v25, %v7318_v61 }
 0x591   :  { %v2065_v24 = vadd.f32 %v2049_v43, %v7317_v27  ;;  %v1997_v0 = vpop.f32.mrf.mxu0  ;;  %v2046_v46 = vrot.slane %v2033_v52, 4  ;;  %v2050_v26 = vrot.slane %v2033_v52, 5  ;;  %v2067_v51 = vadd.f32 %v2051_v29, %v7373_v50 }
 0x592   :  { %v2038_v22 = vpop.f32.mrf.mxu1  ;;  %v5901_v18 = vadd.f32 %v1949_v11, %v1948_v48  ;;  %3836 = vpow2.f32 %v3414_v53  ;;  %v3415_v17 = vmul.f32 -1.442695, %v2061_v49 }
 0x593   :  { %3838 = vpow2.f32 %v3417_v13  ;;  %v3418_v56 = vmul.f32 -1.442695, %v2065_v24  ;;  %v2062_v21 = vadd.f32 %v2046_v46, %v7319_v6  ;;  %v2066_v25 = vadd.f32 %v2050_v26, %v4901_v4  ;;  %v3835_v22 = vpop.eup %3834 }
 0x594   :  { %3840 = vtanh.f32 %v5901_v18  ;;  %v2063_v13 = vadd.f32 %v2047_v16, %v4904_v1 }
 0x595   :  { %3842 = vpow2.f32 %v3415_v17  ;;  %v3416_v0 = vmul.f32 -1.442695, %v2062_v21  ;;  %v3419_v11 = vmul.f32 -1.442695, %v2066_v25 }
 0x596   :  { %3844 = vpow2.f32 %v3418_v56 }
 0x597   :  { %3846 = vpow2.f32 %v3416_v0 }
 0x598   :  { %3848 = vpow2.f32 %v3419_v11 }
 0x599   :  { %3850 = vtanh.f32 %v2063_v13  ;;  %v2109_v13 = vrot.slane %v5784_v58, 7 }
 0x59a   :  { %3852 = vtanh.f32 %v2067_v51 }
 0x59f   :  { %v3837_v20 = vpop.eup %3836 }
 0x5a0   :  { %v3839_v53 = vpop.eup %3838  ;;  %v2086_v43 = vadd.f32 1.0, %v3837_v20 }
 0x5a1   :  { %v3841_v28 = vpop.eup %3840  ;;  %v2089_v52 = vadd.f32 1.0, %v3839_v53 }
 0x5a2   :  { %v1952_v15 = vmul.f32 %v3841_v28, %v3835_v22  ;;  %v3843_v48 = vpop.eup %3842  ;;  %3854 = vrcp.f32 %v2086_v43  ;;  %v2108_v22 = vrot.slane %v5782_v14, 7 }
 0x5a3   :  { %v3845_v45 = vpop.eup %3844  ;;  %v2087_v24 = vadd.f32 1.0, %v3843_v48  ;;  %3856 = vrcp.f32 %v2089_v52 }
 0x5a4   :  { %v2124_v49 = vpack.c.bf16 %v1952_v15, %v1952_v15  ;;  %v2090_v17 = vadd.f32 1.0, %v3845_v45  ;;  %v3847_v26 = vpop.eup %3846 }
 0x5a5   :  { %3858 = vrcp.f32 %v2087_v24  ;;  %v3849_v21 = vpop.eup %3848  ;;  %v2088_v11 = vadd.f32 1.0, %v3847_v26 }
 0x5a6   :  { %v2134_v56 = vrot.slane %v2124_v49, 6  ;;  %3860 = vrcp.f32 %v2090_v17  ;;  %v3851_v25 = vpop.eup %3850  ;;  %v2091_v53 = vadd.f32 1.0, %v3849_v21 }
 0x5a7   :  { %v3853_v16 = vpop.eup %3852  ;;  %3862 = vrcp.f32 %v2088_v11 }
 0x5a8   :  { %v2136_v46 = vrot.slane %v2134_v56, 2  ;;  %3864 = vrcp.f32 %v2091_v53  ;;  %v5922_v53 = vld [vmem:[%s6791_s2 + $0xe0] ss:$16 sps:$4 sm:$0xff]  }
 0x5aa   :  { %2171 = vmatprep.mubr.bf16.mxu0 %v2136_v46  ;;  %2212 = vmatprep.mubr.bf16.mxu1 %v2136_v46 }
 0x5af   :  { %v3855_v29 = vpop.eup %3854 }
 0x5b0   :  { %v3857_v0 = vpop.eup %3856  ;;  %v2114_v43 = vmul.f32 %v3855_v29, %v3851_v25 }
 0x5b1   :  { %v2115_v15 = vmul.f32 %v3857_v0, %v3853_v16 }
 0x5b2   :  { %v3859_v20 = vpop.eup %3858 }
 0x5b3   :  { %v3861_v51 = vpop.eup %3860  ;;  %v2112_v28 = vmul.f32 %v3859_v20, %v2108_v22 }
 0x5b4   :  { %v2113_v52 = vmul.f32 %v3861_v51, %v2109_v13  ;;  %v3863_v14 = vpop.eup %3862  ;;  %v5928_v51 = vld [vmem:[%s6791_s2 + $0xe8] ss:$16 sps:$4 sm:$0xff]  }
 0x5b5   :  { %v5910_v48 = vadd.f32 %v2114_v43, %v2112_v28  ;;  %v3865_v45 = vpop.eup %3864  ;;  %v5934_v28 = vld [vmem:[%s6791_s2 + $0xc4] ss:$16 sps:$4 sm:$0xff]   ;;  %v5940_v43 = vld [vmem:[%s6791_s2 + $0xcc] ss:$16 sps:$4 sm:$0xff]  }
 0x5b6   :  { %v5912_v49 = vadd.f32 %v2115_v15, %v2113_v52  ;;  %v5948_v52 = vld [vmem:[%s6791_s2 + $0xc0] ss:$16 sps:$4 sm:$0xff]   ;;  %v5954_v15 = vld [vmem:[%s6791_s2 + $0xc8] ss:$16 sps:$4 sm:$0xff]  }
 0x5b7   :  { %3866 = vtanh.f32 %v5910_v48 }
 0x5b8   :  { %3868 = vtanh.f32 %v5912_v49 }
 0x5c4   :  { %v3867_v24 = vpop.eup %3866 }
 0x5c5   :  { %v3869_v58 = vpop.eup %3868  ;;  %v2120_v17 = vmul.f32 %v3867_v24, %v3863_v14  ;;  %v5960_v14 = vld [vmem:[%s6791_s2 + $0xa4] ss:$16 sps:$4 sm:$0xff]   ;;  %v5972_v24 = vld [vmem:[%s6791_s2 + $0xa0] ss:$16 sps:$4 sm:$0xff]  }
 0x5c6   :  { %v2121_v56 = vmul.f32 %v3869_v58, %v3865_v45  ;;  %v5966_v45 = vld [vmem:[%s6791_s2 + $0xac] ss:$16 sps:$4 sm:$0xff]   ;;  %v5978_v58 = vld [vmem:[%s6791_s2 + $0xa8] ss:$16 sps:$4 sm:$0xff]  }
 0x5c7   :  { %v2122_v46 = vpack.c.bf16 %v2120_v17, %v2120_v17  ;;  %v5984_v17 = vld [vmem:[%s6791_s2 + $0x84] ss:$16 sps:$4 sm:$0xff]  }
 0x5c8   :  { %v2123_v26 = vpack.c.bf16 %v2121_v56, %v2121_v56  ;;  %v5990_v56 = vld [vmem:[%s6791_s2 + $0x8c] ss:$16 sps:$4 sm:$0xff]  }
 0x5c9   :  { %v2127_v21 = vunpack.c.l.b16 %v2122_v46  ;;  %v5996_v46 = vld [vmem:[%s6791_s2 + $0x80] ss:$16 sps:$4 sm:$0xff]  }
 0x5ca   :  { %v2128_v25 = vunpack.c.l.b16 %v2123_v26  ;;  %v6002_v26 = vld [vmem:[%s6791_s2 + $0x88] ss:$16 sps:$4 sm:$0xff]  }
 0x5cb   :  { %v2245_v16 = vrot.slane %v2127_v21, 4 }
 0x5cc   :  { %v2129_v29 = vrot.slane %v2128_v25, 7  ;;  %v2246_v0 = vrot.slane %v2128_v25, 3  ;;  %v6014_v25 = vld [vmem:[%s6791_s2 + $0x6c] ss:$16 sps:$4 sm:$0xff]  }
 0x5ce   :  { %v2131_v22 = vsel %vm2130_vm6, %v2129_v29, %v2127_v21  ;;  %v5917_v11 = vsel %vm599_vm2, %v2246_v0, %v2245_v16  ;;  %v6008_v21 = vld [vmem:[%s6791_s2 + $0x64] ss:$16 sps:$4 sm:$0xff]   ;;  %v6020_v16 = vld [vmem:[%s6791_s2 + $0x60] ss:$16 sps:$4 sm:$0xff]   ;;  %v6026_v29 = vld [vmem:[%s6791_s2 + $0x68] ss:$16 sps:$4 sm:$0xff]  }
 0x5cf   :  { %v2132_v20 = vpack.c.b16 %v2131_v22, %v2131_v22  ;;  %v6032_v0 = vld [vmem:[%s6791_s2 + $0x44] ss:$16 sps:$4 sm:$0xff]   ;;  %v6038_v22 = vld [vmem:[%s6791_s2 + $0x4c] ss:$16 sps:$4 sm:$0xff]  }
 0x5d0   :  { %7518 = vst [vmem:[#allocation22_spill] sm:$0xff] %v6032_v0  ;;  %7519 = vst [vmem:[#allocation23_spill] sm:$0xff] %v6038_v22 }
 0x5d1   :  { %v2135_v13 = vrot.slane %v2132_v20, 2  ;;  %v6044_v20 = vld [vmem:[%s6791_s2 + $0x40] ss:$16 sps:$4 sm:$0xff]  }
 0x5d2   :  { %7520 = vst [vmem:[#allocation24_spill] sm:$0xff] %v6044_v20 }
 0x5d3   :  { %2172 = vmatmul.mubr.bf16.vlgmr.msra.gmra.mxu0 %v2135_v13  ;;  %2213 = vmatmul.mubr.bf16.vlgmr.msra.gmra.mxu1 %v2135_v13  ;;  %v6050_v13 = vld [vmem:[%s6791_s2 + $0x48] ss:$16 sps:$4 sm:$0xff]  }
 0x5d4   :  { %2251 = vmatpush1.bf16.msra.mxu0 %v5922_v53  ;;  %2292 = vmatpush1.bf16.msra.mxu1 %v5928_v51  ;;  %7521 = vst [vmem:[#allocation25_spill] sm:$0xff] %v6050_v13 }
 0x5d5   :  { %2252 = vmatprep.subr.bf16.mxu0 %v5934_v28  ;;  %2293 = vmatprep.subr.bf16.mxu1 %v5940_v43 }
 0x5d6   :  { %2282 = vmatprep.mubr.bf16.mxu0 %v7251_v9  ;;  %2323 = vmatprep.mubr.bf16.mxu1 %v7251_v9 }
 0x5d8   :  { %2253 = vmatpush1.bf16.msra.mxu0 %v5948_v52  ;;  %2294 = vmatpush1.bf16.msra.mxu1 %v5954_v15 }
 0x5d9   :  { %2254 = vmatprep.subr.bf16.mxu0 %v5960_v14  ;;  %2295 = vmatprep.subr.bf16.mxu1 %v5966_v45 }
 0x5dc   :  { %2255 = vmatpush1.bf16.msra.mxu0 %v5972_v24  ;;  %2296 = vmatpush1.bf16.msra.mxu1 %v5978_v58 }
 0x5dd   :  { %2256 = vmatprep.subr.bf16.mxu0 %v5984_v17  ;;  %2297 = vmatprep.subr.bf16.mxu1 %v5990_v56 }
 0x5e0   :  { %2257 = vmatpush1.bf16.msra.mxu0 %v5996_v46  ;;  %2298 = vmatpush1.bf16.msra.mxu1 %v6002_v26 }
 0x5e1   :  { %2258 = vmatprep.subr.bf16.mxu0 %v6008_v21  ;;  %2299 = vmatprep.subr.bf16.mxu1 %v6014_v25 }
 0x5e4   :  { %2259 = vmatpush1.bf16.msra.mxu0 %v6020_v16  ;;  %2300 = vmatpush1.bf16.msra.mxu1 %v6026_v29 }
 0x5e5   :  { %2260 = vmatprep.subr.bf16.mxu0 %v6032_v0  ;;  %2301 = vmatprep.subr.bf16.mxu1 %v6038_v22  ;;  %v6056_v0 = vld [vmem:[%s6791_s2 + $0x24] ss:$16 sps:$4 sm:$0xff]   ;;  %v6062_v22 = vld [vmem:[%s6791_s2 + $0x2c] ss:$16 sps:$4 sm:$0xff]  }
 0x5e6   :  { %7522 = vst [vmem:[#allocation26_spill] sm:$0xff] %v6056_v0  ;;  %7523 = vst [vmem:[#allocation27_spill] sm:$0xff] %v6062_v22 }
 0x5e8   :  { %2261 = vmatpush1.bf16.msra.mxu0 %v6044_v20  ;;  %2302 = vmatpush1.bf16.msra.mxu1 %v6050_v13  ;;  %v6068_v20 = vld [vmem:[%s6791_s2 + $0x20] ss:$16 sps:$4 sm:$0xff]   ;;  %v6074_v13 = vld [vmem:[%s6791_s2 + $0x28] ss:$16 sps:$4 sm:$0xff]  }
 0x5e9   :  { %2262 = vmatprep.subr.bf16.mxu0 %v6056_v0  ;;  %2303 = vmatprep.subr.bf16.mxu1 %v6062_v22  ;;  %7524 = vst [vmem:[#allocation28_spill] sm:$0xff] %v6068_v20  ;;  %7525 = vst [vmem:[#allocation29_spill] sm:$0xff] %v6074_v13  ;;  %v6080_v0 = vld [vmem:[%s6791_s2 + $0x4] ss:$16 sps:$4 sm:$0xff]   ;;  %v6086_v22 = vld [vmem:[%s6791_s2 + $0xc] ss:$16 sps:$4 sm:$0xff]  }
 0x5ea   :  { %7526 = vst [vmem:[#allocation30_spill] sm:$0xff] %v6080_v0  ;;  %7527 = vst [vmem:[#allocation31_spill] sm:$0xff] %v6086_v22 }
 0x5ec   :  { %2263 = vmatpush1.bf16.msra.mxu0 %v6068_v20  ;;  %2304 = vmatpush1.bf16.msra.mxu1 %v6074_v13  ;;  %v6092_v20 = vld [vmem:[%s6791_s2] ss:$16 sps:$4 sm:$0xff]   ;;  %v6098_v13 = vld [vmem:[%s6791_s2 + $0x8] ss:$16 sps:$4 sm:$0xff]  }
 0x5ed   :  { %2264 = vmatprep.subr.bf16.mxu0 %v6080_v0  ;;  %2305 = vmatprep.subr.bf16.mxu1 %v6086_v22  ;;  %7528 = vst [vmem:[#allocation32_spill] sm:$0xff] %v6092_v20  ;;  %7529 = vst [vmem:[#allocation33_spill] sm:$0xff] %v6098_v13  ;;  %v2248_v0 = vpack.c.b16 %v5917_v11, %v5917_v11  ;;  %v6106_v22 = vld [vmem:[%s6794_s4 + $0xe4] ss:$16 sps:$4 sm:$0xff]   ;;  %v6118_v11 = vld [vmem:[%s6794_s4 + $0xe0] ss:$16 sps:$4 sm:$0xff]  }
 0x5ee   :  { %7530 = vst [vmem:[#allocation34_spill] sm:$0xff] %v6106_v22  ;;  %7532 = vst [vmem:[#allocation36_spill] sm:$0xff] %v6118_v11 }
 0x5f0   :  { %2265 = vmatpush1.bf16.msra.mxu0 %v6092_v20  ;;  %2306 = vmatpush1.bf16.msra.mxu1 %v6098_v13  ;;  %v6112_v20 = vld [vmem:[%s6794_s4 + $0xec] ss:$16 sps:$4 sm:$0xff]  }
 0x5f1   :  { %2451 = vmatprep.subr.bf16.mxu0 %v6106_v22  ;;  %7531 = vst [vmem:[#allocation35_spill] sm:$0xff] %v6112_v20  ;;  %2492 = vmatprep.subr.bf16.mxu1 %v6112_v20  ;;  %v6124_v22 = vld [vmem:[%s6794_s4 + $0xe8] ss:$16 sps:$4 sm:$0xff]   ;;  %v6130_v20 = vld [vmem:[%s6794_s4 + $0xc4] ss:$16 sps:$4 sm:$0xff]  }
 0x5f2   :  { %7533 = vst [vmem:[#allocation37_spill] sm:$0xff] %v6124_v22  ;;  %7534 = vst [vmem:[#allocation38_spill] sm:$0xff] %v6130_v20 }
 0x5f3   :  { %2283 = vmatmul.mubr.bf16.vlgmr.msra.gmra.mxu0 %v2248_v0  ;;  %2324 = vmatmul.mubr.bf16.vlgmr.msra.gmra.mxu1 %v2248_v0  ;;  %v6136_v0 = vld [vmem:[%s6794_s4 + $0xcc] ss:$16 sps:$4 sm:$0xff]  }
 0x5f4   :  { %2452 = vmatpush1.bf16.msra.mxu0 %v6118_v11  ;;  %2493 = vmatpush1.bf16.msra.mxu1 %v6124_v22  ;;  %7535 = vst [vmem:[#allocation39_spill] sm:$0xff] %v6136_v0  ;;  %v6142_v11 = vld [vmem:[%s6794_s4 + $0xc0] ss:$16 sps:$4 sm:$0xff]   ;;  %v6148_v22 = vld [vmem:[%s6794_s4 + $0xc8] ss:$16 sps:$4 sm:$0xff]  }
 0x5f5   :  { %2453 = vmatprep.subr.bf16.mxu0 %v6130_v20  ;;  %2494 = vmatprep.subr.bf16.mxu1 %v6136_v0  ;;  %7536 = vst [vmem:[#allocation40_spill] sm:$0xff] %v6142_v11  ;;  %7537 = vst [vmem:[#allocation41_spill] sm:$0xff] %v6148_v22  ;;  %v6154_v20 = vld [vmem:[%s6794_s4 + $0xa4] ss:$16 sps:$4 sm:$0xff]   ;;  %v6160_v0 = vld [vmem:[%s6794_s4 + $0xac] ss:$16 sps:$4 sm:$0xff]  }
 0x5f6   :  { %7538 = vst [vmem:[#allocation42_spill] sm:$0xff] %v6154_v20  ;;  %7539 = vst [vmem:[#allocation43_spill] sm:$0xff] %v6160_v0 }
 0x5f8   :  { %2454 = vmatpush1.bf16.msra.mxu0 %v6142_v11  ;;  %2495 = vmatpush1.bf16.msra.mxu1 %v6148_v22  ;;  %v6166_v11 = vld [vmem:[%s6794_s4 + $0xa0] ss:$16 sps:$4 sm:$0xff]   ;;  %v6172_v22 = vld [vmem:[%s6794_s4 + $0xa8] ss:$16 sps:$4 sm:$0xff]  }
 0x5f9   :  { %2455 = vmatprep.subr.bf16.mxu0 %v6154_v20  ;;  %2496 = vmatprep.subr.bf16.mxu1 %v6160_v0  ;;  %7540 = vst [vmem:[#allocation44_spill] sm:$0xff] %v6166_v11  ;;  %7541 = vst [vmem:[#allocation45_spill] sm:$0xff] %v6172_v22  ;;  %v6178_v20 = vld [vmem:[%s6794_s4 + $0x84] ss:$16 sps:$4 sm:$0xff]   ;;  %v6184_v0 = vld [vmem:[%s6794_s4 + $0x8c] ss:$16 sps:$4 sm:$0xff]  }
 0x5fa   :  { %7542 = vst [vmem:[#allocation47_spill] sm:$0xff] %v6178_v20  ;;  %7543 = vst [vmem:[#allocation48_spill] sm:$0xff] %v6184_v0 }
 0x5fc   :  { %2456 = vmatpush1.bf16.msra.mxu0 %v6166_v11  ;;  %2497 = vmatpush1.bf16.msra.mxu1 %v6172_v22  ;;  %v6190_v11 = vld [vmem:[%s6794_s4 + $0x80] ss:$16 sps:$4 sm:$0xff]   ;;  %v6196_v22 = vld [vmem:[%s6794_s4 + $0x88] ss:$16 sps:$4 sm:$0xff]  }
 0x5fd   :  { %2457 = vmatprep.subr.bf16.mxu0 %v6178_v20  ;;  %2498 = vmatprep.subr.bf16.mxu1 %v6184_v0  ;;  %7544 = vst [vmem:[#allocation2_spill] sm:$0xff] %v6190_v11  ;;  %7545 = vst [vmem:[#allocation56_spill] sm:$0xff] %v6196_v22  ;;  %v6202_v20 = vld [vmem:[%s6794_s4 + $0x64] ss:$16 sps:$4 sm:$0xff]   ;;  %v6208_v0 = vld [vmem:[%s6794_s4 + $0x6c] ss:$16 sps:$4 sm:$0xff]  }
 0x5fe   :  { %7546 = vst [vmem:[#allocation59_spill] sm:$0xff] %v6202_v20  ;;  %7547 = vst [vmem:[#allocation57_spill] sm:$0xff] %v6208_v0 }
 0x600   :  { %2458 = vmatpush1.bf16.msra.mxu0 %v6190_v11  ;;  %2499 = vmatpush1.bf16.msra.mxu1 %v6196_v22  ;;  %v6214_v11 = vld [vmem:[%s6794_s4 + $0x60] ss:$16 sps:$4 sm:$0xff]   ;;  %v6220_v22 = vld [vmem:[%s6794_s4 + $0x68] ss:$16 sps:$4 sm:$0xff]  }
 0x601   :  { %2459 = vmatprep.subr.bf16.mxu0 %v6202_v20  ;;  %2500 = vmatprep.subr.bf16.mxu1 %v6208_v0  ;;  %7548 = vst [vmem:[#allocation60_spill] sm:$0xff] %v6214_v11  ;;  %7549 = vst [vmem:[#allocation49_spill] sm:$0xff] %v6220_v22  ;;  %v6226_v20 = vld [vmem:[%s6794_s4 + $0x44] ss:$16 sps:$4 sm:$0xff]   ;;  %v6232_v0 = vld [vmem:[%s6794_s4 + $0x4c] ss:$16 sps:$4 sm:$0xff]  }
 0x602   :  { %7550 = vst [vmem:[#allocation50_spill] sm:$0xff] %v6226_v20  ;;  %7551 = vst [vmem:[#allocation51_spill] sm:$0xff] %v6232_v0 }
 0x604   :  { %2460 = vmatpush1.bf16.msra.mxu0 %v6214_v11  ;;  %2501 = vmatpush1.bf16.msra.mxu1 %v6220_v22  ;;  %v6238_v11 = vld [vmem:[%s6794_s4 + $0x40] ss:$16 sps:$4 sm:$0xff]   ;;  %v6244_v22 = vld [vmem:[%s6794_s4 + $0x48] ss:$16 sps:$4 sm:$0xff]  }
 0x605   :  { %2461 = vmatprep.subr.bf16.mxu0 %v6226_v20  ;;  %2502 = vmatprep.subr.bf16.mxu1 %v6232_v0  ;;  %7552 = vst [vmem:[#allocation52_spill] sm:$0xff] %v6238_v11  ;;  %7553 = vst [vmem:[#allocation53_spill] sm:$0xff] %v6244_v22 }
 0x608   :  { %2462 = vmatpush1.bf16.msra.mxu0 %v6238_v11  ;;  %2503 = vmatpush1.bf16.msra.mxu1 %v6244_v22 }
 0x609   :  { %2463 = vmatprep.subr.bf16.mxu0 %v7472_v57  ;;  %2504 = vmatprep.subr.bf16.mxu1 %v7473_v62  ;;  %v7554_v57 = vld [vmem:[#allocation20_spill] sm:$0xff]  ;;  %v7555_v62 = vld [vmem:[#allocation62_spill] sm:$0xff] }
 0x60c   :  { %2464 = vmatpush1.bf16.msra.mxu0 %v7474_v40  ;;  %2505 = vmatpush1.bf16.msra.mxu1 %v7475_v42  ;;  %v7556_v40 = vld [vmem:[#allocation63_spill] sm:$0xff]  ;;  %v7557_v42 = vld [vmem:[#allocation64_spill] sm:$0xff] }
 0x60d   :  { %2465 = vmatprep.subr.bf16.mxu0 %v7476_v19  ;;  %2506 = vmatprep.subr.bf16.mxu1 %v7477_v32  ;;  %v7558_v19 = vld [vmem:[#allocation65_spill] sm:$0xff]  ;;  %v7559_v32 = vld [vmem:[#allocation66_spill] sm:$0xff] }
 0x610   :  { %2466 = vmatpush1.bf16.msra.mxu0 %v7478_v63  ;;  %2507 = vmatpush1.bf16.msra.mxu1 %v7479_v38  ;;  %v7560_v63 = vld [vmem:[#allocation67_spill] sm:$0xff]  ;;  %v7561_v38 = vld [vmem:[#allocation68_spill] sm:$0xff] }
 0x611   :  { %2467 = vmatprep.subr.bf16.mxu0 %v7480_v55  ;;  %2508 = vmatprep.subr.bf16.mxu1 %v7481_v23  ;;  %v7562_v55 = vld [vmem:[#allocation69_spill] sm:$0xff]  ;;  %v7563_v23 = vld [vmem:[#allocation70_spill] sm:$0xff] }
 0x614   :  { %2468 = vmatpush2.bf16.msra.mxu0 %v7482_v12  ;;  %2509 = vmatpush2.bf16.msra.mxu1 %v7483_v54  ;;  %v7564_v12 = vld [vmem:[#allocation71_spill] sm:$0xff]  ;;  %v7565_v54 = vld [vmem:[#allocation21_spill] sm:$0xff] }
 0x615   :  { %2469 = vmatprep.subr.bf16.mxu0 %v7484_v10  ;;  %2510 = vmatprep.subr.bf16.mxu1 %v7485_v47  ;;  %v6291_v10 = vld [vmem:[%s6791_s2 + $0xec] ss:$16 sps:$4 sm:$0xff]  }
 0x618   :  { %2470 = vmatpush2.bf16.msra.mxu0 %v7486_v36  ;;  %2511 = vmatpush2.bf16.msra.mxu1 %v7487_v37  ;;  %v7566_v37 = vld [vmem:[#allocation4_spill] sm:$0xff] }
 0x619   :  { %2471 = vmatprep.subr.bf16.mxu0 %v7488_v39  ;;  %2512 = vmatprep.subr.bf16.mxu1 %v7489_v33 }
 0x61c   :  { %2472 = vmatpush2.bf16.msra.mxu0 %v7490_v60  ;;  %2513 = vmatpush2.bf16.msra.mxu1 %v7491_v41 }
 0x61d   :  { %2473 = vmatprep.subr.bf16.mxu0 %v7492_v30  ;;  %2514 = vmatprep.subr.bf16.mxu1 %v7493_v2  ;;  %v7567_v30 = vld [vmem:[#allocation5_spill] sm:$0xff] }
 0x620   :  { %2474 = vmatpush2.bf16.msra.mxu0 %v7494_v35  ;;  %2515 = vmatpush2.bf16.msra.mxu1 %v7495_v31 }
 0x621   :  { %2475 = vmatprep.subr.bf16.mxu0 %v7496_v34  ;;  %2516 = vmatprep.subr.bf16.mxu1 %v7497_v3 }
 0x624   :  { %2476 = vmatpush2.bf16.msra.mxu0 %v7498_v59  ;;  %2517 = vmatpush2.bf16.msra.mxu1 %v7499_v7  ;;  %v7568_v7 = vld [vmem:[#allocation6_spill] sm:$0xff] }
 0x625   :  { %2477 = vmatprep.subr.bf16.mxu0 %v7500_v8  ;;  %2518 = vmatprep.subr.bf16.mxu1 %v7554_v57 }
 0x628   :  { %2478 = vmatpush2.bf16.msra.mxu0 %v7555_v62  ;;  %2519 = vmatpush2.bf16.msra.mxu1 %v7556_v40  ;;  %v7569_v40 = vld [vmem:[#allocation7_spill] sm:$0xff] }
 0x629   :  { %2479 = vmatprep.subr.bf16.mxu0 %v7557_v42  ;;  %2520 = vmatprep.subr.bf16.mxu1 %v7558_v19 }
 0x62c   :  { %2480 = vmatpush2.bf16.msra.mxu0 %v7559_v32  ;;  %2521 = vmatpush2.bf16.msra.mxu1 %v7560_v63 }
 0x62d   :  { %2481 = vmatprep.subr.bf16.mxu0 %v7561_v38  ;;  %2522 = vmatprep.subr.bf16.mxu1 %v7562_v55 }
 0x630   :  { %2482 = vmatpush2.bf16.msra.mxu0 %v7563_v23  ;;  %2523 = vmatpush2.bf16.msra.mxu1 %v7564_v12 }
 0x631   :  { %2562 = vmatprep.subr.bf16.mxu0 %v7565_v54  ;;  %2603 = vmatprep.subr.bf16.mxu1 %v6291_v10 }
 0x693   :  { %v2173_v47 = vpop.f32.mrf.mxu0  ;;  %v2214_v36 = vpop.f32.mrf.mxu1 }
 0x694   :  { %v2174_v39 = vadd.f32 %v2173_v47, %v7566_v37  ;;  %v2215_v8 = vadd.f32 %v2214_v36, %v7568_v7 }
 0x695   :  { %v2175_v33 = vpop.f32.mrf.mxu0  ;;  %v2216_v60 = vpop.f32.mrf.mxu1 }
 0x696   :  { %v3420_v41 = vmul.f32 -1.442695, %v2174_v39  ;;  %v2176_v2 = vadd.f32 %v2175_v33, %v7567_v30  ;;  %v3422_v57 = vmul.f32 -1.442695, %v2215_v8  ;;  %v2217_v42 = vadd.f32 %v2216_v60, %v7569_v40 }
 0x697   :  { %v2177_v35 = vpop.f32.mrf.mxu0  ;;  %v2218_v31 = vpop.f32.mrf.mxu1 }
 0x698   :  { %3870 = vpow2.f32 %v3420_v41  ;;  %v3421_v34 = vmul.f32 -1.442695, %v2176_v2 }
 0x699   :  { %v2178_v3 = vpop.f32.mrf.mxu0  ;;  %v2219_v59 = vpop.f32.mrf.mxu1 }
 0x69a   :  { %3872 = vpow2.f32 %v3421_v34 }
 0x69b   :  { %3874 = vpow2.f32 %v3422_v57 }
 0x6a5   :  { %v3871_v62 = vpop.eup %3870 }
 0x6a6   :  { %v2230_v19 = vadd.f32 1.0, %v3871_v62 }
 0x6a7   :  { %v3873_v32 = vpop.eup %3872 }
 0x6a8   :  { %3876 = vrcp.f32 %v2230_v19  ;;  %v2231_v63 = vadd.f32 1.0, %v3873_v32  ;;  %v3875_v38 = vpop.eup %3874 }
 0x6a9   :  { %3878 = vtanh.f32 %v2217_v42  ;;  %v2232_v33 = vadd.f32 1.0, %v3875_v38 }
 0x6aa   :  { %3880 = vrcp.f32 %v2231_v63 }
 0x6ab   :  { %3882 = vrcp.f32 %v2232_v33 }
 0x6b3   :  { %v2284_v55 = vpop.f32.mrf.mxu0  ;;  %v2325_v23 = vpop.f32.mrf.mxu1 }
 0x6b4   :  { %v2336_v12 = vrot.slane %v2284_v55, 3  ;;  %v2340_v47 = vrot.slane %v2284_v55, 4 }
 0x6b5   :  { %v3877_v39 = vpop.eup %3876  ;;  %v2286_v41 = vpop.f32.mrf.mxu0 }
 0x6b6   :  { %v2327_v36 = vpop.f32.mrf.mxu1  ;;  %v3879_v2 = vpop.eup %3878  ;;  %v2352_v35 = vadd.f32 %v2336_v12, %v7316_v5  ;;  %v2356_v60 = vadd.f32 %v2340_v47, %v7372_v44  ;;  %v2337_v34 = vrot.slane %v2286_v41, 3  ;;  %v2341_v3 = vrot.slane %v2286_v41, 4 }
 0x6b7   :  { %v3881_v31 = vpop.eup %3880  ;;  %v2288_v59 = vpop.f32.mrf.mxu0  ;;  %v2241_v62 = vmul.f32 %v3879_v2, %v3877_v39  ;;  %v2339_v2 = vrot.slane %v2327_v36, 3 }
 0x6b8   :  { %v2329_v8 = vpop.f32.mrf.mxu1  ;;  %v2240_v57 = vmul.f32 %v3881_v31, %v5901_v18  ;;  %v3423_v42 = vmul.f32 -1.442695, %v2352_v35  ;;  %v3426_v19 = vmul.f32 -1.442695, %v2356_v60  ;;  %v2353_v32 = vadd.f32 %v2337_v34, %v7318_v61  ;;  %v3883_v31 = vpop.eup %3882 }
 0x6b9   :  { %v2357_v63 = vadd.f32 %v2341_v3, %v7317_v27  ;;  %v2289_v38 = vpop.f32.mrf.mxu0  ;;  %v2338_v59 = vrot.slane %v2325_v23, 3  ;;  %v2342_v18 = vrot.slane %v2325_v23, 4  ;;  %v2343_v35 = vrot.slane %v2327_v36, 4 }
 0x6ba   :  { %v2330_v55 = vpop.f32.mrf.mxu1  ;;  %v6303_v12 = vadd.f32 %v2241_v62, %v2240_v57  ;;  %3884 = vpow2.f32 %v3423_v42  ;;  %v3424_v47 = vmul.f32 -1.442695, %v2353_v32  ;;  %v2355_v8 = vadd.f32 %v2339_v2, %v4904_v1 }
 0x6bb   :  { %3886 = vpow2.f32 %v3426_v19  ;;  %v3427_v41 = vmul.f32 -1.442695, %v2357_v63  ;;  %v2354_v39 = vadd.f32 %v2338_v59, %v7319_v6  ;;  %v2358_v33 = vadd.f32 %v2342_v18, %v4901_v4 }
 0x6bc   :  { %3888 = vtanh.f32 %v6303_v12  ;;  %v2359_v62 = vadd.f32 %v2343_v35, %v7373_v50 }
 0x6bd   :  { %3890 = vpow2.f32 %v3424_v47  ;;  %v3425_v60 = vmul.f32 -1.442695, %v2354_v39  ;;  %v3428_v34 = vmul.f32 -1.442695, %v2358_v33 }
 0x6be   :  { %3892 = vpow2.f32 %v3427_v41 }
 0x6bf   :  { %3894 = vpow2.f32 %v3425_v60 }
 0x6c0   :  { %3896 = vpow2.f32 %v3428_v34 }
 0x6c1   :  { %3898 = vtanh.f32 %v2355_v8 }
 0x6c2   :  { %3900 = vtanh.f32 %v2359_v62 }
 0x6c7   :  { %v3885_v3 = vpop.eup %3884 }
 0x6c8   :  { %v3887_v57 = vpop.eup %3886  ;;  %v2378_v19 = vadd.f32 1.0, %v3885_v3 }
 0x6c9   :  { %v3889_v42 = vpop.eup %3888  ;;  %v2381_v23 = vadd.f32 1.0, %v3887_v57 }
 0x6ca   :  { %v2244_v32 = vmul.f32 %v3889_v42, %v3883_v31  ;;  %v3891_v63 = vpop.eup %3890  ;;  %3902 = vrcp.f32 %v2378_v19 }
 0x6cb   :  { %v3893_v36 = vpop.eup %3892  ;;  %v2379_v55 = vadd.f32 1.0, %v3891_v63  ;;  %3904 = vrcp.f32 %v2381_v23  ;;  %v2400_v23 = vrot.slane %v5910_v48, 7 }
 0x6cc   :  { %v2416_v38 = vpack.c.bf16 %v2244_v32, %v2244_v32  ;;  %v2382_v47 = vadd.f32 1.0, %v3893_v36  ;;  %v3895_v60 = vpop.eup %3894 }
 0x6cd   :  { %3906 = vrcp.f32 %v2379_v55  ;;  %v3897_v3 = vpop.eup %3896  ;;  %v2380_v32 = vadd.f32 1.0, %v3895_v60 }
 0x6ce   :  { %v2426_v41 = vshrl.u32 %v2416_v38, 16  ;;  %v2429_v59 = vshll.u32 %v2416_v38, 16  ;;  %3908 = vrcp.f32 %v2382_v47  ;;  %v3899_v8 = vpop.eup %3898  ;;  %v2401_v38 = vrot.slane %v5912_v49, 7 }
 0x6cf   :  { %v3901_v62 = vpop.eup %3900  ;;  %v2383_v36 = vadd.f32 1.0, %v3897_v3  ;;  %3910 = vrcp.f32 %v2380_v32 }
 0x6d0   :  { %v2428_v18 = vrot.slane %v2426_v41, 5  ;;  %v2431_v39 = vrot.slane %v2429_v59, 6 }
 0x6d1   :  { %3912 = vrcp.f32 %v2383_v36 }
 0x6d2   :  { %v2432_v33 = vor.u32 %v2431_v39, %v2428_v18 }
 0x6d4   :  { %v2442_v2 = vshrl.u32 %v2432_v33, 16  ;;  %v2445_v35 = vshll.u32 %v2432_v33, 16 }
 0x6d6   :  { %v2444_v31 = vrot.slane %v2442_v2, 2  ;;  %v2447_v34 = vrot.slane %v2445_v35, 3 }
 0x6d7   :  { %v3903_v42 = vpop.eup %3902 }
 0x6d8   :  { %v2448_v57 = vor.u32 %v2447_v34, %v2444_v31  ;;  %v3905_v19 = vpop.eup %3904  ;;  %v2406_v41 = vmul.f32 %v3903_v42, %v3899_v8 }
 0x6d9   :  { %v2407_v18 = vmul.f32 %v3905_v19, %v3901_v62 }
 0x6da   :  { %2483 = vmatprep.mubr.bf16.mxu0 %v2448_v57  ;;  %2524 = vmatprep.mubr.bf16.mxu1 %v2448_v57  ;;  %v3907_v63 = vpop.eup %3906 }
 0x6db   :  { %v3909_v55 = vpop.eup %3908  ;;  %v2404_v47 = vmul.f32 %v3907_v63, %v2400_v23 }
 0x6dc   :  { %v2405_v59 = vmul.f32 %v3909_v55, %v2401_v38  ;;  %v3911_v48 = vpop.eup %3910 }
 0x6dd   :  { %v6312_v39 = vadd.f32 %v2406_v41, %v2404_v47 }
 0x6de   :  { %v6314_v33 = vadd.f32 %v2407_v18, %v2405_v59  ;;  %v3913_v2 = vpop.eup %3912  ;;  %v7570_v59 = vld [vmem:[#allocation22_spill] sm:$0xff]  ;;  %v7571_v18 = vld [vmem:[#allocation23_spill] sm:$0xff] }
 0x6df   :  { %3914 = vtanh.f32 %v6312_v39 }
 0x6e0   :  { %3916 = vtanh.f32 %v6314_v33 }
 0x6ec   :  { %v3915_v35 = vpop.eup %3914 }
 0x6ed   :  { %v3917_v49 = vpop.eup %3916  ;;  %v2412_v60 = vmul.f32 %v3915_v35, %v3911_v48  ;;  %v7572_v48 = vld [vmem:[#allocation24_spill] sm:$0xff]  ;;  %v7574_v35 = vld [vmem:[#allocation26_spill] sm:$0xff] }
 0x6ee   :  { %v2413_v31 = vmul.f32 %v3917_v49, %v3913_v2  ;;  %v7573_v2 = vld [vmem:[#allocation25_spill] sm:$0xff]  ;;  %v7575_v49 = vld [vmem:[#allocation27_spill] sm:$0xff] }
 0x6ef   :  { %v2414_v34 = vpack.c.bf16 %v2412_v60, %v2412_v60  ;;  %v7576_v60 = vld [vmem:[#allocation28_spill] sm:$0xff] }
 0x6f0   :  { %v2415_v3 = vpack.c.bf16 %v2413_v31, %v2413_v31  ;;  %v7577_v31 = vld [vmem:[#allocation29_spill] sm:$0xff] }
 0x6f1   :  { %v2419_v8 = vunpack.c.l.b16 %v2414_v34  ;;  %v7578_v34 = vld [vmem:[#allocation30_spill] sm:$0xff] }
 0x6f2   :  { %v2420_v57 = vunpack.c.l.b16 %v2415_v3  ;;  %v7579_v3 = vld [vmem:[#allocation31_spill] sm:$0xff] }
 0x6f3   :  { %v2557_v62 = vrot.slane %v2419_v8, 5 }
 0x6f4   :  { %v2421_v42 = vrot.slane %v2420_v57, 7  ;;  %v2558_v19 = vrot.slane %v2420_v57, 4 }
 0x6f6   :  { %v2423_v23 = vsel %vm2422_vm7, %v2421_v42, %v2419_v8  ;;  %v2559_v32 = vsel %vm599_vm2, %v2558_v19, %v2557_v62  ;;  %v7580_v8 = vld [vmem:[#allocation32_spill] sm:$0xff]  ;;  %v7581_v62 = vld [vmem:[#allocation34_spill] sm:$0xff]  ;;  %v7582_v42 = vld [vmem:[#allocation35_spill] sm:$0xff] }
 0x6f7   :  { %v2424_v63 = vpack.c.b16 %v2423_v23, %v2423_v23  ;;  %v2560_v57 = vpack.c.b16 %v2559_v32, %v2559_v32  ;;  %v7583_v19 = vld [vmem:[#allocation36_spill] sm:$0xff]  ;;  %v7584_v23 = vld [vmem:[#allocation37_spill] sm:$0xff]  ;;  %v7590_v32 = vld [vmem:[#allocation43_spill] sm:$0xff] }
 0x6f9   :  { %v2434_v38 = vshrl.u32 %v2424_v63, 16  ;;  %v2437_v36 = vshll.u32 %v2424_v63, 16  ;;  %v7585_v63 = vld [vmem:[#allocation38_spill] sm:$0xff] }
 0x6fb   :  { %v2436_v55 = vrot.slane %v2434_v38, 2  ;;  %v2439_v47 = vrot.slane %v2437_v36, 3  ;;  %v7586_v38 = vld [vmem:[#allocation39_spill] sm:$0xff]  ;;  %v7587_v36 = vld [vmem:[#allocation40_spill] sm:$0xff] }
 0x6fd   :  { %v2440_v41 = vor.u32 %v2439_v47, %v2436_v55  ;;  %v7588_v55 = vld [vmem:[#allocation41_spill] sm:$0xff]  ;;  %v7589_v47 = vld [vmem:[#allocation42_spill] sm:$0xff] }
 0x6ff   :  { %2484 = vmatmul.mubr.bf16.vlgmr.msra.gmra.mxu0 %v2440_v41  ;;  %2525 = vmatmul.mubr.bf16.vlgmr.msra.gmra.mxu1 %v2440_v41  ;;  %v7591_v41 = vld [vmem:[#allocation44_spill] sm:$0xff] }
 0x700   :  { %2563 = vmatpush1.bf16.msra.mxu0 %v5922_v53  ;;  %2604 = vmatpush1.bf16.msra.mxu1 %v5928_v51 }
 0x701   :  { %2564 = vmatprep.subr.bf16.mxu0 %v5934_v28  ;;  %2605 = vmatprep.subr.bf16.mxu1 %v5940_v43 }
 0x702   :  { %2594 = vmatprep.mubr.bf16.mxu0 %v7251_v9  ;;  %2635 = vmatprep.mubr.bf16.mxu1 %v7251_v9 }
 0x704   :  { %2565 = vmatpush1.bf16.msra.mxu0 %v5948_v52  ;;  %2606 = vmatpush1.bf16.msra.mxu1 %v5954_v15 }
 0x705   :  { %2566 = vmatprep.subr.bf16.mxu0 %v5960_v14  ;;  %2607 = vmatprep.subr.bf16.mxu1 %v5966_v45 }
 0x708   :  { %2567 = vmatpush1.bf16.msra.mxu0 %v5972_v24  ;;  %2608 = vmatpush1.bf16.msra.mxu1 %v5978_v58 }
 0x709   :  { %2568 = vmatprep.subr.bf16.mxu0 %v5984_v17  ;;  %2609 = vmatprep.subr.bf16.mxu1 %v5990_v56 }
 0x70c   :  { %2569 = vmatpush1.bf16.msra.mxu0 %v5996_v46  ;;  %2610 = vmatpush1.bf16.msra.mxu1 %v6002_v26 }
 0x70d   :  { %2570 = vmatprep.subr.bf16.mxu0 %v6008_v21  ;;  %2611 = vmatprep.subr.bf16.mxu1 %v6014_v25 }
 0x710   :  { %2571 = vmatpush1.bf16.msra.mxu0 %v6020_v16  ;;  %2612 = vmatpush1.bf16.msra.mxu1 %v6026_v29 }
 0x711   :  { %2572 = vmatprep.subr.bf16.mxu0 %v7570_v59  ;;  %2613 = vmatprep.subr.bf16.mxu1 %v7571_v18 }
 0x714   :  { %2573 = vmatpush1.bf16.msra.mxu0 %v7572_v48  ;;  %2614 = vmatpush1.bf16.msra.mxu1 %v7573_v2 }
 0x715   :  { %2574 = vmatprep.subr.bf16.mxu0 %v7574_v35  ;;  %2615 = vmatprep.subr.bf16.mxu1 %v7575_v49 }
 0x718   :  { %2575 = vmatpush1.bf16.msra.mxu0 %v7576_v60  ;;  %2616 = vmatpush1.bf16.msra.mxu1 %v7577_v31 }
 0x719   :  { %2576 = vmatprep.subr.bf16.mxu0 %v7578_v34  ;;  %2617 = vmatprep.subr.bf16.mxu1 %v7579_v3 }
 0x71c   :  { %2577 = vmatpush1.bf16.msra.mxu0 %v7580_v8  ;;  %2618 = vmatpush1.bf16.msra.mxu1 %v6098_v13 }
 0x71d   :  { %2743 = vmatprep.subr.bf16.mxu0 %v7581_v62  ;;  %2784 = vmatprep.subr.bf16.mxu1 %v7582_v42  ;;  %v7592_v42 = vld [vmem:[#allocation45_spill] sm:$0xff] }
 0x71f   :  { %2595 = vmatmul.mubr.bf16.vlgmr.msra.gmra.mxu0 %v2560_v57  ;;  %2636 = vmatmul.mubr.bf16.vlgmr.msra.gmra.mxu1 %v2560_v57  ;;  %v7593_v57 = vld [vmem:[#allocation47_spill] sm:$0xff] }
 0x720   :  { %2744 = vmatpush1.bf16.msra.mxu0 %v7583_v19  ;;  %2785 = vmatpush1.bf16.msra.mxu1 %v7584_v23  ;;  %v7594_v19 = vld [vmem:[#allocation48_spill] sm:$0xff]  ;;  %v7595_v23 = vld [vmem:[#allocation2_spill] sm:$0xff] }
 0x721   :  { %2745 = vmatprep.subr.bf16.mxu0 %v7585_v63  ;;  %2786 = vmatprep.subr.bf16.mxu1 %v7586_v38  ;;  %v7596_v63 = vld [vmem:[#allocation56_spill] sm:$0xff]  ;;  %v7597_v38 = vld [vmem:[#allocation59_spill] sm:$0xff] }
 0x724   :  { %2746 = vmatpush1.bf16.msra.mxu0 %v7587_v36  ;;  %2787 = vmatpush1.bf16.msra.mxu1 %v7588_v55  ;;  %v7598_v36 = vld [vmem:[#allocation57_spill] sm:$0xff]  ;;  %v7599_v55 = vld [vmem:[#allocation60_spill] sm:$0xff] }
 0x725   :  { %2747 = vmatprep.subr.bf16.mxu0 %v7589_v47  ;;  %2788 = vmatprep.subr.bf16.mxu1 %v7590_v32  ;;  %v7600_v47 = vld [vmem:[#allocation49_spill] sm:$0xff] }
 0x728   :  { %2748 = vmatpush1.bf16.msra.mxu0 %v7591_v41  ;;  %2789 = vmatpush1.bf16.msra.mxu1 %v7592_v42 }
 0x729   :  { %2749 = vmatprep.subr.bf16.mxu0 %v7593_v57  ;;  %2790 = vmatprep.subr.bf16.mxu1 %v7594_v19 }
 0x72c   :  { %2750 = vmatpush1.bf16.msra.mxu0 %v7595_v23  ;;  %2791 = vmatpush1.bf16.msra.mxu1 %v7596_v63  ;;  %v6378_v63 = vld [vmem:[%s6794_s4 + $0x24] ss:$16 sps:$4 sm:$0xff]  }
 0x72d   :  { %2751 = vmatprep.subr.bf16.mxu0 %v7597_v38  ;;  %2792 = vmatprep.subr.bf16.mxu1 %v7598_v36  ;;  %7601 = vst [vmem:[#allocation54_spill] sm:$0xff] %v6378_v63 }
 0x730   :  { %2752 = vmatpush1.bf16.msra.mxu0 %v7599_v55  ;;  %2793 = vmatpush1.bf16.msra.mxu1 %v7600_v47  ;;  %v6384_v55 = vld [vmem:[%s6794_s4 + $0x2c] ss:$16 sps:$4 sm:$0xff]  }
 0x731   :  { %2753 = vmatprep.subr.bf16.mxu0 %v6226_v20  ;;  %2794 = vmatprep.subr.bf16.mxu1 %v6232_v0  ;;  %7602 = vst [vmem:[#allocation55_spill] sm:$0xff] %v6384_v55 }
 0x734   :  { %2754 = vmatpush1.bf16.msra.mxu0 %v6238_v11  ;;  %2795 = vmatpush1.bf16.msra.mxu1 %v6244_v22  ;;  %v6390_v11 = vld [vmem:[%s6794_s4 + $0x20] ss:$16 sps:$4 sm:$0xff]   ;;  %v6396_v22 = vld [vmem:[%s6794_s4 + $0x28] ss:$16 sps:$4 sm:$0xff]  }
 0x735   :  { %2755 = vmatprep.subr.bf16.mxu0 %v6378_v63  ;;  %2796 = vmatprep.subr.bf16.mxu1 %v6384_v55  ;;  %7603 = vst [vmem:[#allocation3_spill] sm:$0xff] %v6390_v11  ;;  %7604 = vst [vmem:[#allocation58_spill] sm:$0xff] %v6396_v22  ;;  %v6402_v63 = vld [vmem:[%s6794_s4 + $0x4] ss:$16 sps:$4 sm:$0xff]   ;;  %v6408_v55 = vld [vmem:[%s6794_s4 + $0xc] ss:$16 sps:$4 sm:$0xff]  }
 0x736   :  { %7605 = vst [vmem:[#allocation61_spill] sm:$0xff] %v6402_v63  ;;  %7606 = vst [vmem:[#allocation8_spill] sm:$0xff] %v6408_v55 }
 0x738   :  { %2756 = vmatpush1.bf16.msra.mxu0 %v6390_v11  ;;  %2797 = vmatpush1.bf16.msra.mxu1 %v6396_v22  ;;  %v6414_v11 = vld [vmem:[%s6794_s4] ss:$16 sps:$4 sm:$0xff]   ;;  %v6420_v22 = vld [vmem:[%s6794_s4 + $0x8] ss:$16 sps:$4 sm:$0xff]  }
 0x739   :  { %2757 = vmatprep.subr.bf16.mxu0 %v6402_v63  ;;  %2798 = vmatprep.subr.bf16.mxu1 %v6408_v55  ;;  %7607 = vst [vmem:[#allocation9_spill] sm:$0xff] %v6414_v11  ;;  %7608 = vst [vmem:[#allocation10_spill] sm:$0xff] %v6420_v22  ;;  %v6426_v63 = vld [vmem:[%s6794_s4 + $0x1e4] ss:$16 sps:$4 sm:$0xff]   ;;  %v6432_v55 = vld [vmem:[%s6794_s4 + $0x1ec] ss:$16 sps:$4 sm:$0xff]  }
 0x73a   :  { %7609 = vst [vmem:[#allocation11_spill] sm:$0xff] %v6426_v63  ;;  %7610 = vst [vmem:[#allocation12_spill] sm:$0xff] %v6432_v55 }
 0x73c   :  { %2758 = vmatpush1.bf16.msra.mxu0 %v6414_v11  ;;  %2799 = vmatpush1.bf16.msra.mxu1 %v6420_v22  ;;  %v6438_v11 = vld [vmem:[%s6794_s4 + $0x1e0] ss:$16 sps:$4 sm:$0xff]   ;;  %v6444_v22 = vld [vmem:[%s6794_s4 + $0x1e8] ss:$16 sps:$4 sm:$0xff]  }
 0x73d   :  { %2759 = vmatprep.subr.bf16.mxu0 %v6426_v63  ;;  %2800 = vmatprep.subr.bf16.mxu1 %v6432_v55  ;;  %7611 = vst [vmem:[#allocation13_spill] sm:$0xff] %v6438_v11  ;;  %7612 = vst [vmem:[#allocation14_spill] sm:$0xff] %v6444_v22  ;;  %v6450_v63 = vld [vmem:[%s6794_s4 + $0x1c4] ss:$16 sps:$4 sm:$0xff]   ;;  %v6456_v55 = vld [vmem:[%s6794_s4 + $0x1cc] ss:$16 sps:$4 sm:$0xff]  }
 0x73e   :  { %7613 = vst [vmem:[#allocation15_spill] sm:$0xff] %v6450_v63  ;;  %7614 = vst [vmem:[#allocation16_spill] sm:$0xff] %v6456_v55 }
 0x740   :  { %2760 = vmatpush2.bf16.msra.mxu0 %v6438_v11  ;;  %2801 = vmatpush2.bf16.msra.mxu1 %v6444_v22  ;;  %v6462_v11 = vld [vmem:[%s6794_s4 + $0x1c0] ss:$16 sps:$4 sm:$0xff]   ;;  %v6468_v22 = vld [vmem:[%s6794_s4 + $0x1c8] ss:$16 sps:$4 sm:$0xff]  }
 0x741   :  { %2761 = vmatprep.subr.bf16.mxu0 %v6450_v63  ;;  %2802 = vmatprep.subr.bf16.mxu1 %v6456_v55  ;;  %7615 = vst [vmem:[#allocation17_spill] sm:$0xff] %v6462_v11  ;;  %7616 = vst [vmem:[#allocation18_spill] sm:$0xff] %v6468_v22  ;;  %v6474_v63 = vld [vmem:[%s6794_s4 + $0x1a4] ss:$16 sps:$4 sm:$0xff]   ;;  %v6480_v55 = vld [vmem:[%s6794_s4 + $0x1ac] ss:$16 sps:$4 sm:$0xff]  }
 0x742   :  { %7617 = vst [vmem:[#allocation19_spill] sm:$0xff] %v6474_v63  ;;  %7618 = vst [vmem:[#allocation46_spill] sm:$0xff] %v6480_v55 }
 0x744   :  { %2762 = vmatpush2.bf16.msra.mxu0 %v6462_v11  ;;  %2803 = vmatpush2.bf16.msra.mxu1 %v6468_v22  ;;  %v6486_v11 = vld [vmem:[%s6794_s4 + $0x1a0] ss:$16 sps:$4 sm:$0xff]   ;;  %v6492_v22 = vld [vmem:[%s6794_s4 + $0x1a8] ss:$16 sps:$4 sm:$0xff]  }
 0x745   :  { %2763 = vmatprep.subr.bf16.mxu0 %v6474_v63  ;;  %2804 = vmatprep.subr.bf16.mxu1 %v6480_v55  ;;  %7619 = vst [vmem:[#allocation20_spill] sm:$0xff] %v6486_v11  ;;  %7620 = vst [vmem:[#allocation62_spill] sm:$0xff] %v6492_v22  ;;  %v6498_v63 = vld [vmem:[%s6794_s4 + $0x184] ss:$16 sps:$4 sm:$0xff]   ;;  %v6504_v55 = vld [vmem:[%s6794_s4 + $0x18c] ss:$16 sps:$4 sm:$0xff]  }
 0x746   :  { %7621 = vst [vmem:[#allocation63_spill] sm:$0xff] %v6498_v63  ;;  %7622 = vst [vmem:[#allocation64_spill] sm:$0xff] %v6504_v55 }
 0x748   :  { %2764 = vmatpush2.bf16.msra.mxu0 %v6486_v11  ;;  %2805 = vmatpush2.bf16.msra.mxu1 %v6492_v22  ;;  %v6510_v11 = vld [vmem:[%s6794_s4 + $0x180] ss:$16 sps:$4 sm:$0xff]   ;;  %v6516_v22 = vld [vmem:[%s6794_s4 + $0x188] ss:$16 sps:$4 sm:$0xff]  }
 0x749   :  { %2765 = vmatprep.subr.bf16.mxu0 %v6498_v63  ;;  %2806 = vmatprep.subr.bf16.mxu1 %v6504_v55  ;;  %7623 = vst [vmem:[#allocation65_spill] sm:$0xff] %v6510_v11  ;;  %7624 = vst [vmem:[#allocation66_spill] sm:$0xff] %v6516_v22  ;;  %v6522_v63 = vld [vmem:[%s6794_s4 + $0x164] ss:$16 sps:$4 sm:$0xff]   ;;  %v6528_v55 = vld [vmem:[%s6794_s4 + $0x16c] ss:$16 sps:$4 sm:$0xff]  }
 0x74a   :  { %7625 = vst [vmem:[#allocation67_spill] sm:$0xff] %v6522_v63  ;;  %7626 = vst [vmem:[#allocation68_spill] sm:$0xff] %v6528_v55 }
 0x74c   :  { %2766 = vmatpush2.bf16.msra.mxu0 %v6510_v11  ;;  %2807 = vmatpush2.bf16.msra.mxu1 %v6516_v22  ;;  %v6534_v11 = vld [vmem:[%s6794_s4 + $0x160] ss:$16 sps:$4 sm:$0xff]   ;;  %v6540_v22 = vld [vmem:[%s6794_s4 + $0x168] ss:$16 sps:$4 sm:$0xff]  }
 0x74d   :  { %2767 = vmatprep.subr.bf16.mxu0 %v6522_v63  ;;  %2808 = vmatprep.subr.bf16.mxu1 %v6528_v55  ;;  %7627 = vst [vmem:[#allocation69_spill] sm:$0xff] %v6534_v11  ;;  %7628 = vst [vmem:[#allocation70_spill] sm:$0xff] %v6540_v22  ;;  %v6546_v63 = vld [vmem:[%s6794_s4 + $0x144] ss:$16 sps:$4 sm:$0xff]   ;;  %v6552_v55 = vld [vmem:[%s6794_s4 + $0x14c] ss:$16 sps:$4 sm:$0xff]  }
 0x74e   :  { %7629 = vst [vmem:[#allocation71_spill] sm:$0xff] %v6546_v63  ;;  %7630 = vst [vmem:[#allocation21_spill] sm:$0xff] %v6552_v55 }
 0x750   :  { %2768 = vmatpush2.bf16.msra.mxu0 %v6534_v11  ;;  %2809 = vmatpush2.bf16.msra.mxu1 %v6540_v22  ;;  %v6558_v11 = vld [vmem:[%s6794_s4 + $0x140] ss:$16 sps:$4 sm:$0xff]   ;;  %v6564_v22 = vld [vmem:[%s6794_s4 + $0x148] ss:$16 sps:$4 sm:$0xff]  }
 0x751   :  { %2769 = vmatprep.subr.bf16.mxu0 %v6546_v63  ;;  %2810 = vmatprep.subr.bf16.mxu1 %v6552_v55  ;;  %7631 = vst [vmem:[#allocation22_spill] sm:$0xff] %v6558_v11  ;;  %7632 = vst [vmem:[#allocation23_spill] sm:$0xff] %v6564_v22  ;;  %v6570_v63 = vld [vmem:[%s6794_s4 + $0x124] ss:$16 sps:$4 sm:$0xff]   ;;  %v6576_v55 = vld [vmem:[%s6794_s4 + $0x12c] ss:$16 sps:$4 sm:$0xff]  }
 0x752   :  { %7633 = vst [vmem:[#allocation24_spill] sm:$0xff] %v6570_v63  ;;  %7634 = vst [vmem:[#allocation25_spill] sm:$0xff] %v6576_v55 }
 0x754   :  { %2770 = vmatpush2.bf16.msra.mxu0 %v6558_v11  ;;  %2811 = vmatpush2.bf16.msra.mxu1 %v6564_v22  ;;  %v6582_v11 = vld [vmem:[%s6794_s4 + $0x120] ss:$16 sps:$4 sm:$0xff]   ;;  %v6588_v22 = vld [vmem:[%s6794_s4 + $0x128] ss:$16 sps:$4 sm:$0xff]  }
 0x755   :  { %2771 = vmatprep.subr.bf16.mxu0 %v6570_v63  ;;  %2812 = vmatprep.subr.bf16.mxu1 %v6576_v55  ;;  %7635 = vst [vmem:[#allocation26_spill] sm:$0xff] %v6582_v11  ;;  %7636 = vst [vmem:[#allocation27_spill] sm:$0xff] %v6588_v22  ;;  %v6594_v63 = vld [vmem:[%s6794_s4 + $0x104] ss:$16 sps:$4 sm:$0xff]   ;;  %v6600_v55 = vld [vmem:[%s6794_s4 + $0x10c] ss:$16 sps:$4 sm:$0xff]  }
 0x756   :  { %7637 = vst [vmem:[#allocation28_spill] sm:$0xff] %v6594_v63  ;;  %7638 = vst [vmem:[#allocation29_spill] sm:$0xff] %v6600_v55 }
 0x758   :  { %2772 = vmatpush2.bf16.msra.mxu0 %v6582_v11  ;;  %2813 = vmatpush2.bf16.msra.mxu1 %v6588_v22  ;;  %v6606_v11 = vld [vmem:[%s6794_s4 + $0x100] ss:$16 sps:$4 sm:$0xff]   ;;  %v6612_v22 = vld [vmem:[%s6794_s4 + $0x108] ss:$16 sps:$4 sm:$0xff]  }
 0x759   :  { %2773 = vmatprep.subr.bf16.mxu0 %v6594_v63  ;;  %2814 = vmatprep.subr.bf16.mxu1 %v6600_v55  ;;  %7639 = vst [vmem:[#allocation30_spill] sm:$0xff] %v6606_v11  ;;  %7640 = vst [vmem:[#allocation31_spill] sm:$0xff] %v6612_v22 }
 0x75c   :  { %2774 = vmatpush2.bf16.msra.mxu0 %v6606_v11  ;;  %2815 = vmatpush2.bf16.msra.mxu1 %v6612_v22 }
 0x75d   :  { %2854 = vmatprep.subr.bf16.mxu0 %v7565_v54  ;;  %2895 = vmatprep.subr.bf16.mxu1 %v6291_v10 }
 0x7bf   :  { %v2485_v63 = vpop.f32.mrf.mxu0  ;;  %v2526_v55 = vpop.f32.mrf.mxu1 }
 0x7c0   :  { %v2486_v0 = vadd.f32 %v2485_v63, %v7566_v37  ;;  %v2527_v54 = vadd.f32 %v2526_v55, %v7568_v7 }
 0x7c1   :  { %v2487_v20 = vpop.f32.mrf.mxu0  ;;  %v2528_v47 = vpop.f32.mrf.mxu1 }
 0x7c2   :  { %v3429_v36 = vmul.f32 -1.442695, %v2486_v0  ;;  %v2488_v11 = vadd.f32 %v2487_v20, %v7567_v30  ;;  %v3431_v22 = vmul.f32 -1.442695, %v2527_v54  ;;  %v2529_v41 = vadd.f32 %v2528_v47, %v7569_v40 }
 0x7c3   :  { %v2489_v38 = vpop.f32.mrf.mxu0  ;;  %v2530_v23 = vpop.f32.mrf.mxu1 }
 0x7c4   :  { %3918 = vpow2.f32 %v3429_v36  ;;  %v3430_v19 = vmul.f32 -1.442695, %v2488_v11 }
 0x7c5   :  { %v2490_v57 = vpop.f32.mrf.mxu0  ;;  %v2531_v42 = vpop.f32.mrf.mxu1 }
 0x7c6   :  { %3920 = vpow2.f32 %v3430_v19 }
 0x7c7   :  { %3922 = vpow2.f32 %v3431_v22 }
 0x7d1   :  { %v3919_v10 = vpop.eup %3918 }
 0x7d2   :  { %v2542_v63 = vadd.f32 1.0, %v3919_v10 }
 0x7d3   :  { %v3921_v37 = vpop.eup %3920 }
 0x7d4   :  { %3924 = vrcp.f32 %v2542_v63  ;;  %v2543_v0 = vadd.f32 1.0, %v3921_v37  ;;  %v3923_v20 = vpop.eup %3922 }
 0x7d5   :  { %3926 = vtanh.f32 %v2529_v41  ;;  %v2544_v19 = vadd.f32 1.0, %v3923_v20 }
 0x7d6   :  { %3928 = vrcp.f32 %v2543_v0 }
 0x7d7   :  { %3930 = vrcp.f32 %v2544_v19 }
 0x7df   :  { %v2596_v23 = vpop.f32.mrf.mxu0  ;;  %v2637_v38 = vpop.f32.mrf.mxu1 }
 0x7e0   :  { %v2648_v11 = vrot.slane %v2596_v23, 2  ;;  %v2652_v36 = vrot.slane %v2596_v23, 3 }
 0x7e1   :  { %v3925_v42 = vpop.eup %3924  ;;  %v2598_v57 = vpop.f32.mrf.mxu0 }
 0x7e2   :  { %v2639_v55 = vpop.f32.mrf.mxu1  ;;  %v3927_v54 = vpop.eup %3926  ;;  %v2664_v22 = vadd.f32 %v2648_v11, %v7316_v5  ;;  %v2668_v47 = vadd.f32 %v2652_v36, %v7372_v44  ;;  %v2649_v40 = vrot.slane %v2598_v57, 2  ;;  %v2653_v63 = vrot.slane %v2598_v57, 3 }
 0x7e3   :  { %v3929_v10 = vpop.eup %3928  ;;  %v2600_v37 = vpop.f32.mrf.mxu0  ;;  %v2553_v7 = vmul.f32 %v3927_v54, %v3925_v42  ;;  %v2651_v19 = vrot.slane %v2639_v55, 2  ;;  %v2655_v54 = vrot.slane %v2639_v55, 3 }
 0x7e4   :  { %v2641_v41 = vpop.f32.mrf.mxu1  ;;  %v2552_v0 = vmul.f32 %v3929_v10, %v6303_v12  ;;  %v3432_v30 = vmul.f32 -1.442695, %v2664_v22  ;;  %v3435_v32 = vmul.f32 -1.442695, %v2668_v47  ;;  %v2665_v20 = vadd.f32 %v2649_v40, %v7318_v61 }
 0x7e5   :  { %v2669_v23 = vadd.f32 %v2653_v63, %v7317_v27  ;;  %v2601_v62 = vpop.f32.mrf.mxu0  ;;  %v2650_v37 = vrot.slane %v2637_v38, 2  ;;  %v2654_v12 = vrot.slane %v2637_v38, 3  ;;  %v2671_v47 = vadd.f32 %v2655_v54, %v7373_v50 }
 0x7e6   :  { %v2642_v13 = vpop.f32.mrf.mxu1  ;;  %v6626_v11 = vadd.f32 %v2553_v7, %v2552_v0  ;;  %3932 = vpow2.f32 %v3432_v30  ;;  %v3433_v36 = vmul.f32 -1.442695, %v2665_v20  ;;  %v2667_v30 = vadd.f32 %v2651_v19, %v4904_v1 }
 0x7e7   :  { %3934 = vpow2.f32 %v3435_v32  ;;  %v3436_v57 = vmul.f32 -1.442695, %v2669_v23  ;;  %v2666_v42 = vadd.f32 %v2650_v37, %v7319_v6  ;;  %v2670_v40 = vadd.f32 %v2654_v12, %v4901_v4  ;;  %v3931_v13 = vpop.eup %3930 }
 0x7e8   :  { %3936 = vtanh.f32 %v6626_v11 }
 0x7e9   :  { %3938 = vpow2.f32 %v3433_v36  ;;  %v3434_v62 = vmul.f32 -1.442695, %v2666_v42  ;;  %v3437_v7 = vmul.f32 -1.442695, %v2670_v40 }
 0x7ea   :  { %3940 = vpow2.f32 %v3436_v57 }
 0x7eb   :  { %3942 = vpow2.f32 %v3434_v62 }
 0x7ec   :  { %3944 = vpow2.f32 %v3437_v7 }
 0x7ed   :  { %3946 = vtanh.f32 %v2667_v30  ;;  %v2713_v30 = vrot.slane %v6314_v33, 7 }
 0x7ee   :  { %3948 = vtanh.f32 %v2671_v47 }
 0x7f3   :  { %v3933_v22 = vpop.eup %3932 }
 0x7f4   :  { %v3935_v32 = vpop.eup %3934  ;;  %v2690_v63 = vadd.f32 1.0, %v3933_v22 }
 0x7f5   :  { %v3937_v10 = vpop.eup %3936  ;;  %v2693_v38 = vadd.f32 1.0, %v3935_v32 }
 0x7f6   :  { %v2556_v41 = vmul.f32 %v3937_v10, %v3931_v13  ;;  %v3939_v0 = vpop.eup %3938  ;;  %3950 = vrcp.f32 %v2690_v63  ;;  %v2712_v13 = vrot.slane %v6312_v39, 7 }
 0x7f7   :  { %v3941_v55 = vpop.eup %3940  ;;  %v2691_v23 = vadd.f32 1.0, %v3939_v0  ;;  %3952 = vrcp.f32 %v2693_v38 }
 0x7f8   :  { %v2728_v20 = vpack.c.bf16 %v2556_v41, %v2556_v41  ;;  %v2694_v36 = vadd.f32 1.0, %v3941_v55  ;;  %v3943_v12 = vpop.eup %3942 }
 0x7f9   :  { %3954 = vrcp.f32 %v2691_v23  ;;  %v3945_v42 = vpop.eup %3944  ;;  %v2692_v7 = vadd.f32 1.0, %v3943_v12 }
 0x7fa   :  { %v2738_v57 = vrot.slane %v2728_v20, 5  ;;  %3956 = vrcp.f32 %v2694_v36  ;;  %v3947_v40 = vpop.eup %3946  ;;  %v2695_v32 = vadd.f32 1.0, %v3945_v42 }
 0x7fb   :  { %v3949_v19 = vpop.eup %3948  ;;  %3958 = vrcp.f32 %v2692_v7 }
 0x7fc   :  { %v2740_v37 = vrot.slane %v2738_v57, 3  ;;  %3960 = vrcp.f32 %v2695_v32  ;;  %v7670_v32 = vld [vmem:[#allocation61_spill] sm:$0xff] }
 0x7fe   :  { %2775 = vmatprep.mubr.bf16.mxu0 %v2740_v37  ;;  %2816 = vmatprep.mubr.bf16.mxu1 %v2740_v37 }
 0x803   :  { %v3951_v54 = vpop.eup %3950 }
 0x804   :  { %v3953_v62 = vpop.eup %3952  ;;  %v2718_v63 = vmul.f32 %v3951_v54, %v3947_v40 }
 0x805   :  { %v2719_v41 = vmul.f32 %v3953_v62, %v3949_v19 }
 0x806   :  { %v3955_v22 = vpop.eup %3954 }
 0x807   :  { %v3957_v47 = vpop.eup %3956  ;;  %v2716_v10 = vmul.f32 %v3955_v22, %v2712_v13 }
 0x808   :  { %v2717_v38 = vmul.f32 %v3957_v47, %v2713_v30  ;;  %v3959_v39 = vpop.eup %3958  ;;  %v7671_v47 = vld [vmem:[#allocation8_spill] sm:$0xff] }
 0x809   :  { %v6635_v0 = vadd.f32 %v2718_v63, %v2716_v10  ;;  %v3961_v55 = vpop.eup %3960  ;;  %v7672_v10 = vld [vmem:[#allocation9_spill] sm:$0xff]  ;;  %v7673_v63 = vld [vmem:[#allocation10_spill] sm:$0xff] }
 0x80a   :  { %v6637_v20 = vadd.f32 %v2719_v41, %v2717_v38  ;;  %v7674_v38 = vld [vmem:[#allocation11_spill] sm:$0xff]  ;;  %v7675_v41 = vld [vmem:[#allocation12_spill] sm:$0xff] }
 0x80b   :  { %3962 = vtanh.f32 %v6635_v0 }
 0x80c   :  { %3964 = vtanh.f32 %v6637_v20 }
 0x818   :  { %v3963_v23 = vpop.eup %3962 }
 0x819   :  { %v3965_v33 = vpop.eup %3964  ;;  %v2724_v36 = vmul.f32 %v3963_v23, %v3959_v39  ;;  %v7676_v39 = vld [vmem:[#allocation13_spill] sm:$0xff]  ;;  %v7678_v23 = vld [vmem:[#allocation15_spill] sm:$0xff] }
 0x81a   :  { %v2725_v57 = vmul.f32 %v3965_v33, %v3961_v55  ;;  %v7677_v55 = vld [vmem:[#allocation14_spill] sm:$0xff]  ;;  %v7679_v33 = vld [vmem:[#allocation16_spill] sm:$0xff] }
 0x81b   :  { %v2726_v37 = vpack.c.bf16 %v2724_v36, %v2724_v36  ;;  %v7680_v36 = vld [vmem:[#allocation17_spill] sm:$0xff] }
 0x81c   :  { %v2727_v12 = vpack.c.bf16 %v2725_v57, %v2725_v57  ;;  %v7681_v57 = vld [vmem:[#allocation18_spill] sm:$0xff] }
 0x81d   :  { %v2731_v42 = vunpack.c.l.b16 %v2726_v37  ;;  %v7682_v37 = vld [vmem:[#allocation19_spill] sm:$0xff] }
 0x81e   :  { %v2732_v40 = vunpack.c.l.b16 %v2727_v12  ;;  %v7683_v12 = vld [vmem:[#allocation46_spill] sm:$0xff] }
 0x81f   :  { %v2849_v19 = vrot.slane %v2731_v42, 6 }
 0x820   :  { %v2733_v54 = vrot.slane %v2732_v40, 7  ;;  %v2850_v62 = vrot.slane %v2732_v40, 5  ;;  %v7685_v40 = vld [vmem:[#allocation62_spill] sm:$0xff] }
 0x822   :  { %v2735_v13 = vsel %vm2734_vm8, %v2733_v54, %v2731_v42  ;;  %v2851_v7 = vsel %vm599_vm2, %v2850_v62, %v2849_v19  ;;  %v7684_v42 = vld [vmem:[#allocation20_spill] sm:$0xff]  ;;  %v7686_v19 = vld [vmem:[#allocation63_spill] sm:$0xff]  ;;  %v7688_v62 = vld [vmem:[#allocation65_spill] sm:$0xff] }
 0x823   :  { %v2736_v22 = vpack.c.b16 %v2735_v13, %v2735_v13  ;;  %v7687_v54 = vld [vmem:[#allocation64_spill] sm:$0xff]  ;;  %v7689_v13 = vld [vmem:[#allocation66_spill] sm:$0xff] }
 0x825   :  { %v2739_v30 = vrot.slane %v2736_v22, 3  ;;  %v7691_v22 = vld [vmem:[#allocation68_spill] sm:$0xff] }
 0x827   :  { %2776 = vmatmul.mubr.bf16.vlgmr.msra.gmra.mxu0 %v2739_v30  ;;  %2817 = vmatmul.mubr.bf16.vlgmr.msra.gmra.mxu1 %v2739_v30  ;;  %v7692_v30 = vld [vmem:[#allocation69_spill] sm:$0xff] }
 0x828   :  { %2855 = vmatpush1.bf16.msra.mxu0 %v5922_v53  ;;  %2896 = vmatpush1.bf16.msra.mxu1 %v5928_v51  ;;  %v2852_v53 = vpack.c.b16 %v2851_v7, %v2851_v7  ;;  %v7642_v51 = vld [vmem:[#allocation34_spill] sm:$0xff]  ;;  %v7690_v7 = vld [vmem:[#allocation67_spill] sm:$0xff] }
 0x829   :  { %2856 = vmatprep.subr.bf16.mxu0 %v5934_v28  ;;  %2897 = vmatprep.subr.bf16.mxu1 %v5940_v43  ;;  %v7643_v28 = vld [vmem:[#allocation35_spill] sm:$0xff]  ;;  %v7644_v43 = vld [vmem:[#allocation36_spill] sm:$0xff] }
 0x82a   :  { %2886 = vmatprep.mubr.bf16.mxu0 %v7251_v9  ;;  %2927 = vmatprep.mubr.bf16.mxu1 %v7251_v9  ;;  %v7641_v9 = vld [vmem:[#allocation33_spill] sm:$0xff] }
 0x82c   :  { %2857 = vmatpush1.bf16.msra.mxu0 %v5948_v52  ;;  %2898 = vmatpush1.bf16.msra.mxu1 %v5954_v15  ;;  %v7645_v52 = vld [vmem:[#allocation37_spill] sm:$0xff]  ;;  %v7646_v15 = vld [vmem:[#allocation38_spill] sm:$0xff] }
 0x82d   :  { %2858 = vmatprep.subr.bf16.mxu0 %v5960_v14  ;;  %2899 = vmatprep.subr.bf16.mxu1 %v5966_v45  ;;  %v7647_v14 = vld [vmem:[#allocation39_spill] sm:$0xff]  ;;  %v7648_v45 = vld [vmem:[#allocation40_spill] sm:$0xff] }
 0x830   :  { %2859 = vmatpush1.bf16.msra.mxu0 %v5972_v24  ;;  %2900 = vmatpush1.bf16.msra.mxu1 %v5978_v58  ;;  %v7649_v24 = vld [vmem:[#allocation41_spill] sm:$0xff]  ;;  %v7650_v58 = vld [vmem:[#allocation42_spill] sm:$0xff] }
 0x831   :  { %2860 = vmatprep.subr.bf16.mxu0 %v5984_v17  ;;  %2901 = vmatprep.subr.bf16.mxu1 %v5990_v56  ;;  %v7651_v17 = vld [vmem:[#allocation43_spill] sm:$0xff]  ;;  %v7652_v56 = vld [vmem:[#allocation44_spill] sm:$0xff] }
 0x834   :  { %2861 = vmatpush1.bf16.msra.mxu0 %v5996_v46  ;;  %2902 = vmatpush1.bf16.msra.mxu1 %v6002_v26  ;;  %v7653_v46 = vld [vmem:[#allocation45_spill] sm:$0xff]  ;;  %v7654_v26 = vld [vmem:[#allocation47_spill] sm:$0xff] }
 0x835   :  { %2862 = vmatprep.subr.bf16.mxu0 %v6008_v21  ;;  %2903 = vmatprep.subr.bf16.mxu1 %v6014_v25  ;;  %v7655_v21 = vld [vmem:[#allocation48_spill] sm:$0xff]  ;;  %v7656_v25 = vld [vmem:[#allocation2_spill] sm:$0xff] }
 0x838   :  { %2863 = vmatpush1.bf16.msra.mxu0 %v6020_v16  ;;  %2904 = vmatpush1.bf16.msra.mxu1 %v6026_v29  ;;  %v7657_v16 = vld [vmem:[#allocation56_spill] sm:$0xff]  ;;  %v7658_v29 = vld [vmem:[#allocation59_spill] sm:$0xff] }
 0x839   :  { %2864 = vmatprep.subr.bf16.mxu0 %v7570_v59  ;;  %2905 = vmatprep.subr.bf16.mxu1 %v7571_v18  ;;  %v7659_v59 = vld [vmem:[#allocation57_spill] sm:$0xff]  ;;  %v7660_v18 = vld [vmem:[#allocation60_spill] sm:$0xff] }
 0x83c   :  { %2865 = vmatpush1.bf16.msra.mxu0 %v7572_v48  ;;  %2906 = vmatpush1.bf16.msra.mxu1 %v7573_v2  ;;  %v7661_v48 = vld [vmem:[#allocation49_spill] sm:$0xff]  ;;  %v7662_v2 = vld [vmem:[#allocation50_spill] sm:$0xff] }
 0x83d   :  { %2866 = vmatprep.subr.bf16.mxu0 %v7574_v35  ;;  %2907 = vmatprep.subr.bf16.mxu1 %v7575_v49  ;;  %v7663_v35 = vld [vmem:[#allocation51_spill] sm:$0xff]  ;;  %v7664_v49 = vld [vmem:[#allocation52_spill] sm:$0xff] }
 0x840   :  { %2867 = vmatpush1.bf16.msra.mxu0 %v7576_v60  ;;  %2908 = vmatpush1.bf16.msra.mxu1 %v7577_v31  ;;  %v7665_v60 = vld [vmem:[#allocation53_spill] sm:$0xff]  ;;  %v7666_v31 = vld [vmem:[#allocation54_spill] sm:$0xff] }
 0x841   :  { %2868 = vmatprep.subr.bf16.mxu0 %v7578_v34  ;;  %2909 = vmatprep.subr.bf16.mxu1 %v7579_v3  ;;  %v7667_v34 = vld [vmem:[#allocation55_spill] sm:$0xff] }
 0x842   :  { %v7668_v3 = vld [vmem:[#allocation3_spill] sm:$0xff] }
 0x844   :  { %2869 = vmatpush1.bf16.msra.mxu0 %v7580_v8  ;;  %2910 = vmatpush1.bf16.msra.mxu1 %v7641_v9  ;;  %v7669_v8 = vld [vmem:[#allocation58_spill] sm:$0xff] }
 0x845   :  { %3053 = vmatprep.subr.bf16.mxu0 %v7642_v51  ;;  %3094 = vmatprep.subr.bf16.mxu1 %v7643_v28  ;;  %v7693_v9 = vld [vmem:[#allocation70_spill] sm:$0xff]  ;;  %v7695_v51 = vld [vmem:[#allocation21_spill] sm:$0xff] }
 0x846   :  { %v7696_v28 = vld [vmem:[#allocation22_spill] sm:$0xff] }
 0x847   :  { %2887 = vmatmul.mubr.bf16.vlgmr.msra.gmra.mxu0 %v2852_v53  ;;  %2928 = vmatmul.mubr.bf16.vlgmr.msra.gmra.mxu1 %v2852_v53  ;;  %v7694_v53 = vld [vmem:[#allocation71_spill] sm:$0xff] }
 0x848   :  { %3054 = vmatpush1.bf16.msra.mxu0 %v7644_v43  ;;  %3095 = vmatpush1.bf16.msra.mxu1 %v7645_v52  ;;  %v7697_v43 = vld [vmem:[#allocation23_spill] sm:$0xff]  ;;  %v7698_v52 = vld [vmem:[#allocation24_spill] sm:$0xff] }
 0x849   :  { %3055 = vmatprep.subr.bf16.mxu0 %v7646_v15  ;;  %3096 = vmatprep.subr.bf16.mxu1 %v7647_v14  ;;  %v7699_v15 = vld [vmem:[#allocation25_spill] sm:$0xff]  ;;  %v7700_v14 = vld [vmem:[#allocation26_spill] sm:$0xff] }
 0x84c   :  { %3056 = vmatpush1.bf16.msra.mxu0 %v7648_v45  ;;  %3097 = vmatpush1.bf16.msra.mxu1 %v7649_v24  ;;  %v7701_v45 = vld [vmem:[#allocation27_spill] sm:$0xff]  ;;  %v7702_v24 = vld [vmem:[#allocation28_spill] sm:$0xff] }
 0x84d   :  { %3057 = vmatprep.subr.bf16.mxu0 %v7650_v58  ;;  %3098 = vmatprep.subr.bf16.mxu1 %v7651_v17  ;;  %v7703_v58 = vld [vmem:[#allocation29_spill] sm:$0xff]  ;;  %v7704_v17 = vld [vmem:[#allocation30_spill] sm:$0xff] }
 0x850   :  { %3058 = vmatpush1.bf16.msra.mxu0 %v7652_v56  ;;  %3099 = vmatpush1.bf16.msra.mxu1 %v7653_v46  ;;  %v7705_v56 = vld [vmem:[#allocation31_spill] sm:$0xff] }
 0x851   :  { %3059 = vmatprep.subr.bf16.mxu0 %v7654_v26  ;;  %3100 = vmatprep.subr.bf16.mxu1 %v7655_v21  ;;  %v7706_v21 = vld [vmem:[#allocation4_spill] sm:$0xff] }
 0x854   :  { %3060 = vmatpush1.bf16.msra.mxu0 %v7656_v25  ;;  %3101 = vmatpush1.bf16.msra.mxu1 %v7657_v16 }
 0x855   :  { %3061 = vmatprep.subr.bf16.mxu0 %v7658_v29  ;;  %3102 = vmatprep.subr.bf16.mxu1 %v7659_v59 }
 0x858   :  { %3062 = vmatpush1.bf16.msra.mxu0 %v7660_v18  ;;  %3103 = vmatpush1.bf16.msra.mxu1 %v7661_v48  ;;  %v7707_v18 = vld [vmem:[#allocation5_spill] sm:$0xff] }
 0x859   :  { %3063 = vmatprep.subr.bf16.mxu0 %v7662_v2  ;;  %3104 = vmatprep.subr.bf16.mxu1 %v7663_v35 }
 0x85c   :  { %3064 = vmatpush1.bf16.msra.mxu0 %v7664_v49  ;;  %3105 = vmatpush1.bf16.msra.mxu1 %v7665_v60 }
 0x85d   :  { %3065 = vmatprep.subr.bf16.mxu0 %v7666_v31  ;;  %3106 = vmatprep.subr.bf16.mxu1 %v7667_v34  ;;  %v7708_v34 = vld [vmem:[#allocation6_spill] sm:$0xff] }
 0x860   :  { %3066 = vmatpush1.bf16.msra.mxu0 %v7668_v3  ;;  %3107 = vmatpush1.bf16.msra.mxu1 %v7669_v8 }
 0x861   :  { %3067 = vmatprep.subr.bf16.mxu0 %v7670_v32  ;;  %3108 = vmatprep.subr.bf16.mxu1 %v7671_v47  ;;  %v7709_v47 = vld [vmem:[#allocation7_spill] sm:$0xff] }
 0x864   :  { %3068 = vmatpush1.bf16.msra.mxu0 %v7672_v10  ;;  %3109 = vmatpush1.bf16.msra.mxu1 %v7673_v63 }
 0x865   :  { %3069 = vmatprep.subr.bf16.mxu0 %v7674_v38  ;;  %3110 = vmatprep.subr.bf16.mxu1 %v7675_v41 }
 0x868   :  { %3070 = vmatpush2.bf16.msra.mxu0 %v7676_v39  ;;  %3111 = vmatpush2.bf16.msra.mxu1 %v7677_v55 }
 0x869   :  { %3071 = vmatprep.subr.bf16.mxu0 %v7678_v23  ;;  %3112 = vmatprep.subr.bf16.mxu1 %v7679_v33 }
 0x86c   :  { %3072 = vmatpush2.bf16.msra.mxu0 %v7680_v36  ;;  %3113 = vmatpush2.bf16.msra.mxu1 %v7681_v57 }
 0x86d   :  { %3073 = vmatprep.subr.bf16.mxu0 %v7682_v37  ;;  %3114 = vmatprep.subr.bf16.mxu1 %v7683_v12 }
 0x870   :  { %3074 = vmatpush2.bf16.msra.mxu0 %v7684_v42  ;;  %3115 = vmatpush2.bf16.msra.mxu1 %v7685_v40 }
 0x871   :  { %3075 = vmatprep.subr.bf16.mxu0 %v7686_v19  ;;  %3116 = vmatprep.subr.bf16.mxu1 %v7687_v54 }
 0x874   :  { %3076 = vmatpush2.bf16.msra.mxu0 %v7688_v62  ;;  %3117 = vmatpush2.bf16.msra.mxu1 %v7689_v13 }
 0x875   :  { %3077 = vmatprep.subr.bf16.mxu0 %v7690_v7  ;;  %3118 = vmatprep.subr.bf16.mxu1 %v7691_v22 }
 0x878   :  { %3078 = vmatpush2.bf16.msra.mxu0 %v7692_v30  ;;  %3119 = vmatpush2.bf16.msra.mxu1 %v7693_v9 }
 0x879   :  { %3079 = vmatprep.subr.bf16.mxu0 %v7694_v53  ;;  %3120 = vmatprep.subr.bf16.mxu1 %v7695_v51 }
 0x87c   :  { %3080 = vmatpush2.bf16.msra.mxu0 %v7696_v28  ;;  %3121 = vmatpush2.bf16.msra.mxu1 %v7697_v43 }
 0x87d   :  { %3081 = vmatprep.subr.bf16.mxu0 %v7698_v52  ;;  %3122 = vmatprep.subr.bf16.mxu1 %v7699_v15 }
 0x880   :  { %3082 = vmatpush2.bf16.msra.mxu0 %v7700_v14  ;;  %3123 = vmatpush2.bf16.msra.mxu1 %v7701_v45 }
 0x881   :  { %3083 = vmatprep.subr.bf16.mxu0 %v7702_v24  ;;  %3124 = vmatprep.subr.bf16.mxu1 %v7703_v58 }
 0x884   :  { %3084 = vmatpush2.bf16.msra.mxu0 %v7704_v17  ;;  %3125 = vmatpush2.bf16.msra.mxu1 %v7705_v56 }
 0x8e7   :  { %v2777_v46 = vpop.f32.mrf.mxu0  ;;  %v2818_v26 = vpop.f32.mrf.mxu1 }
 0x8e8   :  { %v2778_v25 = vadd.f32 %v2777_v46, %v7706_v21  ;;  %v2819_v3 = vadd.f32 %v2818_v26, %v7708_v34 }
 0x8e9   :  { %v2779_v16 = vpop.f32.mrf.mxu0  ;;  %v2820_v29 = vpop.f32.mrf.mxu1 }
 0x8ea   :  { %v3438_v59 = vmul.f32 -1.442695, %v2778_v25  ;;  %v2780_v48 = vadd.f32 %v2779_v16, %v7707_v18  ;;  %v3440_v8 = vmul.f32 -1.442695, %v2819_v3  ;;  %v2821_v10 = vadd.f32 %v2820_v29, %v7709_v47 }
 0x8eb   :  { %v2781_v2 = vpop.f32.mrf.mxu0  ;;  %v2822_v35 = vpop.f32.mrf.mxu1 }
 0x8ec   :  { %3966 = vpow2.f32 %v3438_v59  ;;  %v3439_v49 = vmul.f32 -1.442695, %v2780_v48 }
 0x8ed   :  { %v2782_v60 = vpop.f32.mrf.mxu0  ;;  %v2823_v31 = vpop.f32.mrf.mxu1 }
 0x8ee   :  { %3968 = vpow2.f32 %v3439_v49 }
 0x8ef   :  { %3970 = vpow2.f32 %v3440_v8 }
 0x8f9   :  { %v3967_v32 = vpop.eup %3966 }
 0x8fa   :  { %v2834_v63 = vadd.f32 1.0, %v3967_v32 }
 0x8fb   :  { %v3969_v38 = vpop.eup %3968 }
 0x8fc   :  { %3972 = vrcp.f32 %v2834_v63  ;;  %v2835_v41 = vadd.f32 1.0, %v3969_v38  ;;  %v3971_v39 = vpop.eup %3970 }
 0x8fd   :  { %3974 = vtanh.f32 %v2821_v10  ;;  %v2836_v37 = vadd.f32 1.0, %v3971_v39 }
 0x8fe   :  { %3976 = vrcp.f32 %v2835_v41 }
 0x8ff   :  { %3978 = vrcp.f32 %v2836_v37 }
 0x907   :  { %v2888_v55 = vpop.f32.mrf.mxu0  ;;  %v2929_v23 = vpop.f32.mrf.mxu1 }
 0x908   :  { %v2940_v33 = vrot.slane %v2888_v55, 1  ;;  %v2944_v36 = vrot.slane %v2888_v55, 2  ;;  %v2942_v24 = vrot.slane %v2929_v23, 1 }
 0x909   :  { %v3973_v57 = vpop.eup %3972  ;;  %v2890_v12 = vpop.f32.mrf.mxu0 }
 0x90a   :  { %v2931_v42 = vpop.f32.mrf.mxu1  ;;  %v3975_v40 = vpop.eup %3974  ;;  %v2956_v19 = vadd.f32 %v2940_v33, %v7316_v5  ;;  %v2960_v54 = vadd.f32 %v2944_v36, %v7372_v44  ;;  %v2941_v13 = vrot.slane %v2890_v12, 1  ;;  %v2945_v7 = vrot.slane %v2890_v12, 2 }
 0x90b   :  { %v3977_v62 = vpop.eup %3976  ;;  %v2892_v22 = vpop.f32.mrf.mxu0  ;;  %v2845_v53 = vmul.f32 %v3975_v40, %v3973_v57  ;;  %v2958_v58 = vadd.f32 %v2942_v24, %v7319_v6  ;;  %v2943_v17 = vrot.slane %v2931_v42, 1 }
 0x90c   :  { %v2933_v30 = vpop.f32.mrf.mxu1  ;;  %v2844_v9 = vmul.f32 %v3977_v62, %v6626_v11  ;;  %v3441_v51 = vmul.f32 -1.442695, %v2956_v19  ;;  %v3444_v28 = vmul.f32 -1.442695, %v2960_v54  ;;  %v2957_v43 = vadd.f32 %v2941_v13, %v7318_v61  ;;  %v3979_v46 = vpop.eup %3978 }
 0x90d   :  { %v2961_v52 = vadd.f32 %v2945_v7, %v7317_v27  ;;  %v2893_v15 = vpop.f32.mrf.mxu0  ;;  %v2946_v11 = vrot.slane %v2929_v23, 2  ;;  %v2947_v27 = vrot.slane %v2931_v42, 2  ;;  %v3443_v56 = vmul.f32 -1.442695, %v2958_v58 }
 0x90e   :  { %v2934_v14 = vpop.f32.mrf.mxu1  ;;  %v6747_v5 = vadd.f32 %v2845_v53, %v2844_v9  ;;  %3980 = vpow2.f32 %v3441_v51  ;;  %v3442_v44 = vmul.f32 -1.442695, %v2957_v43  ;;  %v2959_v16 = vadd.f32 %v2943_v17, %v4904_v1 }
 0x90f   :  { %3982 = vpow2.f32 %v3444_v28  ;;  %v3445_v45 = vmul.f32 -1.442695, %v2961_v52  ;;  %v2962_v61 = vadd.f32 %v2946_v11, %v4901_v4  ;;  %v2963_v59 = vadd.f32 %v2947_v27, %v7373_v50 }
 0x910   :  { %3984 = vtanh.f32 %v6747_v5  ;;  %v3004_v42 = vrot.slane %v6635_v0, 7  ;;  %v3005_v54 = vrot.slane %v6637_v20, 7 }
 0x911   :  { %3986 = vpow2.f32 %v3442_v44  ;;  %v3446_v26 = vmul.f32 -1.442695, %v2962_v61 }
 0x912   :  { %3988 = vpow2.f32 %v3445_v45 }
 0x913   :  { %3990 = vpow2.f32 %v3443_v56 }
 0x914   :  { %3992 = vpow2.f32 %v3446_v26  ;;  %v3638_v26 = vld [vmem:[%s6797_s6 + $0x38] sm:$0xff]  }
 0x915   :  { %3994 = vtanh.f32 %v2959_v16  ;;  %v3639_v16 = vld [vmem:[%s6797_s6 + $0x30] sm:$0xff]  }
 0x916   :  { %3996 = vtanh.f32 %v2963_v59  ;;  %v3641_v59 = vld [vmem:[%s6797_s6 + $0x20] sm:$0xff]  }
 0x91b   :  { %v3981_v25 = vpop.eup %3980 }
 0x91c   :  { %v3983_v29 = vpop.eup %3982  ;;  %v2982_v2 = vadd.f32 1.0, %v3981_v25  ;;  %v4224_v25 = vmov 0.0  }
 0x91d   :  { %v3985_v48 = vpop.eup %3984  ;;  %v2985_v35 = vadd.f32 1.0, %v3983_v29  ;;  %3468 = vmatprep.subr.bf16.mxu0 %v4224_v25  ;;  %v3640_v29 = vld [vmem:[%s6797_s6 + $0x28] sm:$0xff]  }
 0x91e   :  { %v2848_v49 = vmul.f32 %v3985_v48, %v3979_v46  ;;  %v3987_v6 = vpop.eup %3986  ;;  %3998 = vrcp.f32 %v2982_v2  ;;  %v3642_v48 = vld [vmem:[%s6797_s6 + $0x18] sm:$0xff]   ;;  %v3643_v2 = vld [vmem:[%s6797_s6 + $0x10] sm:$0xff]  }
 0x91f   :  { %v3989_v60 = vpop.eup %3988  ;;  %v2983_v31 = vadd.f32 1.0, %v3987_v6  ;;  %4000 = vrcp.f32 %v2985_v35  ;;  %v3644_v35 = vld [vmem:[%s6797_s6 + $0x8] sm:$0xff]  }
 0x920   :  { %v3020_v4 = vpack.c.bf16 %v2848_v49, %v2848_v49  ;;  %v2986_v3 = vadd.f32 1.0, %v3989_v60  ;;  %v3991_v41 = vpop.eup %3990  ;;  %v3645_v49 = vld [vmem:[%s6797_s6] sm:$0xff]  }
 0x921   :  { %4002 = vrcp.f32 %v2983_v31  ;;  %v3993_v23 = vpop.eup %3992  ;;  %v2984_v40 = vadd.f32 1.0, %v3991_v41 }
 0x922   :  { %v3028_v8 = vshrl.u32 %v3020_v4, 16  ;;  %v3031_v1 = vshll.u32 %v3020_v4, 16  ;;  %4004 = vrcp.f32 %v2986_v3  ;;  %v3995_v33 = vpop.eup %3994  ;;  %v2987_v62 = vadd.f32 1.0, %v3993_v23 }
 0x923   :  { %v3997_v57 = vpop.eup %3996  ;;  %4006 = vrcp.f32 %v2984_v40 }
 0x924   :  { %v3030_v50 = vrot.slane %v3028_v8, 4  ;;  %v3033_v32 = vrot.slane %v3031_v1, 5  ;;  %4008 = vrcp.f32 %v2987_v62 }
 0x926   :  { %v3034_v10 = vor.u32 %v3033_v32, %v3030_v50 }
 0x928   :  { %v3044_v63 = vshrl.u32 %v3034_v10, 16  ;;  %v3047_v38 = vshll.u32 %v3034_v10, 16 }
 0x92a   :  { %v3046_v39 = vrot.slane %v3044_v63, 3  ;;  %v3049_v55 = vrot.slane %v3047_v38, 4 }
 0x92b   :  { %v3999_v37 = vpop.eup %3998 }
 0x92c   :  { %v3050_v36 = vor.u32 %v3049_v55, %v3046_v39  ;;  %v4001_v12 = vpop.eup %4000  ;;  %v3010_v22 = vmul.f32 %v3999_v37, %v3995_v33 }
 0x92d   :  { %v3011_v9 = vmul.f32 %v4001_v12, %v3997_v57 }
 0x92e   :  { %3085 = vmatprep.mubr.bf16.mxu0 %v3050_v36  ;;  %3126 = vmatprep.mubr.bf16.mxu1 %v3050_v36  ;;  %v4003_v19 = vpop.eup %4002 }
 0x92f   :  { %v4005_v13 = vpop.eup %4004  ;;  %v3008_v7 = vmul.f32 %v4003_v19, %v3004_v42 }
 0x930   :  { %v3009_v30 = vmul.f32 %v4005_v13, %v3005_v54  ;;  %v4007_v28 = vpop.eup %4006 }
 0x931   :  { %v3012_v53 = vadd.f32 %v3010_v22, %v3008_v7  ;;  %v4009_v43 = vpop.eup %4008  ;;  %v3450_v7 = vld [vmem:[%s6798_s7] ss:$0 sm:$0xff] }
 0x932   :  { %v3013_v51 = vadd.f32 %v3011_v9, %v3009_v30 }
 0x933   :  { %4010 = vtanh.f32 %v3012_v53 }
 0x934   :  { %4012 = vtanh.f32 %v3013_v51 }
 0x940   :  { %v4011_v52 = vpop.eup %4010 }
 0x941   :  { %v4013_v0 = vpop.eup %4012  ;;  %v3016_v15 = vmul.f32 %v4011_v52, %v4007_v28 }
 0x942   :  { %v3017_v14 = vmul.f32 %v4013_v0, %v4009_v43 }
 0x943   :  { %v3018_v44 = vpack.c.bf16 %v3016_v15, %v3016_v15 }
 0x944   :  { %v3019_v20 = vpack.c.bf16 %v3017_v14, %v3017_v14 }
 0x945   :  { %v3023_v24 = vunpack.c.l.b16 %v3018_v44 }
 0x946   :  { %v3024_v45 = vunpack.c.l.b16 %v3019_v20 }
 0x948   :  { %v3025_v11 = vrot.slane %v3024_v45, 7 }
 0x94a   :  { %v3026_v58 = vpack.c.b16 %v3025_v11, %v3023_v24 }
 0x94c   :  { %v3036_v61 = vshrl.u32 %v3026_v58, 16  ;;  %v3039_v17 = vshll.u32 %v3026_v58, 16 }
 0x94e   :  { %v3038_v27 = vrot.slane %v3036_v61, 3  ;;  %v3041_v56 = vrot.slane %v3039_v17, 4 }
 0x950   :  { %v3042_v46 = vor.u32 %v3041_v56, %v3038_v27 }
 0x952   :  { %3086 = vmatmul.mubr.bf16.vlgmr.msra.gmra.mxu0 %v3042_v46  ;;  %3127 = vmatmul.mubr.bf16.vlgmr.msra.gmra.mxu1 %v3042_v46 }
 0x953   :  { %3469 = vmatpush3.bf16.msra.mxu0 %v3638_v26  ;;  %3484 = vmatprep.mubr.msk.bf16.mxu0 %vm4225_vm9, %v4224_v25 }
 0x954   :  { %3470 = vmatprep.subr.bf16.mxu0 %v4224_v25 }
 0x957   :  { %3471 = vmatpush3.bf16.msra.mxu0 %v3639_v16 }
 0x958   :  { %3472 = vmatprep.subr.bf16.mxu0 %v4224_v25 }
 0x95b   :  { %3473 = vmatpush3.bf16.msra.mxu0 %v3640_v29 }
 0x95c   :  { %3474 = vmatprep.subr.bf16.mxu0 %v4224_v25 }
 0x95f   :  { %3475 = vmatpush3.bf16.msra.mxu0 %v3641_v59 }
 0x960   :  { %3476 = vmatprep.subr.bf16.mxu0 %v4224_v25 }
 0x963   :  { %3477 = vmatpush3.bf16.msra.mxu0 %v3642_v48 }
 0x964   :  { %3478 = vmatprep.subr.bf16.mxu0 %v4224_v25 }
 0x967   :  { %3479 = vmatpush3.bf16.msra.mxu0 %v3643_v2 }
 0x968   :  { %3480 = vmatprep.subr.bf16.mxu0 %v4224_v25 }
 0x96b   :  { %3481 = vmatpush3.bf16.msra.mxu0 %v3644_v35 }
 0x96c   :  { %3482 = vmatprep.subr.bf16.mxu0 %v4224_v25 }
 0x96f   :  { %3483 = vmatpush3.bf16.msra.mxu0 %v3645_v49 }
 0xa12   :  { %v3087_v6 = vpop.f32.mrf.mxu0  ;;  %v3128_v4 = vpop.f32.mrf.mxu1 }
 0xa13   :  { %v3088_v60 = vadd.f32 %v3087_v6, %v7706_v21  ;;  %v3129_v41 = vadd.f32 %v3128_v4, %v7708_v34 }
 0xa14   :  { %v3089_v31 = vpop.f32.mrf.mxu0  ;;  %v3130_v3 = vpop.f32.mrf.mxu1 }
 0xa15   :  { %v3447_v8 = vmul.f32 -1.442695, %v3088_v60  ;;  %v3090_v1 = vadd.f32 %v3089_v31, %v7707_v18  ;;  %v3449_v39 = vmul.f32 -1.442695, %v3129_v41  ;;  %v3131_v23 = vadd.f32 %v3130_v3, %v7709_v47 }
 0xa16   :  { %v3091_v50 = vpop.f32.mrf.mxu0  ;;  %v3132_v32 = vpop.f32.mrf.mxu1 }
 0xa17   :  { %4014 = vpow2.f32 %v3447_v8  ;;  %v3448_v10 = vmul.f32 -1.442695, %v3090_v1 }
 0xa18   :  { %v3092_v63 = vpop.f32.mrf.mxu0  ;;  %v3133_v38 = vpop.f32.mrf.mxu1 }
 0xa19   :  { %4016 = vpow2.f32 %v3448_v10 }
 0xa1a   :  { %4018 = vpow2.f32 %v3449_v39 }
 0xa24   :  { %v4015_v55 = vpop.eup %4014 }
 0xa25   :  { %v3144_v33 = vadd.f32 1.0, %v4015_v55 }
 0xa26   :  { %v4017_v21 = vpop.eup %4016 }
 0xa27   :  { %4020 = vrcp.f32 %v3144_v33  ;;  %v3145_v36 = vadd.f32 1.0, %v4017_v21  ;;  %v4019_v18 = vpop.eup %4018 }
 0xa28   :  { %4022 = vtanh.f32 %v3131_v23  ;;  %v3146_v42 = vadd.f32 1.0, %v4019_v18 }
 0xa29   :  { %4024 = vrcp.f32 %v3145_v36 }
 0xa2a   :  { %4026 = vrcp.f32 %v3146_v42 }
 0xa34   :  { %v4021_v57 = vpop.eup %4020 }
 0xa35   :  { %v4023_v37 = vpop.eup %4022 }
 0xa36   :  { %v4025_v12 = vpop.eup %4024  ;;  %v3155_v19 = vmul.f32 %v4023_v37, %v4021_v57 }
 0xa37   :  { %v3154_v40 = vmul.f32 %v4025_v12, %v6747_v5  ;;  %v4027_v54 = vpop.eup %4026 }
 0xa39   :  { %v3156_v34 = vadd.f32 %v3155_v19, %v3154_v40 }
 0xa3b   :  { %4028 = vtanh.f32 %v3156_v34 }
 0xa48   :  { %v4029_v47 = vpop.eup %4028 }
 0xa49   :  { %v3158_v62 = vmul.f32 %v4029_v47, %v4027_v54 }
 0xa4b   :  { %v3159_v13 = vpack.c.bf16 %v3158_v62, %v3158_v62 }
 0xa4d   :  { %3485 = vmatmul.mubr.bf16.vlgmr.msra.gmra.mxu0 %v3159_v13 }
 0xb0d   :  { %v3265_v22 = vpop.f32.mrf.mxu0 }
 0xb0e   :  { %v3266_v30 = vadd.f32 %v3450_v7, %v3265_v22 }
 0xb0f   :  { %v3486_v9 = vpop.f32.mrf.mxu0 }
 0xb10   :  { %3272 = vst.msk [vmem:[%s6799_s8] sm:$0x3] %vm3271_vm10, %v3266_v30 }
 0xb11   :  { %v3268_v5 = vpop.f32.mrf.mxu0 }
 0xb13   :  { %v3487_v53 = vpop.f32.mrf.mxu0 }

</bundles_post_ra>
